<compile_context>
chip_gen: v5e
topology: v5e:2x2
jax: 0.10.0
libtpu: 0.0.40
codegen_flags: <defaults>
</compile_context>

<pallas_src>
import math

import jax
import jax.numpy as jnp
from jax import lax
from jax.experimental import pallas as pl
from jax.experimental.pallas import tpu as pltpu


def _round_up(x, m):
    return ((x + m - 1) // m) * m


# ----------------------------------------------------------------------------
# Fused LeNet kernel: one batch tile per grid step, everything in VMEM.
# ----------------------------------------------------------------------------
def lenet_fused_kernel(x_ref, b1m_ref, b1_ref, b2m_ref, b2_ref,
                       fw1_ref, fb1_ref, fw2_ref, fb2_ref, fw3_ref, fb3_ref,
                       out_ref):
    """x_ref:   (2, 14, TB, 28) input, H split as (parity, H//2); batch on the
                                 sublane axis, W on the lane axis.
       b1m_ref: (2, 5, 28, 72)  conv1 banded matrices [pool dw, tap ki];
                                 columns = (out-channel, pooled W).
       b2m_ref: (2, 5, 72, 64)  conv2 banded matrices; rows = (in-ch, W).
       fw1_ref: (4, 64, 120)    fc1 weight regrouped per conv2-output row h.
       out_ref: (TB, 10)        logits."""
    TB = x_ref.shape[2]
    f32 = jnp.float32

    x = x_ref[...]            # (2, 14, TB, 28)
    B1 = b1m_ref[...]         # (2, 5, 28, 72)
    B2 = b2m_ref[...]         # (2, 5, 72, 64)

    # ---- conv1 (1->6, 5x5) + ReLU + 2x2 max-pool ----------------------------
    # win1[o] holds input rows h = 2*ph + o for ph = 0..11, flattened so the
    # W-axis conv (and the pool column offset) is ONE lane-contraction matmul
    # against the banded matrix B1[dw, ki].
    win1 = [x[o % 2, o // 2:o // 2 + 12].reshape(12 * TB, 28) for o in range(6)]

    def conv1_off(dh, dw):
        s = jnp.dot(win1[dh], B1[dw, 0], preferred_element_type=f32)
        for ki in range(1, 5):
            s = s + jnp.dot(win1[dh + ki], B1[dw, ki], preferred_element_type=f32)
        return s                                              # (12*TB, 72)

    p1 = jnp.maximum(jnp.maximum(conv1_off(0, 0), conv1_off(0, 1)),
                     jnp.maximum(conv1_off(1, 0), conv1_off(1, 1)))
    # bias after the max is exact (per-channel constant, max/relu monotone)
    p1 = jnp.maximum(p1 + b1_ref[...], 0.0)      # rows=(ph,b), lanes=oc*12+w
    p1 = p1.reshape(6, 2, TB, 72)                # (h//2, h%2, b, feature)

    # ---- conv2 (6->16, 5x5) + ReLU + 2x2 max-pool ----------------------------
    win2 = [p1[o // 2:o // 2 + 4, o % 2].reshape(4 * TB, 72) for o in range(6)]

    def conv2_off(dh, dw):
        s = jnp.dot(win2[dh], B2[dw, 0], preferred_element_type=f32)
        for ki in range(1, 5):
            s = s + jnp.dot(win2[dh + ki], B2[dw, ki], preferred_element_type=f32)
        return s                                              # (4*TB, 64)

    p2 = jnp.maximum(jnp.maximum(conv2_off(0, 0), conv2_off(0, 1)),
                     jnp.maximum(conv2_off(1, 0), conv2_off(1, 1)))
    p2 = jnp.maximum(p2 + b2_ref[...], 0.0)      # rows=(ph,b), lanes=oc*4+w
    p2 = p2.reshape(4, TB, 64)                   # (h, b, feature)

    # ---- fc1 -> relu -> fc2 -> relu -> fc3 -----------------------------------
    fw1 = fw1_ref[...]                           # (4, 64, 120)
    h = jnp.dot(p2[0], fw1[0], preferred_element_type=f32)
    for r in range(1, 4):
        h = h + jnp.dot(p2[r], fw1[r], preferred_element_type=f32)
    h = jnp.maximum(h + fb1_ref[...], 0.0)       # (TB, 120)
    h = jnp.maximum(jnp.dot(h, fw2_ref[...], preferred_element_type=f32)
                    + fb2_ref[...], 0.0)         # (TB, 84)
    out_ref[...] = (jnp.dot(h, fw3_ref[...], preferred_element_type=f32)
                    + fb3_ref[...])              # (TB, 10)


# ----------------------------------------------------------------------------
# Wrapper-side weight preprocessing (pure layout / constant folding)
# ----------------------------------------------------------------------------
def _banded_pool_weight(w, ki, dw, in_w, out_w):
    """Fold the W-axis of conv tap row `ki` plus pooling column offset `dw`
    into a banded matrix B with
        B[ic*in_w + wi, oc*out_w + pw] = w[oc, ic, ki, wi - (2*pw + dw)]
    (zero outside the 5-tap band), so row_features @ B evaluates the
    convolution along W directly on the pooled output grid."""
    OC, IC, K, _ = w.shape
    wi = jnp.arange(in_w)[:, None]               # (in_w, 1)
    pw = jnp.arange(out_w)[None, :]              # (1, out_w)
    kj = wi - (2 * pw + dw)                      # (in_w, out_w)
    valid = (kj >= 0) & (kj < K)
    vals = w[:, :, ki, :][:, :, jnp.clip(kj, 0, K - 1)]    # (OC, IC, in_w, out_w)
    vals = jnp.where(valid[None, None], vals, 0.0)
    return jnp.transpose(vals, (1, 2, 0, 3)).reshape(IC * in_w, OC * out_w)


def convnet_forward(x, params, *, tb=128):
    """x: (N, 1, 28, 28) float32 NCHW (PyTorch layout) -> (N, 10) float32."""
    w1, b1, w2, b2, fw1, fb1, fw2, fb2, fw3, fb3 = params
    N = x.shape[0]

    # Batch tile on the sublane axis: multiple of 8 (f32 sublane tile).
    TB = max(8, min(_round_up(tb, 8), _round_up(N, 8)))
    Np = _round_up(N, TB)
    # v7x megacore: prefer >= 2 grid steps whenever the batch allows it.
    if Np // TB < 2 and N > 8:
        TB = _round_up((Np + 1) // 2, 8)
        Np = _round_up(N, TB)

    # Input layout: (H parity, H//2, batch, W).  Parity-splitting H means the
    # in-kernel 2x2-pool row selection is a contiguous leading-dim slice.
    xs = x.astype(jnp.float32)[:, 0]                           # (N, 28, 28)
    if Np != N:
        xs = jnp.pad(xs, ((0, Np - N), (0, 0), (0, 0)))
    x_r = jnp.transpose(xs.reshape(Np, 14, 2, 28), (2, 1, 0, 3))   # (2,14,Np,28)

    # Banded conv weights (W-axis conv + pooling offset folded into matmuls).
    B1 = jnp.stack([jnp.stack([_banded_pool_weight(w1, ki, dw, 28, 12)
                               for ki in range(5)])
                    for dw in range(2)])                        # (2, 5, 28, 72)
    B2 = jnp.stack([jnp.stack([_banded_pool_weight(w2, ki, dw, 12, 4)
                               for ki in range(5)])
                    for dw in range(2)])                        # (2, 5, 72, 64)
    b1_r = jnp.repeat(b1, 12)[None, :]                          # (1, 72)
    b2_r = jnp.repeat(b2, 4)[None, :]                           # (1, 64)

    # fc1 weight regrouped per conv2-output row h so the (c, h, w) PyTorch
    # flatten order is matched while our lanes are ordered (c, w).
    fw1_r = jnp.transpose(fw1.reshape(120, 16, 4, 4),
                          (2, 1, 3, 0)).reshape(4, 64, 120)

    flops = int(Np * (2 * 20 * 12 * 28 * 72 + 2 * 20 * 4 * 72 * 64
                      + 2 * (4 * 64 * 120 + 120 * 84 + 84 * 10)))
    w_bytes = int((B1.size + B2.size + fw1_r.size + fw2.size + fw3.size
                   + 72 + 64 + 120 + 84 + 10) * 4)
    bytes_accessed = int(Np * (2 * 14 * 28 * 4 + 10 * 4) + w_bytes)

    out = pl.pallas_call(
        lenet_fused_kernel,
        out_shape=jax.ShapeDtypeStruct((Np, 10), jnp.float32),
        grid=(Np // TB,),
        in_specs=[
            pl.BlockSpec((2, 14, TB, 28), lambda i: (0, 0, i, 0)),   # input tile
            pl.BlockSpec((2, 5, 28, 72), lambda i: (0, 0, 0, 0)),    # conv1 banded
            pl.BlockSpec((1, 72), lambda i: (0, 0)),                 # conv1 bias
            pl.BlockSpec((2, 5, 72, 64), lambda i: (0, 0, 0, 0)),    # conv2 banded
            pl.BlockSpec((1, 64), lambda i: (0, 0)),                 # conv2 bias
            pl.BlockSpec((4, 64, 120), lambda i: (0, 0, 0)),         # fc1 weight
            pl.BlockSpec((1, 120), lambda i: (0, 0)),                # fc1 bias
            pl.BlockSpec((120, 84), lambda i: (0, 0)),               # fc2 weight
            pl.BlockSpec((1, 84), lambda i: (0, 0)),                 # fc2 bias
            pl.BlockSpec((84, 10), lambda i: (0, 0)),                # fc3 weight
            pl.BlockSpec((1, 10), lambda i: (0, 0)),                 # fc3 bias
        ],
        out_specs=pl.BlockSpec((TB, 10), lambda i: (i, 0)),
        compiler_params=pltpu.CompilerParams(
            dimension_semantics=("parallel",),
            vmem_limit_bytes=40 * 1024 * 1024,
        ),
        cost_estimate=pl.CostEstimate(
            flops=flops, transcendentals=0, bytes_accessed=bytes_accessed),
    )(x_r, B1, b1_r, B2, b2_r,
      fw1_r, fb1[None, :], fw2.T, fb2[None, :], fw3.T, fb3[None, :])
    return out[:N]


# ----------------------------------------------------------------------------
# Pure-JAX f32 reference (PyTorch semantics) for a sanity check
# ----------------------------------------------------------------------------
def ref_forward(x, params):
    w1, b1, w2, b2, fw1, fb1, fw2, fb2, fw3, fb3 = params
    dn = ("NCHW", "OIHW", "NCHW")
    N = x.shape[0]
    y = lax.conv_general_dilated(x, w1, (1, 1), "VALID", dimension_numbers=dn)
    y = jnp.maximum(y + b1[None, :, None, None], 0.0)
    y = y.reshape(N, 6, 12, 2, 12, 2).max(axis=(3, 5))
    y = lax.conv_general_dilated(y, w2, (1, 1), "VALID", dimension_numbers=dn)
    y = jnp.maximum(y + b2[None, :, None, None], 0.0)
    y = y.reshape(N, 16, 4, 2, 4, 2).max(axis=(3, 5))
    y = y.reshape(N, 256)
    y = jnp.maximum(y @ fw1.T + fb1, 0.0)
    y = jnp.maximum(y @ fw2.T + fb2, 0.0)
    return y @ fw3.T + fb3


# ----------------------------------------------------------------------------
def init_params(key):
    """Deterministic init with PyTorch-like shapes and uniform(-1/sqrt(fan_in))."""
    ks = jax.random.split(key, 10)

    def u(k, shape, fan_in):
        b = 1.0 / math.sqrt(fan_in)
        return jax.random.uniform(k, shape, jnp.float32, -b, b)

    w1 = u(ks[0], (6, 1, 5, 5), 1 * 25)
    b1 = u(ks[1], (6,), 1 * 25)
    w2 = u(ks[2], (16, 6, 5, 5), 6 * 25)
    b2 = u(ks[3], (16,), 6 * 25)
    fw1 = u(ks[4], (120, 256), 256)
    fb1 = u(ks[5], (120,), 256)
    fw2 = u(ks[6], (84, 120), 120)
    fb2 = u(ks[7], (84,), 120)
    fw3 = u(ks[8], (10, 84), 84)
    fb3 = u(ks[9], (10,), 84)
    return (w1, b1, w2, b2, fw1, fb1, fw2, fb2, fw3, fb3)


if __name__ == "__main__":
    key = jax.random.PRNGKey(0)
    k_x, k_x2, k_p = jax.random.split(key, 3)

    params = init_params(k_p)
    fwd = jax.jit(convnet_forward, static_argnames=("tb",))

    # Tiny batch: single batch tile / single grid step.
    x = jax.random.normal(k_x, (2, 1, 28, 28), dtype=jnp.float32)
    out = jax.block_until_ready(fwd(x, params))
    ref = ref_forward(x, params)
    assert out.shape == (2, 10)
    assert bool(jnp.allclose(out, ref, atol=2e-2, rtol=2e-2))

    # Larger batch with a small batch tile: exercises the multi-step pipelined
    # grid and the batch-padding path (N=20 -> Np=24, 3 grid steps of TB=8).
    x2 = jax.random.normal(k_x2, (20, 1, 28, 28), dtype=jnp.float32)
    out2 = jax.block_until_ready(fwd(x2, params, tb=8))
    ref2 = ref_forward(x2, params)
    assert out2.shape == (20, 10)
    assert bool(jnp.allclose(out2, ref2, atol=2e-2, rtol=2e-2))

    print("KERNEL_OK")
</pallas_src>

<mosaic_0001>
module attributes {stable_mosaic.version = 11 : i64} {
  func.func @lenet_fused_kernel(%arg0: i32, %arg1: memref<2x14x8x28xf32, #tpu.memory_space<vmem>>, %arg2: memref<2x5x28x72xf32, #tpu.memory_space<vmem>>, %arg3: memref<1x72xf32, #tpu.memory_space<vmem>>, %arg4: memref<2x5x72x64xf32, #tpu.memory_space<vmem>>, %arg5: memref<1x64xf32, #tpu.memory_space<vmem>>, %arg6: memref<4x64x120xf32, #tpu.memory_space<vmem>>, %arg7: memref<1x120xf32, #tpu.memory_space<vmem>>, %arg8: memref<120x84xf32, #tpu.memory_space<vmem>>, %arg9: memref<1x84xf32, #tpu.memory_space<vmem>>, %arg10: memref<84x10xf32, #tpu.memory_space<vmem>>, %arg11: memref<1x10xf32, #tpu.memory_space<vmem>>, %arg12: memref<8x10xf32, #tpu.memory_space<vmem>>) attributes {dimension_semantics = [#tpu.dimension_semantics<parallel>], iteration_bounds = array<i64: 1>, scalar_prefetch = 0 : i64, scratch_operands = 0 : i64, tpu.core_type = #tpu.core_type<tc>, window_params = [{transform_indices = @transform_0, window_bounds = array<i64: 2, 14, 8, 28>}, {pipeline_mode = #tpu.pipeline_mode<synchronous>, transform_indices = @transform_1, window_bounds = array<i64: 2, 5, 28, 72>}, {pipeline_mode = #tpu.pipeline_mode<synchronous>, transform_indices = @transform_2, window_bounds = array<i64: 1, 72>}, {pipeline_mode = #tpu.pipeline_mode<synchronous>, transform_indices = @transform_3, window_bounds = array<i64: 2, 5, 72, 64>}, {pipeline_mode = #tpu.pipeline_mode<synchronous>, transform_indices = @transform_4, window_bounds = array<i64: 1, 64>}, {pipeline_mode = #tpu.pipeline_mode<synchronous>, transform_indices = @transform_5, window_bounds = array<i64: 4, 64, 120>}, {pipeline_mode = #tpu.pipeline_mode<synchronous>, transform_indices = @transform_6, window_bounds = array<i64: 1, 120>}, {pipeline_mode = #tpu.pipeline_mode<synchronous>, transform_indices = @transform_7, window_bounds = array<i64: 120, 84>}, {pipeline_mode = #tpu.pipeline_mode<synchronous>, transform_indices = @transform_8, window_bounds = array<i64: 1, 84>}, {pipeline_mode = #tpu.pipeline_mode<synchronous>, transform_indices = @transform_9, window_bounds = array<i64: 84, 10>}, {pipeline_mode = #tpu.pipeline_mode<synchronous>, transform_indices = @transform_10, window_bounds = array<i64: 1, 10>}, {transform_indices = @transform_11, window_bounds = array<i64: 8, 10>}]} {
    %c0 = arith.constant 0 : index
    %c0_0 = arith.constant 0 : index
    %c0_1 = arith.constant 0 : index
    %c0_2 = arith.constant 0 : index
    %0 = vector.load %arg1[%c0, %c0_0, %c0_1, %c0_2] : memref<2x14x8x28xf32, #tpu.memory_space<vmem>>, vector<2x14x8x28xf32>
    %c0_3 = arith.constant 0 : index
    %c0_4 = arith.constant 0 : index
    %c0_5 = arith.constant 0 : index
    %c0_6 = arith.constant 0 : index
    %1 = vector.load %arg2[%c0_3, %c0_4, %c0_5, %c0_6] : memref<2x5x28x72xf32, #tpu.memory_space<vmem>>, vector<2x5x28x72xf32>
    %c0_7 = arith.constant 0 : index
    %c0_8 = arith.constant 0 : index
    %c0_9 = arith.constant 0 : index
    %c0_10 = arith.constant 0 : index
    %2 = vector.load %arg4[%c0_7, %c0_8, %c0_9, %c0_10] : memref<2x5x72x64xf32, #tpu.memory_space<vmem>>, vector<2x5x72x64xf32>
    %3 = vector.extract_strided_slice %0 {offsets = [0, 0, 0, 0], sizes = [1, 12, 8, 28], strides = [1, 1, 1, 1]} : vector<2x14x8x28xf32> to vector<1x12x8x28xf32>
    %4 = vector.shape_cast %3 : vector<1x12x8x28xf32> to vector<12x8x28xf32>
    %5 = vector.shape_cast %4 : vector<12x8x28xf32> to vector<96x28xf32>
    %6 = vector.extract_strided_slice %0 {offsets = [1, 0, 0, 0], sizes = [1, 12, 8, 28], strides = [1, 1, 1, 1]} : vector<2x14x8x28xf32> to vector<1x12x8x28xf32>
    %7 = vector.shape_cast %6 : vector<1x12x8x28xf32> to vector<12x8x28xf32>
    %8 = vector.shape_cast %7 : vector<12x8x28xf32> to vector<96x28xf32>
    %9 = vector.extract_strided_slice %0 {offsets = [0, 1, 0, 0], sizes = [1, 12, 8, 28], strides = [1, 1, 1, 1]} : vector<2x14x8x28xf32> to vector<1x12x8x28xf32>
    %10 = vector.shape_cast %9 : vector<1x12x8x28xf32> to vector<12x8x28xf32>
    %11 = vector.shape_cast %10 : vector<12x8x28xf32> to vector<96x28xf32>
    %12 = vector.extract_strided_slice %0 {offsets = [1, 1, 0, 0], sizes = [1, 12, 8, 28], strides = [1, 1, 1, 1]} : vector<2x14x8x28xf32> to vector<1x12x8x28xf32>
    %13 = vector.shape_cast %12 : vector<1x12x8x28xf32> to vector<12x8x28xf32>
    %14 = vector.shape_cast %13 : vector<12x8x28xf32> to vector<96x28xf32>
    %15 = vector.extract_strided_slice %0 {offsets = [0, 2, 0, 0], sizes = [1, 12, 8, 28], strides = [1, 1, 1, 1]} : vector<2x14x8x28xf32> to vector<1x12x8x28xf32>
    %16 = vector.shape_cast %15 : vector<1x12x8x28xf32> to vector<12x8x28xf32>
    %17 = vector.shape_cast %16 : vector<12x8x28xf32> to vector<96x28xf32>
    %18 = vector.extract_strided_slice %0 {offsets = [1, 2, 0, 0], sizes = [1, 12, 8, 28], strides = [1, 1, 1, 1]} : vector<2x14x8x28xf32> to vector<1x12x8x28xf32>
    %19 = vector.shape_cast %18 : vector<1x12x8x28xf32> to vector<12x8x28xf32>
    %20 = vector.shape_cast %19 : vector<12x8x28xf32> to vector<96x28xf32>
    %21 = vector.extract_strided_slice %1 {offsets = [0, 0, 0, 0], sizes = [1, 1, 28, 72], strides = [1, 1, 1, 1]} : vector<2x5x28x72xf32> to vector<1x1x28x72xf32>
    %22 = vector.shape_cast %21 : vector<1x1x28x72xf32> to vector<28x72xf32>
    %cst = arith.constant dense<0.000000e+00> : vector<96x72xf32>
    %23 = tpu.matmul %5, %22, %cst {dimension_numbers = #tpu.dot_dimension_numbers<[1], [0], [0], [1], [0, 0, 1, 1], [], []>} : vector<96x28xf32>, vector<28x72xf32>, vector<96x72xf32> -> vector<96x72xf32>
    %24 = vector.extract_strided_slice %1 {offsets = [0, 1, 0, 0], sizes = [1, 1, 28, 72], strides = [1, 1, 1, 1]} : vector<2x5x28x72xf32> to vector<1x1x28x72xf32>
    %25 = vector.shape_cast %24 : vector<1x1x28x72xf32> to vector<28x72xf32>
    %cst_11 = arith.constant dense<0.000000e+00> : vector<96x72xf32>
    %26 = tpu.matmul %8, %25, %cst_11 {dimension_numbers = #tpu.dot_dimension_numbers<[1], [0], [0], [1], [0, 0, 1, 1], [], []>} : vector<96x28xf32>, vector<28x72xf32>, vector<96x72xf32> -> vector<96x72xf32>
    %27 = arith.addf %23, %26 : vector<96x72xf32>
    %28 = vector.extract_strided_slice %1 {offsets = [0, 2, 0, 0], sizes = [1, 1, 28, 72], strides = [1, 1, 1, 1]} : vector<2x5x28x72xf32> to vector<1x1x28x72xf32>
    %29 = vector.shape_cast %28 : vector<1x1x28x72xf32> to vector<28x72xf32>
    %cst_12 = arith.constant dense<0.000000e+00> : vector<96x72xf32>
    %30 = tpu.matmul %11, %29, %cst_12 {dimension_numbers = #tpu.dot_dimension_numbers<[1], [0], [0], [1], [0, 0, 1, 1], [], []>} : vector<96x28xf32>, vector<28x72xf32>, vector<96x72xf32> -> vector<96x72xf32>
    %31 = arith.addf %27, %30 : vector<96x72xf32>
    %32 = vector.extract_strided_slice %1 {offsets = [0, 3, 0, 0], sizes = [1, 1, 28, 72], strides = [1, 1, 1, 1]} : vector<2x5x28x72xf32> to vector<1x1x28x72xf32>
    %33 = vector.shape_cast %32 : vector<1x1x28x72xf32> to vector<28x72xf32>
    %cst_13 = arith.constant dense<0.000000e+00> : vector<96x72xf32>
    %34 = tpu.matmul %14, %33, %cst_13 {dimension_numbers = #tpu.dot_dimension_numbers<[1], [0], [0], [1], [0, 0, 1, 1], [], []>} : vector<96x28xf32>, vector<28x72xf32>, vector<96x72xf32> -> vector<96x72xf32>
    %35 = arith.addf %31, %34 : vector<96x72xf32>
    %36 = vector.extract_strided_slice %1 {offsets = [0, 4, 0, 0], sizes = [1, 1, 28, 72], strides = [1, 1, 1, 1]} : vector<2x5x28x72xf32> to vector<1x1x28x72xf32>
    %37 = vector.shape_cast %36 : vector<1x1x28x72xf32> to vector<28x72xf32>
    %cst_14 = arith.constant dense<0.000000e+00> : vector<96x72xf32>
    %38 = tpu.matmul %17, %37, %cst_14 {dimension_numbers = #tpu.dot_dimension_numbers<[1], [0], [0], [1], [0, 0, 1, 1], [], []>} : vector<96x28xf32>, vector<28x72xf32>, vector<96x72xf32> -> vector<96x72xf32>
    %39 = arith.addf %35, %38 : vector<96x72xf32>
    %40 = vector.extract_strided_slice %1 {offsets = [1, 0, 0, 0], sizes = [1, 1, 28, 72], strides = [1, 1, 1, 1]} : vector<2x5x28x72xf32> to vector<1x1x28x72xf32>
    %41 = vector.shape_cast %40 : vector<1x1x28x72xf32> to vector<28x72xf32>
    %cst_15 = arith.constant dense<0.000000e+00> : vector<96x72xf32>
    %42 = tpu.matmul %5, %41, %cst_15 {dimension_numbers = #tpu.dot_dimension_numbers<[1], [0], [0], [1], [0, 0, 1, 1], [], []>} : vector<96x28xf32>, vector<28x72xf32>, vector<96x72xf32> -> vector<96x72xf32>
    %43 = vector.extract_strided_slice %1 {offsets = [1, 1, 0, 0], sizes = [1, 1, 28, 72], strides = [1, 1, 1, 1]} : vector<2x5x28x72xf32> to vector<1x1x28x72xf32>
    %44 = vector.shape_cast %43 : vector<1x1x28x72xf32> to vector<28x72xf32>
    %cst_16 = arith.constant dense<0.000000e+00> : vector<96x72xf32>
    %45 = tpu.matmul %8, %44, %cst_16 {dimension_numbers = #tpu.dot_dimension_numbers<[1], [0], [0], [1], [0, 0, 1, 1], [], []>} : vector<96x28xf32>, vector<28x72xf32>, vector<96x72xf32> -> vector<96x72xf32>
    %46 = arith.addf %42, %45 : vector<96x72xf32>
    %47 = vector.extract_strided_slice %1 {offsets = [1, 2, 0, 0], sizes = [1, 1, 28, 72], strides = [1, 1, 1, 1]} : vector<2x5x28x72xf32> to vector<1x1x28x72xf32>
    %48 = vector.shape_cast %47 : vector<1x1x28x72xf32> to vector<28x72xf32>
    %cst_17 = arith.constant dense<0.000000e+00> : vector<96x72xf32>
    %49 = tpu.matmul %11, %48, %cst_17 {dimension_numbers = #tpu.dot_dimension_numbers<[1], [0], [0], [1], [0, 0, 1, 1], [], []>} : vector<96x28xf32>, vector<28x72xf32>, vector<96x72xf32> -> vector<96x72xf32>
    %50 = arith.addf %46, %49 : vector<96x72xf32>
    %51 = vector.extract_strided_slice %1 {offsets = [1, 3, 0, 0], sizes = [1, 1, 28, 72], strides = [1, 1, 1, 1]} : vector<2x5x28x72xf32> to vector<1x1x28x72xf32>
    %52 = vector.shape_cast %51 : vector<1x1x28x72xf32> to vector<28x72xf32>
    %cst_18 = arith.constant dense<0.000000e+00> : vector<96x72xf32>
    %53 = tpu.matmul %14, %52, %cst_18 {dimension_numbers = #tpu.dot_dimension_numbers<[1], [0], [0], [1], [0, 0, 1, 1], [], []>} : vector<96x28xf32>, vector<28x72xf32>, vector<96x72xf32> -> vector<96x72xf32>
    %54 = arith.addf %50, %53 : vector<96x72xf32>
    %55 = vector.extract_strided_slice %1 {offsets = [1, 4, 0, 0], sizes = [1, 1, 28, 72], strides = [1, 1, 1, 1]} : vector<2x5x28x72xf32> to vector<1x1x28x72xf32>
    %56 = vector.shape_cast %55 : vector<1x1x28x72xf32> to vector<28x72xf32>
    %cst_19 = arith.constant dense<0.000000e+00> : vector<96x72xf32>
    %57 = tpu.matmul %17, %56, %cst_19 {dimension_numbers = #tpu.dot_dimension_numbers<[1], [0], [0], [1], [0, 0, 1, 1], [], []>} : vector<96x28xf32>, vector<28x72xf32>, vector<96x72xf32> -> vector<96x72xf32>
    %58 = arith.addf %54, %57 : vector<96x72xf32>
    %59 = arith.maximumf %39, %58 : vector<96x72xf32>
    %60 = vector.extract_strided_slice %1 {offsets = [0, 0, 0, 0], sizes = [1, 1, 28, 72], strides = [1, 1, 1, 1]} : vector<2x5x28x72xf32> to vector<1x1x28x72xf32>
    %61 = vector.shape_cast %60 : vector<1x1x28x72xf32> to vector<28x72xf32>
    %cst_20 = arith.constant dense<0.000000e+00> : vector<96x72xf32>
    %62 = tpu.matmul %8, %61, %cst_20 {dimension_numbers = #tpu.dot_dimension_numbers<[1], [0], [0], [1], [0, 0, 1, 1], [], []>} : vector<96x28xf32>, vector<28x72xf32>, vector<96x72xf32> -> vector<96x72xf32>
    %63 = vector.extract_strided_slice %1 {offsets = [0, 1, 0, 0], sizes = [1, 1, 28, 72], strides = [1, 1, 1, 1]} : vector<2x5x28x72xf32> to vector<1x1x28x72xf32>
    %64 = vector.shape_cast %63 : vector<1x1x28x72xf32> to vector<28x72xf32>
    %cst_21 = arith.constant dense<0.000000e+00> : vector<96x72xf32>
    %65 = tpu.matmul %11, %64, %cst_21 {dimension_numbers = #tpu.dot_dimension_numbers<[1], [0], [0], [1], [0, 0, 1, 1], [], []>} : vector<96x28xf32>, vector<28x72xf32>, vector<96x72xf32> -> vector<96x72xf32>
    %66 = arith.addf %62, %65 : vector<96x72xf32>
    %67 = vector.extract_strided_slice %1 {offsets = [0, 2, 0, 0], sizes = [1, 1, 28, 72], strides = [1, 1, 1, 1]} : vector<2x5x28x72xf32> to vector<1x1x28x72xf32>
    %68 = vector.shape_cast %67 : vector<1x1x28x72xf32> to vector<28x72xf32>
    %cst_22 = arith.constant dense<0.000000e+00> : vector<96x72xf32>
    %69 = tpu.matmul %14, %68, %cst_22 {dimension_numbers = #tpu.dot_dimension_numbers<[1], [0], [0], [1], [0, 0, 1, 1], [], []>} : vector<96x28xf32>, vector<28x72xf32>, vector<96x72xf32> -> vector<96x72xf32>
    %70 = arith.addf %66, %69 : vector<96x72xf32>
    %71 = vector.extract_strided_slice %1 {offsets = [0, 3, 0, 0], sizes = [1, 1, 28, 72], strides = [1, 1, 1, 1]} : vector<2x5x28x72xf32> to vector<1x1x28x72xf32>
    %72 = vector.shape_cast %71 : vector<1x1x28x72xf32> to vector<28x72xf32>
    %cst_23 = arith.constant dense<0.000000e+00> : vector<96x72xf32>
    %73 = tpu.matmul %17, %72, %cst_23 {dimension_numbers = #tpu.dot_dimension_numbers<[1], [0], [0], [1], [0, 0, 1, 1], [], []>} : vector<96x28xf32>, vector<28x72xf32>, vector<96x72xf32> -> vector<96x72xf32>
    %74 = arith.addf %70, %73 : vector<96x72xf32>
    %75 = vector.extract_strided_slice %1 {offsets = [0, 4, 0, 0], sizes = [1, 1, 28, 72], strides = [1, 1, 1, 1]} : vector<2x5x28x72xf32> to vector<1x1x28x72xf32>
    %76 = vector.shape_cast %75 : vector<1x1x28x72xf32> to vector<28x72xf32>
    %cst_24 = arith.constant dense<0.000000e+00> : vector<96x72xf32>
    %77 = tpu.matmul %20, %76, %cst_24 {dimension_numbers = #tpu.dot_dimension_numbers<[1], [0], [0], [1], [0, 0, 1, 1], [], []>} : vector<96x28xf32>, vector<28x72xf32>, vector<96x72xf32> -> vector<96x72xf32>
    %78 = arith.addf %74, %77 : vector<96x72xf32>
    %79 = vector.extract_strided_slice %1 {offsets = [1, 0, 0, 0], sizes = [1, 1, 28, 72], strides = [1, 1, 1, 1]} : vector<2x5x28x72xf32> to vector<1x1x28x72xf32>
    %80 = vector.shape_cast %79 : vector<1x1x28x72xf32> to vector<28x72xf32>
    %cst_25 = arith.constant dense<0.000000e+00> : vector<96x72xf32>
    %81 = tpu.matmul %8, %80, %cst_25 {dimension_numbers = #tpu.dot_dimension_numbers<[1], [0], [0], [1], [0, 0, 1, 1], [], []>} : vector<96x28xf32>, vector<28x72xf32>, vector<96x72xf32> -> vector<96x72xf32>
    %82 = vector.extract_strided_slice %1 {offsets = [1, 1, 0, 0], sizes = [1, 1, 28, 72], strides = [1, 1, 1, 1]} : vector<2x5x28x72xf32> to vector<1x1x28x72xf32>
    %83 = vector.shape_cast %82 : vector<1x1x28x72xf32> to vector<28x72xf32>
    %cst_26 = arith.constant dense<0.000000e+00> : vector<96x72xf32>
    %84 = tpu.matmul %11, %83, %cst_26 {dimension_numbers = #tpu.dot_dimension_numbers<[1], [0], [0], [1], [0, 0, 1, 1], [], []>} : vector<96x28xf32>, vector<28x72xf32>, vector<96x72xf32> -> vector<96x72xf32>
    %85 = arith.addf %81, %84 : vector<96x72xf32>
    %86 = vector.extract_strided_slice %1 {offsets = [1, 2, 0, 0], sizes = [1, 1, 28, 72], strides = [1, 1, 1, 1]} : vector<2x5x28x72xf32> to vector<1x1x28x72xf32>
    %87 = vector.shape_cast %86 : vector<1x1x28x72xf32> to vector<28x72xf32>
    %cst_27 = arith.constant dense<0.000000e+00> : vector<96x72xf32>
    %88 = tpu.matmul %14, %87, %cst_27 {dimension_numbers = #tpu.dot_dimension_numbers<[1], [0], [0], [1], [0, 0, 1, 1], [], []>} : vector<96x28xf32>, vector<28x72xf32>, vector<96x72xf32> -> vector<96x72xf32>
    %89 = arith.addf %85, %88 : vector<96x72xf32>
    %90 = vector.extract_strided_slice %1 {offsets = [1, 3, 0, 0], sizes = [1, 1, 28, 72], strides = [1, 1, 1, 1]} : vector<2x5x28x72xf32> to vector<1x1x28x72xf32>
    %91 = vector.shape_cast %90 : vector<1x1x28x72xf32> to vector<28x72xf32>
    %cst_28 = arith.constant dense<0.000000e+00> : vector<96x72xf32>
    %92 = tpu.matmul %17, %91, %cst_28 {dimension_numbers = #tpu.dot_dimension_numbers<[1], [0], [0], [1], [0, 0, 1, 1], [], []>} : vector<96x28xf32>, vector<28x72xf32>, vector<96x72xf32> -> vector<96x72xf32>
    %93 = arith.addf %89, %92 : vector<96x72xf32>
    %94 = vector.extract_strided_slice %1 {offsets = [1, 4, 0, 0], sizes = [1, 1, 28, 72], strides = [1, 1, 1, 1]} : vector<2x5x28x72xf32> to vector<1x1x28x72xf32>
    %95 = vector.shape_cast %94 : vector<1x1x28x72xf32> to vector<28x72xf32>
    %cst_29 = arith.constant dense<0.000000e+00> : vector<96x72xf32>
    %96 = tpu.matmul %20, %95, %cst_29 {dimension_numbers = #tpu.dot_dimension_numbers<[1], [0], [0], [1], [0, 0, 1, 1], [], []>} : vector<96x28xf32>, vector<28x72xf32>, vector<96x72xf32> -> vector<96x72xf32>
    %97 = arith.addf %93, %96 : vector<96x72xf32>
    %98 = arith.maximumf %78, %97 : vector<96x72xf32>
    %99 = arith.maximumf %59, %98 : vector<96x72xf32>
    %c0_30 = arith.constant 0 : index
    %c0_31 = arith.constant 0 : index
    %100 = vector.load %arg3[%c0_30, %c0_31] : memref<1x72xf32, #tpu.memory_space<vmem>>, vector<1x72xf32>
    %101 = vector.broadcast %100 : vector<1x72xf32> to vector<96x72xf32>
    %102 = arith.addf %99, %101 : vector<96x72xf32>
    %cst_32 = arith.constant 0.000000e+00 : f32
    %103 = vector.broadcast %cst_32 : f32 to vector<96x72xf32>
    %104 = arith.maximumf %102, %103 : vector<96x72xf32>
    %105 = vector.shape_cast %104 : vector<96x72xf32> to vector<6x2x8x72xf32>
    %106 = vector.extract_strided_slice %105 {offsets = [0, 0, 0, 0], sizes = [4, 1, 8, 72], strides = [1, 1, 1, 1]} : vector<6x2x8x72xf32> to vector<4x1x8x72xf32>
    %107 = vector.shape_cast %106 : vector<4x1x8x72xf32> to vector<4x8x72xf32>
    %108 = vector.shape_cast %107 : vector<4x8x72xf32> to vector<32x72xf32>
    %109 = vector.extract_strided_slice %105 {offsets = [0, 1, 0, 0], sizes = [4, 1, 8, 72], strides = [1, 1, 1, 1]} : vector<6x2x8x72xf32> to vector<4x1x8x72xf32>
    %110 = vector.shape_cast %109 : vector<4x1x8x72xf32> to vector<4x8x72xf32>
    %111 = vector.shape_cast %110 : vector<4x8x72xf32> to vector<32x72xf32>
    %112 = vector.extract_strided_slice %105 {offsets = [1, 0, 0, 0], sizes = [4, 1, 8, 72], strides = [1, 1, 1, 1]} : vector<6x2x8x72xf32> to vector<4x1x8x72xf32>
    %113 = vector.shape_cast %112 : vector<4x1x8x72xf32> to vector<4x8x72xf32>
    %114 = vector.shape_cast %113 : vector<4x8x72xf32> to vector<32x72xf32>
    %115 = vector.extract_strided_slice %105 {offsets = [1, 1, 0, 0], sizes = [4, 1, 8, 72], strides = [1, 1, 1, 1]} : vector<6x2x8x72xf32> to vector<4x1x8x72xf32>
    %116 = vector.shape_cast %115 : vector<4x1x8x72xf32> to vector<4x8x72xf32>
    %117 = vector.shape_cast %116 : vector<4x8x72xf32> to vector<32x72xf32>
    %118 = vector.extract_strided_slice %105 {offsets = [2, 0, 0, 0], sizes = [4, 1, 8, 72], strides = [1, 1, 1, 1]} : vector<6x2x8x72xf32> to vector<4x1x8x72xf32>
    %119 = vector.shape_cast %118 : vector<4x1x8x72xf32> to vector<4x8x72xf32>
    %120 = vector.shape_cast %119 : vector<4x8x72xf32> to vector<32x72xf32>
    %121 = vector.extract_strided_slice %105 {offsets = [2, 1, 0, 0], sizes = [4, 1, 8, 72], strides = [1, 1, 1, 1]} : vector<6x2x8x72xf32> to vector<4x1x8x72xf32>
    %122 = vector.shape_cast %121 : vector<4x1x8x72xf32> to vector<4x8x72xf32>
    %123 = vector.shape_cast %122 : vector<4x8x72xf32> to vector<32x72xf32>
    %124 = vector.extract_strided_slice %2 {offsets = [0, 0, 0, 0], sizes = [1, 1, 72, 64], strides = [1, 1, 1, 1]} : vector<2x5x72x64xf32> to vector<1x1x72x64xf32>
    %125 = vector.shape_cast %124 : vector<1x1x72x64xf32> to vector<72x64xf32>
    %cst_33 = arith.constant dense<0.000000e+00> : vector<32x64xf32>
    %126 = tpu.matmul %108, %125, %cst_33 {dimension_numbers = #tpu.dot_dimension_numbers<[1], [0], [0], [1], [0, 0, 1, 1], [], []>} : vector<32x72xf32>, vector<72x64xf32>, vector<32x64xf32> -> vector<32x64xf32>
    %127 = vector.extract_strided_slice %2 {offsets = [0, 1, 0, 0], sizes = [1, 1, 72, 64], strides = [1, 1, 1, 1]} : vector<2x5x72x64xf32> to vector<1x1x72x64xf32>
    %128 = vector.shape_cast %127 : vector<1x1x72x64xf32> to vector<72x64xf32>
    %cst_34 = arith.constant dense<0.000000e+00> : vector<32x64xf32>
    %129 = tpu.matmul %111, %128, %cst_34 {dimension_numbers = #tpu.dot_dimension_numbers<[1], [0], [0], [1], [0, 0, 1, 1], [], []>} : vector<32x72xf32>, vector<72x64xf32>, vector<32x64xf32> -> vector<32x64xf32>
    %130 = arith.addf %126, %129 : vector<32x64xf32>
    %131 = vector.extract_strided_slice %2 {offsets = [0, 2, 0, 0], sizes = [1, 1, 72, 64], strides = [1, 1, 1, 1]} : vector<2x5x72x64xf32> to vector<1x1x72x64xf32>
    %132 = vector.shape_cast %131 : vector<1x1x72x64xf32> to vector<72x64xf32>
    %cst_35 = arith.constant dense<0.000000e+00> : vector<32x64xf32>
    %133 = tpu.matmul %114, %132, %cst_35 {dimension_numbers = #tpu.dot_dimension_numbers<[1], [0], [0], [1], [0, 0, 1, 1], [], []>} : vector<32x72xf32>, vector<72x64xf32>, vector<32x64xf32> -> vector<32x64xf32>
    %134 = arith.addf %130, %133 : vector<32x64xf32>
    %135 = vector.extract_strided_slice %2 {offsets = [0, 3, 0, 0], sizes = [1, 1, 72, 64], strides = [1, 1, 1, 1]} : vector<2x5x72x64xf32> to vector<1x1x72x64xf32>
    %136 = vector.shape_cast %135 : vector<1x1x72x64xf32> to vector<72x64xf32>
    %cst_36 = arith.constant dense<0.000000e+00> : vector<32x64xf32>
    %137 = tpu.matmul %117, %136, %cst_36 {dimension_numbers = #tpu.dot_dimension_numbers<[1], [0], [0], [1], [0, 0, 1, 1], [], []>} : vector<32x72xf32>, vector<72x64xf32>, vector<32x64xf32> -> vector<32x64xf32>
    %138 = arith.addf %134, %137 : vector<32x64xf32>
    %139 = vector.extract_strided_slice %2 {offsets = [0, 4, 0, 0], sizes = [1, 1, 72, 64], strides = [1, 1, 1, 1]} : vector<2x5x72x64xf32> to vector<1x1x72x64xf32>
    %140 = vector.shape_cast %139 : vector<1x1x72x64xf32> to vector<72x64xf32>
    %cst_37 = arith.constant dense<0.000000e+00> : vector<32x64xf32>
    %141 = tpu.matmul %120, %140, %cst_37 {dimension_numbers = #tpu.dot_dimension_numbers<[1], [0], [0], [1], [0, 0, 1, 1], [], []>} : vector<32x72xf32>, vector<72x64xf32>, vector<32x64xf32> -> vector<32x64xf32>
    %142 = arith.addf %138, %141 : vector<32x64xf32>
    %143 = vector.extract_strided_slice %2 {offsets = [1, 0, 0, 0], sizes = [1, 1, 72, 64], strides = [1, 1, 1, 1]} : vector<2x5x72x64xf32> to vector<1x1x72x64xf32>
    %144 = vector.shape_cast %143 : vector<1x1x72x64xf32> to vector<72x64xf32>
    %cst_38 = arith.constant dense<0.000000e+00> : vector<32x64xf32>
    %145 = tpu.matmul %108, %144, %cst_38 {dimension_numbers = #tpu.dot_dimension_numbers<[1], [0], [0], [1], [0, 0, 1, 1], [], []>} : vector<32x72xf32>, vector<72x64xf32>, vector<32x64xf32> -> vector<32x64xf32>
    %146 = vector.extract_strided_slice %2 {offsets = [1, 1, 0, 0], sizes = [1, 1, 72, 64], strides = [1, 1, 1, 1]} : vector<2x5x72x64xf32> to vector<1x1x72x64xf32>
    %147 = vector.shape_cast %146 : vector<1x1x72x64xf32> to vector<72x64xf32>
    %cst_39 = arith.constant dense<0.000000e+00> : vector<32x64xf32>
    %148 = tpu.matmul %111, %147, %cst_39 {dimension_numbers = #tpu.dot_dimension_numbers<[1], [0], [0], [1], [0, 0, 1, 1], [], []>} : vector<32x72xf32>, vector<72x64xf32>, vector<32x64xf32> -> vector<32x64xf32>
    %149 = arith.addf %145, %148 : vector<32x64xf32>
    %150 = vector.extract_strided_slice %2 {offsets = [1, 2, 0, 0], sizes = [1, 1, 72, 64], strides = [1, 1, 1, 1]} : vector<2x5x72x64xf32> to vector<1x1x72x64xf32>
    %151 = vector.shape_cast %150 : vector<1x1x72x64xf32> to vector<72x64xf32>
    %cst_40 = arith.constant dense<0.000000e+00> : vector<32x64xf32>
    %152 = tpu.matmul %114, %151, %cst_40 {dimension_numbers = #tpu.dot_dimension_numbers<[1], [0], [0], [1], [0, 0, 1, 1], [], []>} : vector<32x72xf32>, vector<72x64xf32>, vector<32x64xf32> -> vector<32x64xf32>
    %153 = arith.addf %149, %152 : vector<32x64xf32>
    %154 = vector.extract_strided_slice %2 {offsets = [1, 3, 0, 0], sizes = [1, 1, 72, 64], strides = [1, 1, 1, 1]} : vector<2x5x72x64xf32> to vector<1x1x72x64xf32>
    %155 = vector.shape_cast %154 : vector<1x1x72x64xf32> to vector<72x64xf32>
    %cst_41 = arith.constant dense<0.000000e+00> : vector<32x64xf32>
    %156 = tpu.matmul %117, %155, %cst_41 {dimension_numbers = #tpu.dot_dimension_numbers<[1], [0], [0], [1], [0, 0, 1, 1], [], []>} : vector<32x72xf32>, vector<72x64xf32>, vector<32x64xf32> -> vector<32x64xf32>
    %157 = arith.addf %153, %156 : vector<32x64xf32>
    %158 = vector.extract_strided_slice %2 {offsets = [1, 4, 0, 0], sizes = [1, 1, 72, 64], strides = [1, 1, 1, 1]} : vector<2x5x72x64xf32> to vector<1x1x72x64xf32>
    %159 = vector.shape_cast %158 : vector<1x1x72x64xf32> to vector<72x64xf32>
    %cst_42 = arith.constant dense<0.000000e+00> : vector<32x64xf32>
    %160 = tpu.matmul %120, %159, %cst_42 {dimension_numbers = #tpu.dot_dimension_numbers<[1], [0], [0], [1], [0, 0, 1, 1], [], []>} : vector<32x72xf32>, vector<72x64xf32>, vector<32x64xf32> -> vector<32x64xf32>
    %161 = arith.addf %157, %160 : vector<32x64xf32>
    %162 = arith.maximumf %142, %161 : vector<32x64xf32>
    %163 = vector.extract_strided_slice %2 {offsets = [0, 0, 0, 0], sizes = [1, 1, 72, 64], strides = [1, 1, 1, 1]} : vector<2x5x72x64xf32> to vector<1x1x72x64xf32>
    %164 = vector.shape_cast %163 : vector<1x1x72x64xf32> to vector<72x64xf32>
    %cst_43 = arith.constant dense<0.000000e+00> : vector<32x64xf32>
    %165 = tpu.matmul %111, %164, %cst_43 {dimension_numbers = #tpu.dot_dimension_numbers<[1], [0], [0], [1], [0, 0, 1, 1], [], []>} : vector<32x72xf32>, vector<72x64xf32>, vector<32x64xf32> -> vector<32x64xf32>
    %166 = vector.extract_strided_slice %2 {offsets = [0, 1, 0, 0], sizes = [1, 1, 72, 64], strides = [1, 1, 1, 1]} : vector<2x5x72x64xf32> to vector<1x1x72x64xf32>
    %167 = vector.shape_cast %166 : vector<1x1x72x64xf32> to vector<72x64xf32>
    %cst_44 = arith.constant dense<0.000000e+00> : vector<32x64xf32>
    %168 = tpu.matmul %114, %167, %cst_44 {dimension_numbers = #tpu.dot_dimension_numbers<[1], [0], [0], [1], [0, 0, 1, 1], [], []>} : vector<32x72xf32>, vector<72x64xf32>, vector<32x64xf32> -> vector<32x64xf32>
    %169 = arith.addf %165, %168 : vector<32x64xf32>
    %170 = vector.extract_strided_slice %2 {offsets = [0, 2, 0, 0], sizes = [1, 1, 72, 64], strides = [1, 1, 1, 1]} : vector<2x5x72x64xf32> to vector<1x1x72x64xf32>
    %171 = vector.shape_cast %170 : vector<1x1x72x64xf32> to vector<72x64xf32>
    %cst_45 = arith.constant dense<0.000000e+00> : vector<32x64xf32>
    %172 = tpu.matmul %117, %171, %cst_45 {dimension_numbers = #tpu.dot_dimension_numbers<[1], [0], [0], [1], [0, 0, 1, 1], [], []>} : vector<32x72xf32>, vector<72x64xf32>, vector<32x64xf32> -> vector<32x64xf32>
    %173 = arith.addf %169, %172 : vector<32x64xf32>
    %174 = vector.extract_strided_slice %2 {offsets = [0, 3, 0, 0], sizes = [1, 1, 72, 64], strides = [1, 1, 1, 1]} : vector<2x5x72x64xf32> to vector<1x1x72x64xf32>
    %175 = vector.shape_cast %174 : vector<1x1x72x64xf32> to vector<72x64xf32>
    %cst_46 = arith.constant dense<0.000000e+00> : vector<32x64xf32>
    %176 = tpu.matmul %120, %175, %cst_46 {dimension_numbers = #tpu.dot_dimension_numbers<[1], [0], [0], [1], [0, 0, 1, 1], [], []>} : vector<32x72xf32>, vector<72x64xf32>, vector<32x64xf32> -> vector<32x64xf32>
    %177 = arith.addf %173, %176 : vector<32x64xf32>
    %178 = vector.extract_strided_slice %2 {offsets = [0, 4, 0, 0], sizes = [1, 1, 72, 64], strides = [1, 1, 1, 1]} : vector<2x5x72x64xf32> to vector<1x1x72x64xf32>
    %179 = vector.shape_cast %178 : vector<1x1x72x64xf32> to vector<72x64xf32>
    %cst_47 = arith.constant dense<0.000000e+00> : vector<32x64xf32>
    %180 = tpu.matmul %123, %179, %cst_47 {dimension_numbers = #tpu.dot_dimension_numbers<[1], [0], [0], [1], [0, 0, 1, 1], [], []>} : vector<32x72xf32>, vector<72x64xf32>, vector<32x64xf32> -> vector<32x64xf32>
    %181 = arith.addf %177, %180 : vector<32x64xf32>
    %182 = vector.extract_strided_slice %2 {offsets = [1, 0, 0, 0], sizes = [1, 1, 72, 64], strides = [1, 1, 1, 1]} : vector<2x5x72x64xf32> to vector<1x1x72x64xf32>
    %183 = vector.shape_cast %182 : vector<1x1x72x64xf32> to vector<72x64xf32>
    %cst_48 = arith.constant dense<0.000000e+00> : vector<32x64xf32>
    %184 = tpu.matmul %111, %183, %cst_48 {dimension_numbers = #tpu.dot_dimension_numbers<[1], [0], [0], [1], [0, 0, 1, 1], [], []>} : vector<32x72xf32>, vector<72x64xf32>, vector<32x64xf32> -> vector<32x64xf32>
    %185 = vector.extract_strided_slice %2 {offsets = [1, 1, 0, 0], sizes = [1, 1, 72, 64], strides = [1, 1, 1, 1]} : vector<2x5x72x64xf32> to vector<1x1x72x64xf32>
    %186 = vector.shape_cast %185 : vector<1x1x72x64xf32> to vector<72x64xf32>
    %cst_49 = arith.constant dense<0.000000e+00> : vector<32x64xf32>
    %187 = tpu.matmul %114, %186, %cst_49 {dimension_numbers = #tpu.dot_dimension_numbers<[1], [0], [0], [1], [0, 0, 1, 1], [], []>} : vector<32x72xf32>, vector<72x64xf32>, vector<32x64xf32> -> vector<32x64xf32>
    %188 = arith.addf %184, %187 : vector<32x64xf32>
    %189 = vector.extract_strided_slice %2 {offsets = [1, 2, 0, 0], sizes = [1, 1, 72, 64], strides = [1, 1, 1, 1]} : vector<2x5x72x64xf32> to vector<1x1x72x64xf32>
    %190 = vector.shape_cast %189 : vector<1x1x72x64xf32> to vector<72x64xf32>
    %cst_50 = arith.constant dense<0.000000e+00> : vector<32x64xf32>
    %191 = tpu.matmul %117, %190, %cst_50 {dimension_numbers = #tpu.dot_dimension_numbers<[1], [0], [0], [1], [0, 0, 1, 1], [], []>} : vector<32x72xf32>, vector<72x64xf32>, vector<32x64xf32> -> vector<32x64xf32>
    %192 = arith.addf %188, %191 : vector<32x64xf32>
    %193 = vector.extract_strided_slice %2 {offsets = [1, 3, 0, 0], sizes = [1, 1, 72, 64], strides = [1, 1, 1, 1]} : vector<2x5x72x64xf32> to vector<1x1x72x64xf32>
    %194 = vector.shape_cast %193 : vector<1x1x72x64xf32> to vector<72x64xf32>
    %cst_51 = arith.constant dense<0.000000e+00> : vector<32x64xf32>
    %195 = tpu.matmul %120, %194, %cst_51 {dimension_numbers = #tpu.dot_dimension_numbers<[1], [0], [0], [1], [0, 0, 1, 1], [], []>} : vector<32x72xf32>, vector<72x64xf32>, vector<32x64xf32> -> vector<32x64xf32>
    %196 = arith.addf %192, %195 : vector<32x64xf32>
    %197 = vector.extract_strided_slice %2 {offsets = [1, 4, 0, 0], sizes = [1, 1, 72, 64], strides = [1, 1, 1, 1]} : vector<2x5x72x64xf32> to vector<1x1x72x64xf32>
    %198 = vector.shape_cast %197 : vector<1x1x72x64xf32> to vector<72x64xf32>
    %cst_52 = arith.constant dense<0.000000e+00> : vector<32x64xf32>
    %199 = tpu.matmul %123, %198, %cst_52 {dimension_numbers = #tpu.dot_dimension_numbers<[1], [0], [0], [1], [0, 0, 1, 1], [], []>} : vector<32x72xf32>, vector<72x64xf32>, vector<32x64xf32> -> vector<32x64xf32>
    %200 = arith.addf %196, %199 : vector<32x64xf32>
    %201 = arith.maximumf %181, %200 : vector<32x64xf32>
    %202 = arith.maximumf %162, %201 : vector<32x64xf32>
    %c0_53 = arith.constant 0 : index
    %c0_54 = arith.constant 0 : index
    %203 = vector.load %arg5[%c0_53, %c0_54] : memref<1x64xf32, #tpu.memory_space<vmem>>, vector<1x64xf32>
    %204 = vector.broadcast %203 : vector<1x64xf32> to vector<32x64xf32>
    %205 = arith.addf %202, %204 : vector<32x64xf32>
    %cst_55 = arith.constant 0.000000e+00 : f32
    %206 = vector.broadcast %cst_55 : f32 to vector<32x64xf32>
    %207 = arith.maximumf %205, %206 : vector<32x64xf32>
    %208 = vector.shape_cast %207 : vector<32x64xf32> to vector<4x8x64xf32>
    %c0_56 = arith.constant 0 : index
    %c0_57 = arith.constant 0 : index
    %c0_58 = arith.constant 0 : index
    %209 = vector.load %arg6[%c0_56, %c0_57, %c0_58] : memref<4x64x120xf32, #tpu.memory_space<vmem>>, vector<4x64x120xf32>
    %210 = vector.extract_strided_slice %208 {offsets = [0, 0, 0], sizes = [1, 8, 64], strides = [1, 1, 1]} : vector<4x8x64xf32> to vector<1x8x64xf32>
    %211 = vector.shape_cast %210 : vector<1x8x64xf32> to vector<8x64xf32>
    %212 = vector.extract_strided_slice %209 {offsets = [0, 0, 0], sizes = [1, 64, 120], strides = [1, 1, 1]} : vector<4x64x120xf32> to vector<1x64x120xf32>
    %213 = vector.shape_cast %212 : vector<1x64x120xf32> to vector<64x120xf32>
    %cst_59 = arith.constant dense<0.000000e+00> : vector<8x120xf32>
    %214 = tpu.matmul %211, %213, %cst_59 {dimension_numbers = #tpu.dot_dimension_numbers<[1], [0], [0], [1], [0, 0, 1, 1], [], []>} : vector<8x64xf32>, vector<64x120xf32>, vector<8x120xf32> -> vector<8x120xf32>
    %215 = vector.extract_strided_slice %208 {offsets = [1, 0, 0], sizes = [1, 8, 64], strides = [1, 1, 1]} : vector<4x8x64xf32> to vector<1x8x64xf32>
    %216 = vector.shape_cast %215 : vector<1x8x64xf32> to vector<8x64xf32>
    %217 = vector.extract_strided_slice %209 {offsets = [1, 0, 0], sizes = [1, 64, 120], strides = [1, 1, 1]} : vector<4x64x120xf32> to vector<1x64x120xf32>
    %218 = vector.shape_cast %217 : vector<1x64x120xf32> to vector<64x120xf32>
    %cst_60 = arith.constant dense<0.000000e+00> : vector<8x120xf32>
    %219 = tpu.matmul %216, %218, %cst_60 {dimension_numbers = #tpu.dot_dimension_numbers<[1], [0], [0], [1], [0, 0, 1, 1], [], []>} : vector<8x64xf32>, vector<64x120xf32>, vector<8x120xf32> -> vector<8x120xf32>
    %220 = arith.addf %214, %219 : vector<8x120xf32>
    %221 = vector.extract_strided_slice %208 {offsets = [2, 0, 0], sizes = [1, 8, 64], strides = [1, 1, 1]} : vector<4x8x64xf32> to vector<1x8x64xf32>
    %222 = vector.shape_cast %221 : vector<1x8x64xf32> to vector<8x64xf32>
    %223 = vector.extract_strided_slice %209 {offsets = [2, 0, 0], sizes = [1, 64, 120], strides = [1, 1, 1]} : vector<4x64x120xf32> to vector<1x64x120xf32>
    %224 = vector.shape_cast %223 : vector<1x64x120xf32> to vector<64x120xf32>
    %cst_61 = arith.constant dense<0.000000e+00> : vector<8x120xf32>
    %225 = tpu.matmul %222, %224, %cst_61 {dimension_numbers = #tpu.dot_dimension_numbers<[1], [0], [0], [1], [0, 0, 1, 1], [], []>} : vector<8x64xf32>, vector<64x120xf32>, vector<8x120xf32> -> vector<8x120xf32>
    %226 = arith.addf %220, %225 : vector<8x120xf32>
    %227 = vector.extract_strided_slice %208 {offsets = [3, 0, 0], sizes = [1, 8, 64], strides = [1, 1, 1]} : vector<4x8x64xf32> to vector<1x8x64xf32>
    %228 = vector.shape_cast %227 : vector<1x8x64xf32> to vector<8x64xf32>
    %229 = vector.extract_strided_slice %209 {offsets = [3, 0, 0], sizes = [1, 64, 120], strides = [1, 1, 1]} : vector<4x64x120xf32> to vector<1x64x120xf32>
    %230 = vector.shape_cast %229 : vector<1x64x120xf32> to vector<64x120xf32>
    %cst_62 = arith.constant dense<0.000000e+00> : vector<8x120xf32>
    %231 = tpu.matmul %228, %230, %cst_62 {dimension_numbers = #tpu.dot_dimension_numbers<[1], [0], [0], [1], [0, 0, 1, 1], [], []>} : vector<8x64xf32>, vector<64x120xf32>, vector<8x120xf32> -> vector<8x120xf32>
    %232 = arith.addf %226, %231 : vector<8x120xf32>
    %c0_63 = arith.constant 0 : index
    %c0_64 = arith.constant 0 : index
    %233 = vector.load %arg7[%c0_63, %c0_64] : memref<1x120xf32, #tpu.memory_space<vmem>>, vector<1x120xf32>
    %234 = vector.broadcast %233 : vector<1x120xf32> to vector<8x120xf32>
    %235 = arith.addf %232, %234 : vector<8x120xf32>
    %cst_65 = arith.constant 0.000000e+00 : f32
    %236 = vector.broadcast %cst_65 : f32 to vector<8x120xf32>
    %237 = arith.maximumf %235, %236 : vector<8x120xf32>
    %c0_66 = arith.constant 0 : index
    %c0_67 = arith.constant 0 : index
    %238 = vector.load %arg8[%c0_66, %c0_67] : memref<120x84xf32, #tpu.memory_space<vmem>>, vector<120x84xf32>
    %cst_68 = arith.constant dense<0.000000e+00> : vector<8x84xf32>
    %239 = tpu.matmul %237, %238, %cst_68 {dimension_numbers = #tpu.dot_dimension_numbers<[1], [0], [0], [1], [0, 0, 1, 1], [], []>} : vector<8x120xf32>, vector<120x84xf32>, vector<8x84xf32> -> vector<8x84xf32>
    %c0_69 = arith.constant 0 : index
    %c0_70 = arith.constant 0 : index
    %240 = vector.load %arg9[%c0_69, %c0_70] : memref<1x84xf32, #tpu.memory_space<vmem>>, vector<1x84xf32>
    %241 = vector.broadcast %240 : vector<1x84xf32> to vector<8x84xf32>
    %242 = arith.addf %239, %241 : vector<8x84xf32>
    %cst_71 = arith.constant 0.000000e+00 : f32
    %243 = vector.broadcast %cst_71 : f32 to vector<8x84xf32>
    %244 = arith.maximumf %242, %243 : vector<8x84xf32>
    %c0_72 = arith.constant 0 : index
    %c0_73 = arith.constant 0 : index
    %245 = vector.load %arg10[%c0_72, %c0_73] : memref<84x10xf32, #tpu.memory_space<vmem>>, vector<84x10xf32>
    %cst_74 = arith.constant dense<0.000000e+00> : vector<8x10xf32>
    %246 = tpu.matmul %244, %245, %cst_74 {dimension_numbers = #tpu.dot_dimension_numbers<[1], [0], [0], [1], [0, 0, 1, 1], [], []>} : vector<8x84xf32>, vector<84x10xf32>, vector<8x10xf32> -> vector<8x10xf32>
    %c0_75 = arith.constant 0 : index
    %c0_76 = arith.constant 0 : index
    %247 = vector.load %arg11[%c0_75, %c0_76] : memref<1x10xf32, #tpu.memory_space<vmem>>, vector<1x10xf32>
    %248 = vector.broadcast %247 : vector<1x10xf32> to vector<8x10xf32>
    %249 = arith.addf %246, %248 : vector<8x10xf32>
    %c0_77 = arith.constant 0 : index
    %c0_78 = arith.constant 0 : index
    %250 = vector.load %arg12[%c0_77, %c0_78] : memref<8x10xf32, #tpu.memory_space<vmem>>, vector<8x10xf32>
    tpu.vector_store %arg12[%c0_77, %c0_78], %249 {strides = array<i32>} : memref<8x10xf32, #tpu.memory_space<vmem>>, vector<8x10xf32>,
    return
  }
  func.func @transform_0(%arg0: i32) -> (i32, i32, i32, i32) {
    %c0_i32 = arith.constant 0 : i32
    %c0_i32_0 = arith.constant 0 : i32
    %c0_i32_1 = arith.constant 0 : i32
    %c0_i32_2 = arith.constant 0 : i32
    return %c0_i32, %c0_i32_0, %arg0, %c0_i32_1 : i32, i32, i32, i32
  }
  func.func @transform_1(%arg0: i32) -> (i32, i32, i32, i32) {
    %c0_i32 = arith.constant 0 : i32
    %c0_i32_0 = arith.constant 0 : i32
    %c0_i32_1 = arith.constant 0 : i32
    %c0_i32_2 = arith.constant 0 : i32
    %c0_i32_3 = arith.constant 0 : i32
    return %c0_i32, %c0_i32_0, %c0_i32_1, %c0_i32_2 : i32, i32, i32, i32
  }
  func.func @transform_2(%arg0: i32) -> (i32, i32) {
    %c0_i32 = arith.constant 0 : i32
    %c0_i32_0 = arith.constant 0 : i32
    %c0_i32_1 = arith.constant 0 : i32
    return %c0_i32, %c0_i32_0 : i32, i32
  }
  func.func @transform_3(%arg0: i32) -> (i32, i32, i32, i32) {
    %c0_i32 = arith.constant 0 : i32
    %c0_i32_0 = arith.constant 0 : i32
    %c0_i32_1 = arith.constant 0 : i32
    %c0_i32_2 = arith.constant 0 : i32
    %c0_i32_3 = arith.constant 0 : i32
    return %c0_i32, %c0_i32_0, %c0_i32_1, %c0_i32_2 : i32, i32, i32, i32
  }
  func.func @transform_4(%arg0: i32) -> (i32, i32) {
    %c0_i32 = arith.constant 0 : i32
    %c0_i32_0 = arith.constant 0 : i32
    %c0_i32_1 = arith.constant 0 : i32
    return %c0_i32, %c0_i32_0 : i32, i32
  }
  func.func @transform_5(%arg0: i32) -> (i32, i32, i32) {
    %c0_i32 = arith.constant 0 : i32
    %c0_i32_0 = arith.constant 0 : i32
    %c0_i32_1 = arith.constant 0 : i32
    %c0_i32_2 = arith.constant 0 : i32
    return %c0_i32, %c0_i32_0, %c0_i32_1 : i32, i32, i32
  }
  func.func @transform_6(%arg0: i32) -> (i32, i32) {
    %c0_i32 = arith.constant 0 : i32
    %c0_i32_0 = arith.constant 0 : i32
    %c0_i32_1 = arith.constant 0 : i32
    return %c0_i32, %c0_i32_0 : i32, i32
  }
  func.func @transform_7(%arg0: i32) -> (i32, i32) {
    %c0_i32 = arith.constant 0 : i32
    %c0_i32_0 = arith.constant 0 : i32
    %c0_i32_1 = arith.constant 0 : i32
    return %c0_i32, %c0_i32_0 : i32, i32
  }
  func.func @transform_8(%arg0: i32) -> (i32, i32) {
    %c0_i32 = arith.constant 0 : i32
    %c0_i32_0 = arith.constant 0 : i32
    %c0_i32_1 = arith.constant 0 : i32
    return %c0_i32, %c0_i32_0 : i32, i32
  }
  func.func @transform_9(%arg0: i32) -> (i32, i32) {
    %c0_i32 = arith.constant 0 : i32
    %c0_i32_0 = arith.constant 0 : i32
    %c0_i32_1 = arith.constant 0 : i32
    return %c0_i32, %c0_i32_0 : i32, i32
  }
  func.func @transform_10(%arg0: i32) -> (i32, i32) {
    %c0_i32 = arith.constant 0 : i32
    %c0_i32_0 = arith.constant 0 : i32
    %c0_i32_1 = arith.constant 0 : i32
    return %c0_i32, %c0_i32_0 : i32, i32
  }
  func.func @transform_11(%arg0: i32) -> (i32, i32) {
    %c0_i32 = arith.constant 0 : i32
    %c0_i32_0 = arith.constant 0 : i32
    return %arg0, %c0_i32 : i32, i32
  }
}

</mosaic_0001>

<bundles_post_ra>
// kernel: convnet_forward.1
= control target key start
LH: loop header
LB: loop body
LE: loop exit
PB: predicated region body
PF: predicated region fallthrough
CT: control target
= control target key end

     0   :  { %vm233_vm0 = vcmask 1043456   ;;  %vm196_vm1 = vcmask 228352   ;;  %vm1580_vm2 = vcmask 588800   ;;  %vm2301_vm3 = vcmask 523264   ;;  %s5435_s1 = inlined_call_operand.vmem [shape: f32[2,5,28,72], index: 1, kind: input, shape index: {}]   ;;  %s5436_s0 = inlined_call_operand.vmem [shape: f32[2,14,8,28], index: 0, kind: input, shape index: {}]   ;;  %s5437_s2 = inlined_call_operand.vmem [shape: f32[1,72], index: 2, kind: input, shape index: {}]   ;;  %s5438_s3 = inlined_call_operand.vmem [shape: f32[2,5,72,64], index: 3, kind: input, shape index: {}]   ;;  %s5439_s4 = inlined_call_operand.vmem [shape: f32[1,64], index: 4, kind: input, shape index: {}]   ;;  %s5440_s5 = inlined_call_operand.vmem [shape: f32[4,64,120], index: 5, kind: input, shape index: {}]   ;;  %s5441_s6 = inlined_call_operand.vmem [shape: f32[1,120], index: 6, kind: input, shape index: {}]   ;;  %s5442_s8 = inlined_call_operand.vmem [shape: f32[1,84], index: 8, kind: input, shape index: {}]   ;;  %s5443_s7 = inlined_call_operand.vmem [shape: f32[120,84], index: 7, kind: input, shape index: {}]   ;;  %s5444_s9 = inlined_call_operand.vmem [shape: f32[84,10], index: 9, kind: input, shape index: {}]   ;;  %s5445_s10 = inlined_call_operand.vmem [shape: f32[1,10], index: 10, kind: input, shape index: {}]   ;;  %s5446_s11 = inlined_call_operand.vmem [shape: f32[8,10], index: 11, kind: output, shape index: {}]  }
   0x1   :  { %v2941_v0 = vld [vmem:[%s5435_s1 + $0x38] sm:$0xf]  ;;  %v2951_v2 = vld [vmem:[%s5435_s1 + $0x30] sm:$0xff]  ;;  %v2967_v4 = vld [vmem:[%s5435_s1 + $0x28] sm:$0xff]  ;;  %vm2421_vm4 = vcmask 982016   ;;  %vm2461_vm5 = vcmask 687104  }
   0x2   :  { %v2946_v1 = vld [vmem:[%s5435_s1 + $0x18] sm:$0xf]  ;;  %2494 = vmatpush.msk.msra.mxu0 %vm233_vm0, %v2941_v0  ;;  %2841 = vmatpush.msk.msra.mxu2 %vm233_vm0, %v2941_v0  ;;  %v2960_v3 = vld [vmem:[%s5435_s1 + $0x10] sm:$0xff]  ;;  %v2976_v5 = vld [vmem:[%s5435_s1 + $0x8] sm:$0xff]  ;;  %vm2488_vm6 = vcmask 80896  }
   0x3   :  { %2507 = vmatpush.msk.msra.mxu1 %vm233_vm0, %v2946_v1  ;;  %2845 = vmatpush.msk.msra.mxu3 %vm233_vm0, %v2946_v1  ;;  %v2982_v6 = vld [vmem:[%s5435_s1 + $0x20] sm:$0xff]  ;;  %v2995_v8 = vld [vmem:[%s5436_s0 + $0x70] sm:$0xff]  ;;  %v3014_v11 = vld [vmem:[%s5435_s1 + $0x58] sm:$0xf] }
   0x4   :  { %250 = vmatpush.msra.mxu0 %v2951_v2  ;;  %2842 = vmatpush.msra.mxu2 %v2951_v2  ;;  %v2990_v7 = vld [vmem:[%s5435_s1] sm:$0xff]  ;;  %v3022_v12 = vld [vmem:[%s5436_s0 + $0x58] sm:$0xff]  ;;  %v3031_v13 = vld [vmem:[%s5435_s1 + $0x50] sm:$0xff] }
   0x5   :  { %342 = vmatpush.msra.mxu1 %v2960_v3  ;;  %2846 = vmatpush.msra.mxu3 %v2960_v3  ;;  %v3001_v9 = vld [vmem:[%s5436_s0 + $0xc0] sm:$0xff]  ;;  %v3036_v14 = vld [vmem:[%s5435_s1 + $0x78] sm:$0xf]  ;;  %v3056_v17 = vld [vmem:[%s5435_s1 + $0x48] sm:$0xff] }
   0x6   :  { %251 = vmatpush.msra.mxu0 %v2967_v4  ;;  %2843 = vmatpush.msra.mxu2 %v2967_v4  ;;  %v3006_v10 = vld [vmem:[%s5436_s0] sm:$0xff]  ;;  %v3041_v15 = vld [vmem:[%s5435_s1 + $0xd8] sm:$0xf]  ;;  %v3061_v18 = vld [vmem:[%s5435_s1 + $0x70] sm:$0xff] }
   0x7   :  { %343 = vmatpush.msra.mxu1 %v2976_v5  ;;  %2847 = vmatpush.msra.mxu3 %v2976_v5  ;;  %v3049_v16 = vld [vmem:[%s5435_s1 + $0x98] sm:$0xf]  ;;  %v3076_v20 = vld [vmem:[%s5435_s1 + $0x40] sm:$0xff]  ;;  %v3083_v21 = vld [vmem:[%s5436_s0 + $0xc8] sm:$0xff] }
   0x8   :  { %252 = vmatpush.msra.mxu0 %v2982_v6  ;;  %2844 = vmatpush.msra.mxu2 %v2982_v6  ;;  %v3071_v19 = vld [vmem:[%s5436_s0 + $0x78] sm:$0xff]  ;;  %v3088_v22 = vld [vmem:[%s5436_s0 + $0x8] sm:$0xff]  ;;  %v3112_v25 = vld [vmem:[%s5435_s1 + $0x60] sm:$0xff] }
   0x9   :  { %344 = vmatpush.msra.mxu1 %v2990_v7  ;;  %2495 = vmatmul.msk.f32.vlgmr.msra.gmra.mxu0 %vm196_vm1, %v2995_v8  ;;  %v3095_v23 = vld [vmem:[%s5435_s1 + $0x68] sm:$0xff]  ;;  %v3100_v24 = vld [vmem:[%s5435_s1 + $0xb8] sm:$0xf]  ;;  %v3117_v26 = vld [vmem:[%s5435_s1 + $0xb0] sm:$0xff] }
   0xa   :  { %2505 = vmatmul.msk.f32.vlgmr.msra.gmra.mxu2 %vm196_vm1, %v3001_v9  ;;  %2508 = vmatmul.msk.f32.vlgmr.msra.gmra.mxu1 %vm196_vm1, %v3006_v10  ;;  %v3125_v27 = vld [vmem:[%s5435_s1 + $0xf8] sm:$0xf]  ;;  %v3132_v28 = vld [vmem:[%s5436_s0 + $0x80] sm:$0xff]  ;;  %v3139_v29 = vld [vmem:[%s5435_s1 + $0xf0] sm:$0xff] }
   0xb   :  { %2520 = vmatpush.msk.msrb.mxu2 %vm233_vm0, %v3014_v11  ;;  %2848 = vmatpush.msra.mxu3 %v2990_v7  ;;  %v3144_v30 = vld [vmem:[%s5436_s0 + $0x10] sm:$0xff]  ;;  %v3170_v33 = vld [vmem:[%s5436_s0 + $0x88] sm:$0xff]  ;;  %v3177_v34 = vld [vmem:[%s5436_s0 + $0x18] sm:$0xff] }
   0xc   :  { %2519 = vmatmul.msk.f32.vlgmr.msra.gmra.mxu3 %vm196_vm1, %v3022_v12  ;;  %2559 = vmatpush.msk.msrb.mxu1 %vm233_vm0, %v3041_v15  ;;  %v3158_v31 = vld [vmem:[%s5435_s1 + $0xd0] sm:$0xff]  ;;  %v3195_v36 = vld [vmem:[%s5436_s0 + $0x20] sm:$0xff]  ;;  %v3206_v37 = vld [vmem:[%s5435_s1 + $0xa8] sm:$0xff] }
   0xd   :  { %401 = vmatpush.msrb.mxu2 %v3031_v13  ;;  %2533 = vmatpush.msk.msrb.mxu3 %vm233_vm0, %v3036_v14  ;;  %v3163_v32 = vld [vmem:[%s5435_s1 + $0x90] sm:$0xff]  ;;  %v3211_v38 = vld [vmem:[%s5435_s1 + $0xe8] sm:$0xff]  ;;  %v3218_v39 = vld [vmem:[%s5436_s0 + $0x98] sm:$0xff] }
   0xe   :  { %2546 = vmatpush.msk.msrb.mxu0 %vm233_vm0, %v3049_v16  ;;  %611 = vmatpush.msrb.mxu1 %v3158_v31  ;;  %v3188_v35 = vld [vmem:[%s5436_s0 + $0x90] sm:$0xff]  ;;  %v3225_v40 = vld [vmem:[%s5436_s0 + $0x28] sm:$0xff]  ;;  %v3246_v43 = vld [vmem:[%s5435_s1 + $0x80] sm:$0xff] }
   0xf   :  { %402 = vmatpush.msrb.mxu2 %v3056_v17  ;;  %472 = vmatpush.msrb.mxu3 %v3061_v18  ;;  %v3236_v41 = vld [vmem:[%s5435_s1 + $0xc8] sm:$0xff]  ;;  %v3254_v44 = vld [vmem:[%s5436_s0 + $0xa0] sm:$0xff]  ;;  %v3261_v45 = vld [vmem:[%s5436_s0 + $0x30] sm:$0xff] }
  0x10   :  { %543 = vmatpush.msrb.mxu0 %v3163_v32  ;;  %v3241_v42 = vld [vmem:[%s5435_s1 + $0x88] sm:$0xff]  ;;  %612 = vmatpush.msrb.mxu1 %v3236_v41  ;;  %v3272_v46 = vld [vmem:[%s5435_s1 + $0xc0] sm:$0xff]  ;;  %v3285_v48 = vld [vmem:[%s5436_s0 + $0x38] sm:$0xff] }
  0x11   :  { %2496 = vmatmul.msk.f32.gmra.mxu0 %vm196_vm1, %v3071_v19  ;;  %403 = vmatpush.msrb.mxu2 %v3076_v20  ;;  %v3278_v47 = vld [vmem:[%s5436_s0 + $0xa8] sm:$0xff]  ;;  %v3296_v49 = vld [vmem:[%s5435_s1 + $0xa0] sm:$0xff]  ;;  %v3312_v51 = vld [vmem:[%s5436_s0 + $0xb0] sm:$0xff] }
  0x12   :  { %2506 = vmatmul.msk.f32.gmra.mxu2 %vm196_vm1, %v3083_v21  ;;  %2509 = vmatmul.msk.f32.gmra.mxu1 %vm196_vm1, %v3088_v22  ;;  %v3301_v50 = vld [vmem:[%s5435_s1 + $0xe0] sm:$0xff]  ;;  %v3336_v53 = vld [vmem:[%s5436_s0 + $0xb8] sm:$0xff]  ;;  %v3343_v54 = vld [vmem:[%s5436_s0 + $0x48] sm:$0xff] }
  0x13   :  { %473 = vmatpush.msrb.mxu3 %v3095_v23  ;;  %2572 = vmatpush.msk.msra.mxu2 %vm233_vm0, %v3100_v24  ;;  %v3320_v52 = vld [vmem:[%s5436_s0 + $0x40] sm:$0xff]  ;;  %v3356_v55 = vld [vmem:[%s5436_s0 + $0x50] sm:$0xff]  ;;  %v3367_v56 = vld [vmem:[%s5435_s1 + $0x118] sm:$0xf] }
  0x14   :  { %544 = vmatpush.msrb.mxu0 %v3241_v42  ;;  %613 = vmatpush.msrb.mxu1 %v3272_v46  ;;  %v3372_v57 = vld [vmem:[%s5435_s1 + $0x138] sm:$0xf]  ;;  %v3397_v58 = vld [vmem:[%s5436_s0 + $0xd0] sm:$0xff]  ;;  %v3404_v59 = vld [vmem:[%s5436_s0 + $0x60] sm:$0xff] }
  0x15   :  { %474 = vmatpush.msrb.mxu3 %v3112_v25  ;;  %667 = vmatpush.msra.mxu2 %v3117_v26  ;;  %v3415_v60 = vld [vmem:[%s5435_s1 + $0x110] sm:$0xff] }
  0x16   :  { %2534 = vmatmul.msk.f32.vlgmr.msrb.gmra.mxu3 %vm196_vm1, %v3071_v19  ;;  %545 = vmatpush.msrb.mxu0 %v3246_v43  ;;  %v3423_v61 = vld [vmem:[%s5435_s1 + $0x130] sm:$0xff] }
  0x17   :  { %2585 = vmatpush.msk.msra.mxu3 %vm233_vm0, %v3125_v27  ;;  %668 = vmatpush.msra.mxu2 %v3206_v37 }
  0x18   :  { %2598 = vmatpush.msk.msra.mxu0 %vm233_vm0, %v3367_v56  ;;  %2611 = vmatpush.msk.msra.mxu1 %vm233_vm0, %v3372_v57 }
  0x19   :  { %2497 = vmatmul.msk.f32.gmra.mxu0 %vm196_vm1, %v3132_v28  ;;  %723 = vmatpush.msra.mxu3 %v3139_v29 }
  0x1a   :  { %2510 = vmatmul.msk.f32.gmra.mxu1 %vm196_vm1, %v3144_v30  ;;  %2521 = vmatmul.msk.f32.vlgmr.msrb.gmra.mxu2 %vm196_vm1, %v3088_v22 }
  0x1b   :  { %724 = vmatpush.msra.mxu3 %v3211_v38  ;;  %669 = vmatpush.msra.mxu2 %v3296_v49 }
  0x1c   :  { %791 = vmatpush.msra.mxu0 %v3415_v60  ;;  %859 = vmatpush.msra.mxu1 %v3423_v61 }
  0x1d   :  { %725 = vmatpush.msra.mxu3 %v3301_v50  ;;  %2624 = vmatpush.msk.msrb.mxu2 %vm233_vm0, %v2941_v0  ;;  %v3461_v0 = vld [vmem:[%s5435_s1 + $0x108] sm:$0xff] }
  0x1e   :  { %2535 = vmatmul.msk.f32.gmra.mxu3 %vm196_vm1, %v3132_v28  ;;  %792 = vmatpush.msra.mxu0 %v3461_v0 }
  0x1f   :  { %2637 = vmatpush.msk.msrb.mxu3 %vm233_vm0, %v2946_v1  ;;  %936 = vmatpush.msrb.mxu2 %v2951_v2 }
  0x21   :  { %2498 = vmatmul.msk.f32.gmra.mxu0 %vm196_vm1, %v3170_v33  ;;  %989 = vmatpush.msrb.mxu3 %v2960_v3 }
  0x22   :  { %2511 = vmatmul.msk.f32.gmra.mxu1 %vm196_vm1, %v3177_v34  ;;  %2522 = vmatmul.msk.f32.gmra.mxu2 %vm196_vm1, %v3144_v30 }
  0x23   :  { %937 = vmatpush.msrb.mxu2 %v2967_v4  ;;  %990 = vmatpush.msrb.mxu3 %v2976_v5  ;;  %v3471_v5 = vld [vmem:[%s5435_s1 + $0x128] sm:$0xff] }
  0x24   :  { %860 = vmatpush.msra.mxu1 %v3471_v5 }
  0x25   :  { %938 = vmatpush.msrb.mxu2 %v2982_v6  ;;  %991 = vmatpush.msrb.mxu3 %v2990_v7 }
  0x26   :  { %2536 = vmatmul.msk.f32.gmra.mxu3 %vm196_vm1, %v3170_v33 }
  0x29   :  { %2499 = vmatmul.msk.f32.gmra.mxu0 %vm196_vm1, %v3188_v35 }
  0x2a   :  { %2512 = vmatmul.msk.f32.gmra.mxu1 %vm196_vm1, %v3195_v36  ;;  %2523 = vmatmul.msk.f32.gmra.mxu2 %vm196_vm1, %v3177_v34 }
  0x2e   :  { %2537 = vmatmul.msk.f32.gmra.mxu3 %vm196_vm1, %v3188_v35 }
  0x31   :  { %2500 = vmatmul.msk.f32.gmra.mxu0 %vm196_vm1, %v3218_v39 }
  0x32   :  { %2513 = vmatmul.msk.f32.gmra.mxu1 %vm196_vm1, %v3225_v40  ;;  %2524 = vmatmul.msk.f32.gmra.mxu2 %vm196_vm1, %v3195_v36 }
  0x36   :  { %2538 = vmatmul.msk.f32.gmra.mxu3 %vm196_vm1, %v3218_v39 }
  0x39   :  { %2501 = vmatmul.msk.f32.gmra.mxu0 %vm196_vm1, %v3254_v44 }
  0x3a   :  { %2514 = vmatmul.msk.f32.gmra.mxu1 %vm196_vm1, %v3261_v45  ;;  %2525 = vmatmul.msk.f32.gmra.mxu2 %vm196_vm1, %v3225_v40 }
  0x3e   :  { %2539 = vmatmul.msk.f32.gmra.mxu3 %vm196_vm1, %v3254_v44 }
  0x41   :  { %2502 = vmatmul.msk.f32.gmra.mxu0 %vm196_vm1, %v3278_v47 }
  0x42   :  { %2515 = vmatmul.msk.f32.gmra.mxu1 %vm196_vm1, %v3285_v48  ;;  %2526 = vmatmul.msk.f32.gmra.mxu2 %vm196_vm1, %v3261_v45 }
  0x46   :  { %2540 = vmatmul.msk.f32.gmra.mxu3 %vm196_vm1, %v3278_v47 }
  0x49   :  { %2503 = vmatmul.msk.f32.gmra.mxu0 %vm196_vm1, %v3312_v51 }
  0x4a   :  { %2516 = vmatmul.msk.f32.gmra.mxu1 %vm196_vm1, %v3320_v52  ;;  %2527 = vmatmul.msk.f32.gmra.mxu2 %vm196_vm1, %v3285_v48 }
  0x4e   :  { %2541 = vmatmul.msk.f32.gmra.mxu3 %vm196_vm1, %v3312_v51 }
  0x51   :  { %2504 = vmatmul.msk.f32.gmra.mxu0 %vm196_vm1, %v3336_v53 }
  0x52   :  { %2517 = vmatmul.msk.f32.gmra.mxu1 %vm196_vm1, %v3343_v54  ;;  %2528 = vmatmul.msk.f32.gmra.mxu2 %vm196_vm1, %v3320_v52 }
  0x56   :  { %2542 = vmatmul.msk.f32.gmra.mxu3 %vm196_vm1, %v3336_v53 }
  0x59   :  { %2547 = vmatmul.msk.f32.vlgmr.msrb.gmra.mxu0 %vm196_vm1, %v3144_v30 }
  0x5a   :  { %2518 = vmatmul.msk.f32.gmra.mxu1 %vm196_vm1, %v3356_v55  ;;  %2529 = vmatmul.msk.f32.gmra.mxu2 %vm196_vm1, %v3343_v54 }
  0x5e   :  { %2543 = vmatmul.msk.f32.gmra.mxu3 %vm196_vm1, %v3001_v9 }
  0x61   :  { %2548 = vmatmul.msk.f32.gmra.mxu0 %vm196_vm1, %v3177_v34 }
  0x62   :  { %2530 = vmatmul.msk.f32.gmra.mxu2 %vm196_vm1, %v3356_v55  ;;  %2560 = vmatmul.msk.f32.vlgmr.msrb.gmra.mxu1 %vm196_vm1, %v2995_v8 }
  0x66   :  { %2544 = vmatmul.msk.f32.gmra.mxu3 %vm196_vm1, %v3083_v21 }
  0x69   :  { %2549 = vmatmul.msk.f32.gmra.mxu0 %vm196_vm1, %v3195_v36 }
  0x6a   :  { %2531 = vmatmul.msk.f32.gmra.mxu2 %vm196_vm1, %v3022_v12  ;;  %2561 = vmatmul.msk.f32.gmra.mxu1 %vm196_vm1, %v3071_v19 }
  0x6e   :  { %2545 = vmatmul.msk.f32.gmra.mxu3 %vm196_vm1, %v3397_v58 }
  0x71   :  { %2550 = vmatmul.msk.f32.gmra.mxu0 %vm196_vm1, %v3225_v40 }
  0x72   :  { %2532 = vmatmul.msk.f32.gmra.mxu2 %vm196_vm1, %v3404_v59  ;;  %2562 = vmatmul.msk.f32.gmra.mxu1 %vm196_vm1, %v3132_v28 }
  0x76   :  { %2586 = vmatmul.msk.f32.vlgmr.msra.gmra.mxu3 %vm196_vm1, %v3088_v22 }
  0x77   :  { %2689 = vmatpush.msk.msra.mxu3 %vm233_vm0, %v3041_v15 }
  0x79   :  { %2551 = vmatmul.msk.f32.gmra.mxu0 %vm196_vm1, %v3261_v45  ;;  %1240 = vmatpush.msra.mxu3 %v3158_v31 }
  0x7a   :  { %2563 = vmatmul.msk.f32.gmra.mxu1 %vm196_vm1, %v3170_v33  ;;  %2573 = vmatmul.msk.f32.vlgmr.msra.gmra.mxu2 %vm196_vm1, %v3006_v10 }
  0x7b   :  { %2676 = vmatpush.msk.msra.mxu2 %vm233_vm0, %v3049_v16  ;;  %1241 = vmatpush.msra.mxu3 %v3236_v41  ;;  %v3487_v16 = vld [vmem:[%s5435_s1 + $0x100] sm:$0xff] }
  0x7c   :  { %793 = vmatpush.msra.mxu0 %v3487_v16 }
  0x7d   :  { %1175 = vmatpush.msra.mxu2 %v3163_v32  ;;  %1242 = vmatpush.msra.mxu3 %v3272_v46 }
  0x7e   :  { %2587 = vmatmul.msk.f32.gmra.mxu3 %vm196_vm1, %v3144_v30  ;;  %2650 = vmatpush.msk.msrb.mxu0 %vm233_vm0, %v3014_v11 }
  0x7f   :  { %1176 = vmatpush.msra.mxu2 %v3241_v42 }
  0x80   :  { %1042 = vmatpush.msrb.mxu0 %v3031_v13 }
  0x81   :  { %2552 = vmatmul.msk.f32.gmra.mxu0 %vm196_vm1, %v3285_v48  ;;  %1177 = vmatpush.msra.mxu2 %v3246_v43 }
  0x82   :  { %2564 = vmatmul.msk.f32.gmra.mxu1 %vm196_vm1, %v3188_v35  ;;  %2574 = vmatmul.msk.f32.gmra.mxu2 %vm196_vm1, %v3088_v22 }
  0x83   :  { %1043 = vmatpush.msrb.mxu0 %v3056_v17 }
  0x85   :  { %1044 = vmatpush.msrb.mxu0 %v3076_v20 }
  0x86   :  { %v254_v62 = vpop.f32.mrf.mxu0  ;;  %2588 = vmatmul.msk.f32.gmra.mxu3 %vm196_vm1, %v3177_v34 }
  0x87   :  { %v346_v63 = vpop.f32.mrf.mxu1 }
  0x88   :  { %v347_v32 = vadd.f32 %v346_v63, %v254_v62  ;;  %v3506_v63 = vld [vmem:[%s5435_s1 + $0x120] sm:$0xff] }
  0x89   :  { %2553 = vmatmul.msk.f32.gmra.mxu0 %vm196_vm1, %v3320_v52  ;;  %861 = vmatpush.msra.mxu1 %v3506_v63 }
  0x8a   :  { %2565 = vmatmul.msk.f32.gmra.mxu1 %vm196_vm1, %v3218_v39  ;;  %2575 = vmatmul.msk.f32.gmra.mxu2 %vm196_vm1, %v3144_v30 }
  0x8b   :  { %2663 = vmatpush.msk.msrb.mxu1 %vm233_vm0, %v3036_v14 }
  0x8d   :  { %v3464_v1 = vpop.f32.mrf.mxu2  ;;  %1107 = vmatpush.msrb.mxu1 %v3061_v18 }
  0x8e   :  { %v257_v2 = vpop.f32.mrf.mxu0  ;;  %2589 = vmatmul.msk.f32.gmra.mxu3 %vm196_vm1, %v3195_v36 }
  0x8f   :  { %v349_v3 = vpop.f32.mrf.mxu1  ;;  %v379_v4 = vpop.f32.mrf.mxu3  ;;  %1108 = vmatpush.msrb.mxu1 %v3095_v23  ;;  %v3535_v23 = vld [vmem:[%s5436_s0 + $0x68] sm:$0xff] }
  0x91   :  { %2554 = vmatmul.msk.f32.gmra.mxu0 %vm196_vm1, %v3343_v54  ;;  %1109 = vmatpush.msrb.mxu1 %v3112_v25 }
  0x92   :  { %2566 = vmatmul.msk.f32.gmra.mxu1 %vm196_vm1, %v3254_v44  ;;  %2576 = vmatmul.msk.f32.gmra.mxu2 %vm196_vm1, %v3177_v34 }
  0x95   :  { %v287_v6 = vpop.f32.mrf.mxu2 }
  0x96   :  { %v3480_v7 = vadd.f32 %v379_v4, %v287_v6  ;;  %v260_v10 = vpop.f32.mrf.mxu0  ;;  %2590 = vmatmul.msk.f32.gmra.mxu3 %vm196_vm1, %v3225_v40  ;;  %v350_v4 = vadd.f32 %v349_v3, %v257_v2 }
  0x97   :  { %v352_v15 = vpop.f32.mrf.mxu1 }
  0x98   :  { %v353_v14 = vadd.f32 %v352_v15, %v260_v10 }
  0x99   :  { %2555 = vmatmul.msk.f32.gmra.mxu0 %vm196_vm1, %v3356_v55  ;;  %v476_v31 = vpop.f32.mrf.mxu3 }
  0x9a   :  { %2567 = vmatmul.msk.f32.gmra.mxu1 %vm196_vm1, %v3278_v47  ;;  %2577 = vmatmul.msk.f32.gmra.mxu2 %vm196_vm1, %v3195_v36 }
  0x9d   :  { %v405_v41 = vpop.f32.mrf.mxu2 }
  0x9e   :  { %v441_v42 = vadd.f32 %v405_v41, %v347_v32  ;;  %v263_v43 = vpop.f32.mrf.mxu0  ;;  %2591 = vmatmul.msk.f32.gmra.mxu3 %vm196_vm1, %v3261_v45 }
  0x9f   :  { %v355_v46 = vpop.f32.mrf.mxu1 }
  0xa0   :  { %v3501_v62 = vadd.f32 %v476_v31, %v441_v42  ;;  %v356_v15 = vadd.f32 %v355_v46, %v263_v43 }
  0xa1   :  { %2556 = vmatmul.msk.f32.gmra.mxu0 %vm196_vm1, %v3022_v12  ;;  %v479_v11 = vpop.f32.mrf.mxu3 }
  0xa2   :  { %2568 = vmatmul.msk.f32.gmra.mxu1 %vm196_vm1, %v3312_v51  ;;  %2578 = vmatmul.msk.f32.gmra.mxu2 %vm196_vm1, %v3225_v40 }
  0xa5   :  { %v408_v13 = vpop.f32.mrf.mxu2 }
  0xa6   :  { %v442_v17 = vadd.f32 %v408_v13, %v350_v4  ;;  %v266_v6 = vpop.f32.mrf.mxu0  ;;  %2592 = vmatmul.msk.f32.gmra.mxu3 %vm196_vm1, %v3285_v48 }
  0xa7   :  { %v358_v2 = vpop.f32.mrf.mxu1 }
  0xa8   :  { %v3523_v3 = vadd.f32 %v479_v11, %v442_v17  ;;  %v359_v43 = vadd.f32 %v358_v2, %v266_v6 }
  0xa9   :  { %2557 = vmatmul.msk.f32.gmra.mxu0 %vm196_vm1, %v3404_v59  ;;  %v482_v31 = vpop.f32.mrf.mxu3 }
  0xaa   :  { %2569 = vmatmul.msk.f32.gmra.mxu1 %vm196_vm1, %v3336_v53  ;;  %2579 = vmatmul.msk.f32.gmra.mxu2 %vm196_vm1, %v3261_v45 }
  0xad   :  { %v411_v18 = vpop.f32.mrf.mxu2 }
  0xae   :  { %v443_v20 = vadd.f32 %v411_v18, %v353_v14  ;;  %v269_v32 = vpop.f32.mrf.mxu0  ;;  %2593 = vmatmul.msk.f32.gmra.mxu3 %vm196_vm1, %v3320_v52 }
  0xaf   :  { %v361_v41 = vpop.f32.mrf.mxu1 }
  0xb0   :  { %v3539_v25 = vadd.f32 %v482_v31, %v443_v20 }
  0xb1   :  { %2558 = vmatmul.msk.f32.gmra.mxu0 %vm196_vm1, %v3535_v23  ;;  %v485_v10 = vpop.f32.mrf.mxu3 }
  0xb2   :  { %2570 = vmatmul.msk.f32.gmra.mxu1 %vm196_vm1, %v3001_v9  ;;  %2580 = vmatmul.msk.f32.gmra.mxu2 %vm196_vm1, %v3285_v48 }
  0xb5   :  { %v414_v42 = vpop.f32.mrf.mxu2 }
  0xb6   :  { %v444_v11 = vadd.f32 %v414_v42, %v356_v15  ;;  %v272_v4 = vpop.f32.mrf.mxu0  ;;  %2594 = vmatmul.msk.f32.gmra.mxu3 %vm196_vm1, %v3343_v54 }
  0xb7   :  { %v364_v13 = vpop.f32.mrf.mxu1 }
  0xb8   :  { %v3549_v17 = vadd.f32 %v485_v10, %v444_v11  ;;  %v362_v10 = vadd.f32 %v361_v41, %v269_v32 }
  0xb9   :  { %2599 = vmatmul.msk.f32.vlgmr.msra.gmra.mxu0 %vm196_vm1, %v3071_v19  ;;  %v488_v31 = vpop.f32.mrf.mxu3 }
  0xba   :  { %2571 = vmatmul.msk.f32.gmra.mxu1 %vm196_vm1, %v3083_v21  ;;  %2581 = vmatmul.msk.f32.gmra.mxu2 %vm196_vm1, %v3320_v52 }
  0xbb   :  { %2702 = vmatpush.msk.msra.mxu0 %vm233_vm0, %v3100_v24 }
  0xbd   :  { %v417_v46 = vpop.f32.mrf.mxu2  ;;  %1293 = vmatpush.msra.mxu0 %v3117_v26 }
  0xbe   :  { %v445_v14 = vadd.f32 %v417_v46, %v359_v43  ;;  %v275_v18 = vpop.f32.mrf.mxu0  ;;  %2595 = vmatmul.msk.f32.gmra.mxu3 %vm196_vm1, %v3356_v55 }
  0xbf   :  { %v367_v20 = vpop.f32.mrf.mxu1  ;;  %1294 = vmatpush.msra.mxu0 %v3206_v37 }
  0xc0   :  { %v3563_v6 = vadd.f32 %v488_v31, %v445_v14 }
  0xc1   :  { %2600 = vmatmul.msk.f32.gmra.mxu0 %vm196_vm1, %v3132_v28  ;;  %v491_v2 = vpop.f32.mrf.mxu3 }
  0xc2   :  { %2582 = vmatmul.msk.f32.gmra.mxu2 %vm196_vm1, %v3343_v54  ;;  %2612 = vmatmul.msk.f32.vlgmr.msra.gmra.mxu1 %vm196_vm1, %v3144_v30 }
  0xc3   :  { %2715 = vmatpush.msk.msra.mxu1 %vm233_vm0, %v3125_v27  ;;  %1295 = vmatpush.msra.mxu0 %v3296_v49  ;;  %v365_v27 = vadd.f32 %v364_v13, %v272_v4  ;;  %v368_v4 = vadd.f32 %v367_v20, %v275_v18 }
  0xc5   :  { %v420_v24 = vpop.f32.mrf.mxu2  ;;  %1346 = vmatpush.msra.mxu1 %v3139_v29 }
  0xc6   :  { %v446_v26 = vadd.f32 %v420_v24, %v362_v10  ;;  %v278_v37 = vpop.f32.mrf.mxu0  ;;  %2596 = vmatmul.msk.f32.gmra.mxu3 %vm196_vm1, %v3022_v12 }
  0xc7   :  { %v370_v32 = vpop.f32.mrf.mxu1  ;;  %1347 = vmatpush.msra.mxu1 %v3211_v38 }
  0xc8   :  { %v3578_v41 = vadd.f32 %v491_v2, %v446_v26  ;;  %v371_v20 = vadd.f32 %v370_v32, %v278_v37 }
  0xc9   :  { %2601 = vmatmul.msk.f32.gmra.mxu0 %vm196_vm1, %v3170_v33  ;;  %v494_v15 = vpop.f32.mrf.mxu3  ;;  %1348 = vmatpush.msra.mxu1 %v3301_v50 }
  0xca   :  { %2583 = vmatmul.msk.f32.gmra.mxu2 %vm196_vm1, %v3356_v55  ;;  %2613 = vmatmul.msk.f32.gmra.mxu1 %vm196_vm1, %v3177_v34 }
  0xcd   :  { %v423_v29 = vpop.f32.mrf.mxu2 }
  0xce   :  { %v447_v49 = vadd.f32 %v423_v29, %v365_v27  ;;  %v281_v42 = vpop.f32.mrf.mxu0  ;;  %2597 = vmatmul.msk.f32.gmra.mxu3 %vm196_vm1, %v3404_v59 }
  0xcf   :  { %v373_v38 = vpop.f32.mrf.mxu1 }
  0xd0   :  { %v3589_v11 = vadd.f32 %v494_v15, %v447_v49 }
  0xd1   :  { %2602 = vmatmul.msk.f32.gmra.mxu0 %vm196_vm1, %v3188_v35  ;;  %v497_v50 = vpop.f32.mrf.mxu3 }
  0xd2   :  { %2584 = vmatmul.msk.f32.gmra.mxu2 %vm196_vm1, %v3022_v12  ;;  %2614 = vmatmul.msk.f32.gmra.mxu1 %vm196_vm1, %v3195_v36 }
  0xd5   :  { %v426_v13 = vpop.f32.mrf.mxu2 }
  0xd6   :  { %v448_v31 = vadd.f32 %v426_v13, %v368_v4  ;;  %v3597_v43 = vpop.f32.mrf.mxu0  ;;  %2638 = vmatmul.msk.f32.vlgmr.msrb.gmra.mxu3 %vm196_vm1, %v2995_v8 }
  0xd7   :  { %v376_v46 = vpop.f32.mrf.mxu1  ;;  %2741 = vmatpush.msk.msrb.mxu3 %vm233_vm0, %v3372_v57 }
  0xd8   :  { %v3603_v14 = vadd.f32 %v497_v50, %v448_v31  ;;  %v377_v37 = vadd.f32 %v376_v46, %v3464_v1 }
  0xd9   :  { %2603 = vmatmul.msk.f32.gmra.mxu0 %vm196_vm1, %v3218_v39  ;;  %v500_v18 = vpop.f32.mrf.mxu3  ;;  %1476 = vmatpush.msrb.mxu3 %v3423_v61 }
  0xda   :  { %2615 = vmatmul.msk.f32.gmra.mxu1 %vm196_vm1, %v3225_v40  ;;  %2625 = vmatmul.msk.f32.vlgmr.msrb.gmra.mxu2 %vm196_vm1, %v3088_v22 }
  0xdb   :  { %2728 = vmatpush.msk.msrb.mxu2 %vm233_vm0, %v3367_v56  ;;  %1477 = vmatpush.msrb.mxu3 %v3471_v5 }
  0xdd   :  { %v429_v8 = vpop.f32.mrf.mxu2  ;;  %1411 = vmatpush.msrb.mxu2 %v3415_v60  ;;  %1478 = vmatpush.msrb.mxu3 %v3506_v63  ;;  %v374_v60 = vadd.f32 %v373_v38, %v281_v42 }
  0xde   :  { %v449_v57 = vadd.f32 %v429_v8, %v371_v20  ;;  %v3617_v2 = vpop.f32.mrf.mxu0  ;;  %2639 = vmatmul.msk.f32.gmra.mxu3 %vm196_vm1, %v3071_v19 }
  0xdf   :  { %v615_v61 = vpop.f32.mrf.mxu1  ;;  %1412 = vmatpush.msrb.mxu2 %v3461_v0 }
  0xe0   :  { %v3622_v10 = vadd.f32 %v500_v18, %v449_v57 }
  0xe1   :  { %2604 = vmatmul.msk.f32.gmra.mxu0 %vm196_vm1, %v3254_v44  ;;  %v503_v56 = vpop.f32.mrf.mxu3  ;;  %1413 = vmatpush.msrb.mxu2 %v3487_v16 }
  0xe2   :  { %2616 = vmatmul.msk.f32.gmra.mxu1 %vm196_vm1, %v3261_v45  ;;  %2626 = vmatmul.msk.f32.gmra.mxu2 %vm196_vm1, %v3144_v30 }
  0xe5   :  { %v432_v5 = vpop.f32.mrf.mxu2 }
  0xe6   :  { %v450_v63 = vadd.f32 %v432_v5, %v374_v60  ;;  %v3631_v24 = vpop.f32.mrf.mxu0  ;;  %2640 = vmatmul.msk.f32.gmra.mxu3 %vm196_vm1, %v3132_v28 }
  0xe7   :  { %v618_v0 = vpop.f32.mrf.mxu1 }
  0xe8   :  { %v3635_v26 = vadd.f32 %v503_v56, %v450_v63 }
  0xe9   :  { %2605 = vmatmul.msk.f32.gmra.mxu0 %vm196_vm1, %v3278_v47  ;;  %v506_v16 = vpop.f32.mrf.mxu3 }
  0xea   :  { %2617 = vmatmul.msk.f32.gmra.mxu1 %vm196_vm1, %v3285_v48  ;;  %2627 = vmatmul.msk.f32.gmra.mxu2 %vm196_vm1, %v3177_v34 }
  0xed   :  { %v435_v32 = vpop.f32.mrf.mxu2 }
  0xee   :  { %v451_v15 = vadd.f32 %v435_v32, %v377_v37  ;;  %v3644_v27 = vpop.f32.mrf.mxu0  ;;  %2641 = vmatmul.msk.f32.gmra.mxu3 %vm196_vm1, %v3170_v33 }
  0xef   :  { %v621_v29 = vpop.f32.mrf.mxu1 }
  0xf0   :  { %v3648_v49 = vadd.f32 %v506_v16, %v451_v15 }
  0xf1   :  { %2606 = vmatmul.msk.f32.gmra.mxu0 %vm196_vm1, %v3312_v51  ;;  %v509_v42 = vpop.f32.mrf.mxu3 }
  0xf2   :  { %5517 = vst [vmem:[#allocation2_spill] sm:$0xff] %v3648_v49  ;;  %2618 = vmatmul.msk.f32.gmra.mxu1 %vm196_vm1, %v3320_v52  ;;  %2628 = vmatmul.msk.f32.gmra.mxu2 %vm196_vm1, %v3195_v36 }
  0xf5   :  { %v438_v1 = vpop.f32.mrf.mxu2 }
  0xf6   :  { %v452_v38 = vadd.f32 %v438_v1, %v3480_v7  ;;  %v3657_v50 = vpop.f32.mrf.mxu0  ;;  %2642 = vmatmul.msk.f32.gmra.mxu3 %vm196_vm1, %v3188_v35 }
  0xf7   :  { %v624_v4 = vpop.f32.mrf.mxu1 }
  0xf8   :  { %v3661_v13 = vadd.f32 %v509_v42, %v452_v38 }
  0xf9   :  { %2607 = vmatmul.msk.f32.gmra.mxu0 %vm196_vm1, %v3336_v53  ;;  %v727_v31 = vpop.f32.mrf.mxu3 }
  0xfa   :  { %5518 = vst [vmem:[#allocation3_spill] sm:$0xff] %v3661_v13  ;;  %2619 = vmatmul.msk.f32.gmra.mxu1 %vm196_vm1, %v3343_v54  ;;  %2629 = vmatmul.msk.f32.gmra.mxu2 %vm196_vm1, %v3225_v40 }
  0xfd   :  { %v671_v46 = vpop.f32.mrf.mxu2 }
  0xfe   :  { %v672_v7 = vadd.f32 %v671_v46, %v615_v61  ;;  %v3669_v18 = vpop.f32.mrf.mxu0  ;;  %2643 = vmatmul.msk.f32.gmra.mxu3 %vm196_vm1, %v3218_v39 }
  0xff   :  { %v627_v20 = vpop.f32.mrf.mxu1 }
 0x100   :  { %v3673_v8 = vadd.f32 %v727_v31, %v672_v7 }
 0x101   :  { %2608 = vmatmul.msk.f32.gmra.mxu0 %vm196_vm1, %v3001_v9  ;;  %v730_v57 = vpop.f32.mrf.mxu3 }
 0x102   :  { %2620 = vmatmul.msk.f32.gmra.mxu1 %vm196_vm1, %v3356_v55  ;;  %2630 = vmatmul.msk.f32.gmra.mxu2 %vm196_vm1, %v3261_v45 }
 0x105   :  { %v674_v56 = vpop.f32.mrf.mxu2 }
 0x106   :  { %v675_v61 = vadd.f32 %v674_v56, %v618_v0  ;;  %v3681_v60 = vpop.f32.mrf.mxu0  ;;  %2644 = vmatmul.msk.f32.gmra.mxu3 %vm196_vm1, %v3254_v44 }
 0x107   :  { %v630_v5 = vpop.f32.mrf.mxu1 }
 0x108   :  { %v3685_v63 = vadd.f32 %v730_v57, %v675_v61 }
 0x109   :  { %2609 = vmatmul.msk.f32.gmra.mxu0 %vm196_vm1, %v3083_v21  ;;  %v733_v16 = vpop.f32.mrf.mxu3 }
 0x10a   :  { %2621 = vmatmul.msk.f32.gmra.mxu1 %vm196_vm1, %v3022_v12  ;;  %2631 = vmatmul.msk.f32.gmra.mxu2 %vm196_vm1, %v3285_v48 }
 0x10d   :  { %v677_v37 = vpop.f32.mrf.mxu2 }
 0x10e   :  { %v678_v0 = vadd.f32 %v677_v37, %v621_v29  ;;  %v3693_v32 = vpop.f32.mrf.mxu0  ;;  %2645 = vmatmul.msk.f32.gmra.mxu3 %vm196_vm1, %v3278_v47 }
 0x10f   :  { %v633_v15 = vpop.f32.mrf.mxu1 }
 0x110   :  { %v3697_v42 = vadd.f32 %v733_v16, %v678_v0 }
 0x111   :  { %2610 = vmatmul.msk.f32.gmra.mxu0 %vm196_vm1, %v3397_v58  ;;  %v736_v1 = vpop.f32.mrf.mxu3 }
 0x112   :  { %2622 = vmatmul.msk.f32.gmra.mxu1 %vm196_vm1, %v3404_v59  ;;  %2632 = vmatmul.msk.f32.gmra.mxu2 %vm196_vm1, %v3320_v52 }
 0x115   :  { %v680_v38 = vpop.f32.mrf.mxu2 }
 0x116   :  { %v681_v29 = vadd.f32 %v680_v38, %v624_v4  ;;  %v3705_v31 = vpop.f32.mrf.mxu0  ;;  %2646 = vmatmul.msk.f32.gmra.mxu3 %vm196_vm1, %v3312_v51 }
 0x117   :  { %v636_v46 = vpop.f32.mrf.mxu1 }
 0x118   :  { %v3709_v7 = vadd.f32 %v736_v1, %v681_v29 }
 0x119   :  { %2651 = vmatmul.msk.f32.vlgmr.msrb.gmra.mxu0 %vm196_vm1, %v3071_v19  ;;  %v739_v57 = vpop.f32.mrf.mxu3 }
 0x11a   :  { %2623 = vmatmul.msk.f32.gmra.mxu1 %vm196_vm1, %v3535_v23  ;;  %2633 = vmatmul.msk.f32.gmra.mxu2 %vm196_vm1, %v3343_v54 }
 0x11d   :  { %v683_v56 = vpop.f32.mrf.mxu2 }
 0x11e   :  { %v684_v4 = vadd.f32 %v683_v56, %v627_v20  ;;  %v3717_v61 = vpop.f32.mrf.mxu0  ;;  %2647 = vmatmul.msk.f32.gmra.mxu3 %vm196_vm1, %v3336_v53 }
 0x11f   :  { %5519 = vst [vmem:[#allocation4_spill] sm:$0xff] %v3717_v61  ;;  %v639_v16 = vpop.f32.mrf.mxu1 }
 0x120   :  { %v3721_v37 = vadd.f32 %v739_v57, %v684_v4 }
 0x121   :  { %2652 = vmatmul.msk.f32.gmra.mxu0 %vm196_vm1, %v3132_v28  ;;  %v742_v19 = vpop.f32.mrf.mxu3 }
 0x122   :  { %2634 = vmatmul.msk.f32.gmra.mxu2 %vm196_vm1, %v3356_v55  ;;  %2664 = vmatmul.msk.f32.vlgmr.msrb.gmra.mxu1 %vm196_vm1, %v3144_v30 }
 0x125   :  { %v686_v0 = vpop.f32.mrf.mxu2 }
 0x126   :  { %v687_v20 = vadd.f32 %v686_v0, %v630_v5  ;;  %v3729_v1 = vpop.f32.mrf.mxu0  ;;  %2648 = vmatmul.msk.f32.gmra.mxu3 %vm196_vm1, %v3001_v9 }
 0x127   :  { %5520 = vst [vmem:[#allocation5_spill] sm:$0xff] %v3729_v1  ;;  %v642_v38 = vpop.f32.mrf.mxu1 }
 0x128   :  { %v3733_v29 = vadd.f32 %v742_v19, %v687_v20 }
 0x129   :  { %2653 = vmatmul.msk.f32.gmra.mxu0 %vm196_vm1, %v3170_v33  ;;  %v745_v57 = vpop.f32.mrf.mxu3 }
 0x12a   :  { %2635 = vmatmul.msk.f32.gmra.mxu2 %vm196_vm1, %v3022_v12  ;;  %2665 = vmatmul.msk.f32.gmra.mxu1 %vm196_vm1, %v3177_v34 }
 0x12d   :  { %v689_v56 = vpop.f32.mrf.mxu2 }
 0x12e   :  { %v690_v5 = vadd.f32 %v689_v56, %v633_v15  ;;  %v3741_v4 = vpop.f32.mrf.mxu0  ;;  %2649 = vmatmul.msk.f32.gmra.mxu3 %vm196_vm1, %v3083_v21 }
 0x12f   :  { %5521 = vst [vmem:[#allocation6_spill] sm:$0xff] %v3741_v4  ;;  %v645_v0 = vpop.f32.mrf.mxu1 }
 0x130   :  { %v3745_v19 = vadd.f32 %v745_v57, %v690_v5 }
 0x131   :  { %2654 = vmatmul.msk.f32.gmra.mxu0 %vm196_vm1, %v3188_v35  ;;  %v748_v20 = vpop.f32.mrf.mxu3 }
 0x132   :  { %2636 = vmatmul.msk.f32.gmra.mxu2 %vm196_vm1, %v3404_v59  ;;  %2666 = vmatmul.msk.f32.gmra.mxu1 %vm196_vm1, %v3195_v36 }
 0x135   :  { %v692_v13 = vpop.f32.mrf.mxu2 }
 0x136   :  { %v693_v15 = vadd.f32 %v692_v13, %v636_v46  ;;  %v795_v56 = vpop.f32.mrf.mxu0  ;;  %2690 = vmatmul.msk.f32.vlgmr.msra.gmra.mxu3 %vm196_vm1, %v3088_v22 }
 0x137   :  { %v648_v4 = vpop.f32.mrf.mxu1  ;;  %v831_v13 = vadd.f32 %v795_v56, %v3673_v8 }
 0x138   :  { %v3755_v1 = vadd.f32 %v748_v20, %v693_v15  ;;  %v3768_v20 = vadd.f32 %v3597_v43, %v3501_v62 }
 0x139   :  { %2655 = vmatmul.msk.f32.gmra.mxu0 %vm196_vm1, %v3218_v39  ;;  %v751_v57 = vpop.f32.mrf.mxu3 }
 0x13a   :  { %2667 = vmatmul.msk.f32.gmra.mxu1 %vm196_vm1, %v3225_v40  ;;  %2677 = vmatmul.msk.f32.vlgmr.msra.gmra.mxu2 %vm196_vm1, %v3132_v28 }
 0x13d   :  { %v695_v5 = vpop.f32.mrf.mxu2 }
 0x13e   :  { %v696_v46 = vadd.f32 %v695_v5, %v639_v16  ;;  %v798_v49 = vpop.f32.mrf.mxu0  ;;  %2691 = vmatmul.msk.f32.gmra.mxu3 %vm196_vm1, %v3144_v30 }
 0x13f   :  { %v863_v22 = vpop.f32.mrf.mxu1  ;;  %v832_v62 = vadd.f32 %v798_v49, %v3685_v63 }
 0x140   :  { %v3770_v15 = vadd.f32 %v751_v57, %v696_v46  ;;  %v3772_v61 = vadd.f32 %v863_v22, %v831_v13  ;;  %v3787_v57 = vadd.f32 %v3617_v2, %v3523_v3  ;;  %v3806_v46 = vadd.f32 %v3631_v24, %v3539_v25 }
 0x141   :  { %2656 = vmatmul.msk.f32.gmra.mxu0 %vm196_vm1, %v3254_v44  ;;  %v754_v28 = vpop.f32.mrf.mxu3 }
 0x142   :  { %2668 = vmatmul.msk.f32.gmra.mxu1 %vm196_vm1, %v3261_v45  ;;  %2678 = vmatmul.msk.f32.gmra.mxu2 %vm196_vm1, %v3170_v33 }
 0x145   :  { %v698_v30 = vpop.f32.mrf.mxu2 }
 0x146   :  { %v699_v43 = vadd.f32 %v698_v30, %v642_v38  ;;  %v801_v16 = vpop.f32.mrf.mxu0  ;;  %2692 = vmatmul.msk.f32.gmra.mxu3 %vm196_vm1, %v3177_v34 }
 0x147   :  { %v866_v56 = vpop.f32.mrf.mxu1  ;;  %v833_v3 = vadd.f32 %v801_v16, %v3697_v42 }
 0x148   :  { %v3789_v5 = vadd.f32 %v754_v28, %v699_v43  ;;  %v3791_v13 = vadd.f32 %v866_v56, %v832_v62  ;;  %v3825_v62 = vadd.f32 %v3644_v27, %v3549_v17 }
 0x149   :  { %2657 = vmatmul.msk.f32.gmra.mxu0 %vm196_vm1, %v3278_v47  ;;  %v757_v33 = vpop.f32.mrf.mxu3 }
 0x14a   :  { %2669 = vmatmul.msk.f32.gmra.mxu1 %vm196_vm1, %v3285_v48  ;;  %2679 = vmatmul.msk.f32.gmra.mxu2 %vm196_vm1, %v3188_v35 }
 0x14d   :  { %v701_v34 = vpop.f32.mrf.mxu2 }
 0x14e   :  { %v702_v2 = vadd.f32 %v701_v34, %v645_v0  ;;  %v804_v63 = vpop.f32.mrf.mxu0  ;;  %2693 = vmatmul.msk.f32.gmra.mxu3 %vm196_vm1, %v3195_v36 }
 0x14f   :  { %v869_v38 = vpop.f32.mrf.mxu1  ;;  %v834_v25 = vadd.f32 %v804_v63, %v3709_v7 }
 0x150   :  { %v3808_v22 = vadd.f32 %v757_v33, %v702_v2  ;;  %v3810_v28 = vadd.f32 %v869_v38, %v833_v3  ;;  %v3846_v33 = vadd.f32 %v3657_v50, %v3563_v6  ;;  %v3865_v2 = vadd.f32 %v3669_v18, %v3578_v41 }
 0x151   :  { %2658 = vmatmul.msk.f32.gmra.mxu0 %vm196_vm1, %v3312_v51  ;;  %v760_v35 = vpop.f32.mrf.mxu3 }
 0x152   :  { %2670 = vmatmul.msk.f32.gmra.mxu1 %vm196_vm1, %v3320_v52  ;;  %2680 = vmatmul.msk.f32.gmra.mxu2 %vm196_vm1, %v3218_v39 }
 0x155   :  { %v704_v36 = vpop.f32.mrf.mxu2 }
 0x156   :  { %v705_v24 = vadd.f32 %v704_v36, %v648_v4  ;;  %v807_v0 = vpop.f32.mrf.mxu0  ;;  %2694 = vmatmul.msk.f32.gmra.mxu3 %vm196_vm1, %v3225_v40 }
 0x157   :  { %v872_v30 = vpop.f32.mrf.mxu1  ;;  %v835_v17 = vadd.f32 %v807_v0, %v3721_v37 }
 0x158   :  { %v3827_v43 = vadd.f32 %v760_v35, %v705_v24  ;;  %v3829_v16 = vadd.f32 %v872_v30, %v834_v25  ;;  %v3884_v35 = vadd.f32 %v3681_v60, %v3589_v11  ;;  %v3903_v24 = vadd.f32 %v3693_v32, %v3603_v14 }
 0x159   :  { %2659 = vmatmul.msk.f32.gmra.mxu0 %vm196_vm1, %v3336_v53  ;;  %v993_v39 = vpop.f32.mrf.mxu3 }
 0x15a   :  { %2671 = vmatmul.msk.f32.gmra.mxu1 %vm196_vm1, %v3343_v54  ;;  %2681 = vmatmul.msk.f32.gmra.mxu2 %vm196_vm1, %v3254_v44  ;;  %5522 = vst [vmem:[#allocation7_spill] sm:$0xff] %v3884_v35 }
 0x15b   :  { %5524 = vst [vmem:[#allocation9_spill] sm:$0xff] %v3903_v24  ;;  %v4270_v24 = vld [vmem:[%s5438_s3 + $0xb8] sm:$0xff] }
 0x15c   :  { %5566 = vst [vmem:[#allocation41_spill] sm:$0xff] %v4270_v24 }
 0x15d   :  { %v940_v40 = vpop.f32.mrf.mxu2 }
 0x15e   :  { %v3840_v27 = vadd.f32 %v993_v39, %v940_v40  ;;  %v810_v4 = vpop.f32.mrf.mxu0  ;;  %2695 = vmatmul.msk.f32.gmra.mxu3 %vm196_vm1, %v3261_v45 }
 0x15f   :  { %v875_v56 = vpop.f32.mrf.mxu1  ;;  %v836_v3 = vadd.f32 %v810_v4, %v3733_v29  ;;  %v3929_v4 = vadd.f32 %v3705_v31, %v3622_v10 }
 0x160   :  { %v3848_v34 = vadd.f32 %v875_v56, %v835_v17 }
 0x161   :  { %2660 = vmatmul.msk.f32.gmra.mxu0 %vm196_vm1, %v3001_v9  ;;  %v996_v44 = vpop.f32.mrf.mxu3  ;;  %5526 = vst [vmem:[#allocation11_spill] sm:$0xff] %v3929_v4  ;;  %v4189_v4 = vld [vmem:[%s5438_s3 + $0xc8] sm:$0xff] }
 0x162   :  { %2672 = vmatmul.msk.f32.gmra.mxu1 %vm196_vm1, %v3356_v55  ;;  %2682 = vmatmul.msk.f32.gmra.mxu2 %vm196_vm1, %v3278_v47  ;;  %5552 = vst [vmem:[#allocation27_spill] sm:$0xff] %v4189_v4 }
 0x165   :  { %v943_v45 = vpop.f32.mrf.mxu2 }
 0x166   :  { %v3859_v6 = vadd.f32 %v996_v44, %v943_v45  ;;  %v813_v50 = vpop.f32.mrf.mxu0  ;;  %2696 = vmatmul.msk.f32.gmra.mxu3 %vm196_vm1, %v3285_v48  ;;  %v2856_v44 = vld [vmem:[%s5436_s0 + $0x78] sm:$0xff]  ;;  %v2869_v45 = vld [vmem:[%s5436_s0 + $0xb0] sm:$0xff] }
 0x167   :  { %v878_v9 = vpop.f32.mrf.mxu1  ;;  %v837_v38 = vadd.f32 %v813_v50, %v3745_v19 }
 0x168   :  { %v3867_v63 = vadd.f32 %v878_v9, %v836_v3  ;;  %v3953_v9 = vld [vmem:[%s5436_s0 + $0x58] sm:$0xff] }
 0x169   :  { %2661 = vmatmul.msk.f32.gmra.mxu0 %vm196_vm1, %v3083_v21  ;;  %v999_v47 = vpop.f32.mrf.mxu3 }
 0x16a   :  { %2673 = vmatmul.msk.f32.gmra.mxu1 %vm196_vm1, %v3022_v12  ;;  %2683 = vmatmul.msk.f32.gmra.mxu2 %vm196_vm1, %v3312_v51  ;;  %v2871_v51 = vld [vmem:[%s5436_s0 + $0xb8] sm:$0xff] }
 0x16d   :  { %v946_v48 = vpop.f32.mrf.mxu2 }
 0x16e   :  { %v3878_v41 = vadd.f32 %v999_v47, %v946_v48  ;;  %v816_v18 = vpop.f32.mrf.mxu0  ;;  %2697 = vmatmul.msk.f32.gmra.mxu3 %vm196_vm1, %v3320_v52  ;;  %v5528_v48 = vld [vmem:[#allocation4_spill] sm:$0xff] }
 0x16f   :  { %v881_v21 = vpop.f32.mrf.mxu1  ;;  %v838_v19 = vadd.f32 %v816_v18, %v3755_v1 }
 0x170   :  { %v3886_v36 = vadd.f32 %v881_v21, %v837_v38  ;;  %v3959_v38 = vadd.f32 %v5528_v48, %v3635_v26 }
 0x171   :  { %2662 = vmatmul.msk.f32.gmra.mxu0 %vm196_vm1, %v3397_v58  ;;  %v1002_v12 = vpop.f32.mrf.mxu3 }
 0x172   :  { %5523 = vst [vmem:[#allocation8_spill] sm:$0xff] %v3886_v36  ;;  %2674 = vmatmul.msk.f32.gmra.mxu1 %vm196_vm1, %v3404_v59  ;;  %2684 = vmatmul.msk.f32.gmra.mxu2 %vm196_vm1, %v3336_v53  ;;  %v2854_v53 = vld [vmem:[%s5436_s0 + $0x70] sm:$0xff]  ;;  %v4417_v36 = vld [vmem:[%s5438_s3 + $0xe8] sm:$0xff] }
 0x173   :  { %5529 = vst [vmem:[#allocation4_spill] sm:$0xff] %v3959_v38  ;;  %v2875_v38 = vld [vmem:[%s5436_s0 + $0xd0] sm:$0xff] }
 0x174   :  { %5595 = vst [vmem:[#allocation70_spill] sm:$0xff] %v4417_v36 }
 0x175   :  { %v949_v52 = vpop.f32.mrf.mxu2 }
 0x176   :  { %v3897_v11 = vadd.f32 %v1002_v12, %v949_v52  ;;  %v819_v60 = vpop.f32.mrf.mxu0  ;;  %2698 = vmatmul.msk.f32.gmra.mxu3 %vm196_vm1, %v3343_v54  ;;  %v3918_v54 = vld [vmem:[%s5436_s0 + $0xc0] sm:$0xff] }
 0x177   :  { %v884_v25 = vpop.f32.mrf.mxu1  ;;  %v839_v32 = vadd.f32 %v819_v60, %v3770_v15 }
 0x178   :  { %v3905_v0 = vadd.f32 %v884_v25, %v838_v19 }
 0x179   :  { %2703 = vmatmul.msk.f32.vlgmr.msra.gmra.mxu0 %vm196_vm1, %v2854_v53  ;;  %v1005_v1 = vpop.f32.mrf.mxu3  ;;  %v3980_v53 = vld [vmem:[%s5436_s0 + $0xd8] sm:$0xff] }
 0x17a   :  { %5525 = vst [vmem:[#allocation10_spill] sm:$0xff] %v3905_v0  ;;  %2675 = vmatmul.msk.f32.gmra.mxu1 %vm196_vm1, %v3535_v23  ;;  %2685 = vmatmul.msk.f32.gmra.mxu2 %vm196_vm1, %v3918_v54 }
 0x17d   :  { %v952_v14 = vpop.f32.mrf.mxu2 }
 0x17e   :  { %v3923_v39 = vadd.f32 %v1005_v1, %v952_v14  ;;  %v822_v40 = vpop.f32.mrf.mxu0  ;;  %2699 = vmatmul.msk.f32.gmra.mxu3 %vm196_vm1, %v3356_v55  ;;  %v3942_v55 = vld [vmem:[%s5436_s0 + $0xc8] sm:$0xff]  ;;  %v5531_v1 = vld [vmem:[#allocation2_spill] sm:$0xff]  ;;  %v5532_v14 = vld [vmem:[#allocation5_spill] sm:$0xff] }
 0x17f   :  { %v887_v17 = vpop.f32.mrf.mxu1  ;;  %v840_v31 = vadd.f32 %v822_v40, %v3789_v5  ;;  %v2859_v5 = vld [vmem:[%s5436_s0 + $0x80] sm:$0xff] }
 0x180   :  { %v3931_v56 = vadd.f32 %v887_v17, %v839_v32 }
 0x181   :  { %2704 = vmatmul.msk.f32.gmra.mxu0 %vm196_vm1, %v2856_v44  ;;  %v1008_v15 = vpop.f32.mrf.mxu3 }
 0x182   :  { %5527 = vst [vmem:[#allocation12_spill] sm:$0xff] %v3931_v56  ;;  %2686 = vmatmul.msk.f32.gmra.mxu2 %vm196_vm1, %v3942_v55  ;;  %2716 = vmatmul.msk.f32.vlgmr.msra.gmra.mxu1 %vm196_vm1, %v2856_v44 }
 0x185   :  { %v955_v10 = vpop.f32.mrf.mxu2 }
 0x186   :  { %v3948_v3 = vadd.f32 %v1008_v15, %v955_v10  ;;  %v825_v50 = vpop.f32.mrf.mxu0  ;;  %2700 = vmatmul.msk.f32.gmra.mxu3 %vm196_vm1, %v3953_v9 }
 0x187   :  { %v890_v47 = vpop.f32.mrf.mxu1  ;;  %v841_v26 = vadd.f32 %v825_v50, %v3808_v22  ;;  %v2860_v22 = vld [vmem:[%s5436_s0 + $0x88] sm:$0xff] }
 0x188   :  { %v3961_v18 = vadd.f32 %v890_v47, %v840_v31  ;;  %v5536_v50 = vld [vmem:[#allocation3_spill] sm:$0xff]  ;;  %v5537_v47 = vld [vmem:[#allocation6_spill] sm:$0xff] }
 0x189   :  { %2705 = vmatmul.msk.f32.gmra.mxu0 %vm196_vm1, %v2859_v5  ;;  %v1011_v21 = vpop.f32.mrf.mxu3  ;;  %v4005_v48 = vadd.f32 %v5537_v47, %v5536_v50 }
 0x18a   :  { %5530 = vst [vmem:[#allocation13_spill] sm:$0xff] %v3961_v18  ;;  %2687 = vmatmul.msk.f32.gmra.mxu2 %vm196_vm1, %v3397_v58  ;;  %2717 = vmatmul.msk.f32.gmra.mxu1 %vm196_vm1, %v2859_v5  ;;  %v3984_v58 = vadd.f32 %v5532_v14, %v5531_v1  ;;  %v4168_v18 = vld [vmem:[%s5438_s3 + $0x40] sm:$0xff] }
 0x18b   :  { %5538 = vst [vmem:[#allocation3_spill] sm:$0xff] %v4005_v48  ;;  %1641 = vmatpush.msrb.mxu1 %v4168_v18 }
 0x18c   :  { %5533 = vst [vmem:[#allocation2_spill] sm:$0xff] %v3984_v58  ;;  %v4152_v58 = vld [vmem:[%s5438_s3 + $0x88] sm:$0xff] }
 0x18d   :  { %v958_v52 = vpop.f32.mrf.mxu2  ;;  %5547 = vst [vmem:[#allocation22_spill] sm:$0xff] %v4152_v58  ;;  %1600 = vmatpush.msrb.mxu0 %v4152_v58  ;;  %v4396_v58 = vld [vmem:[%s5438_s3 + $0x98] sm:$0xff] }
 0x18e   :  { %v3973_v19 = vadd.f32 %v1011_v21, %v958_v52  ;;  %v828_v60 = vpop.f32.mrf.mxu0  ;;  %2701 = vmatmul.msk.f32.gmra.mxu3 %vm196_vm1, %v3404_v59  ;;  %v2861_v52 = vld [vmem:[%s5436_s0 + $0x90] sm:$0xff]  ;;  %5550 = vst [vmem:[#allocation25_spill] sm:$0xff] %v4168_v18 }
 0x18f   :  { %v893_v25 = vpop.f32.mrf.mxu1  ;;  %v842_v44 = vadd.f32 %v828_v60, %v3827_v43  ;;  %5593 = vst [vmem:[#allocation68_spill] sm:$0xff] %v4396_v58 }
 0x190   :  { %v3986_v32 = vadd.f32 %v893_v25, %v841_v26  ;;  %v2867_v26 = vld [vmem:[%s5436_s0 + $0xa8] sm:$0xff] }
 0x191   :  { %2706 = vmatmul.msk.f32.gmra.mxu0 %vm196_vm1, %v2860_v22  ;;  %v1014_v40 = vpop.f32.mrf.mxu3 }
 0x192   :  { %5534 = vst [vmem:[#allocation5_spill] sm:$0xff] %v3986_v32  ;;  %2688 = vmatmul.msk.f32.gmra.mxu2 %vm196_vm1, %v3980_v53  ;;  %2718 = vmatmul.msk.f32.gmra.mxu1 %vm196_vm1, %v2860_v22  ;;  %v4147_v32 = vld [vmem:[%s5438_s3 + $0xd0] sm:$0xff] }
 0x193   :  { %5546 = vst [vmem:[#allocation21_spill] sm:$0xff] %v4147_v32  ;;  %1673 = vmatpush.msra.mxu2 %v4147_v32 }
 0x195   :  { %v961_v17 = vpop.f32.mrf.mxu2  ;;  %1674 = vmatpush.msra.mxu2 %v4189_v4 }
 0x196   :  { %v3998_v15 = vadd.f32 %v1014_v40, %v961_v17  ;;  %v4000_v10 = vpop.f32.mrf.mxu0  ;;  %2742 = vmatmul.msk.f32.vlgmr.msrb.gmra.mxu3 %vm196_vm1, %v2859_v5  ;;  %v2862_v5 = vld [vmem:[%s5436_s0 + $0x10] sm:$0xff]  ;;  %v2863_v40 = vld [vmem:[%s5436_s0 + $0x98] sm:$0xff] }
 0x197   :  { %v896_v31 = vpop.f32.mrf.mxu1 }
 0x198   :  { %5535 = vst [vmem:[#allocation14_spill] sm:$0xff] %v3998_v15  ;;  %v4007_v21 = vadd.f32 %v896_v31, %v842_v44  ;;  %v2864_v44 = vld [vmem:[%s5436_s0 + $0x18] sm:$0xff] }
 0x199   :  { %2707 = vmatmul.msk.f32.gmra.mxu0 %vm196_vm1, %v2861_v52  ;;  %v1017_v43 = vpop.f32.mrf.mxu3 }
 0x19a   :  { %5539 = vst [vmem:[#allocation6_spill] sm:$0xff] %v4007_v21  ;;  %2719 = vmatmul.msk.f32.gmra.mxu1 %vm196_vm1, %v2861_v52  ;;  %2729 = vmatmul.msk.f32.vlgmr.msrb.gmra.mxu2 %vm196_vm1, %v2862_v5 }
 0x19d   :  { %v964_v60 = vpop.f32.mrf.mxu2 }
 0x19e   :  { %v4020_v25 = vadd.f32 %v1017_v43, %v964_v60  ;;  %v4022_v1 = vpop.f32.mrf.mxu0  ;;  %2743 = vmatmul.msk.f32.gmra.mxu3 %vm196_vm1, %v2860_v22  ;;  %v2865_v43 = vld [vmem:[%s5436_s0 + $0xa0] sm:$0xff] }
 0x19f   :  { %v4025_v14 = vpop.f32.mrf.mxu1  ;;  %v2866_v60 = vld [vmem:[%s5436_s0 + $0x20] sm:$0xff] }
 0x1a0   :  { %5540 = vst [vmem:[#allocation15_spill] sm:$0xff] %v4020_v25 }
 0x1a1   :  { %2708 = vmatmul.msk.f32.gmra.mxu0 %vm196_vm1, %v2863_v40  ;;  %v1020_v17 = vpop.f32.mrf.mxu3 }
 0x1a2   :  { %2720 = vmatmul.msk.f32.gmra.mxu1 %vm196_vm1, %v2863_v40  ;;  %2730 = vmatmul.msk.f32.gmra.mxu2 %vm196_vm1, %v2864_v44 }
 0x1a5   :  { %v967_v31 = vpop.f32.mrf.mxu2 }
 0x1a6   :  { %v4036_v50 = vadd.f32 %v1020_v17, %v967_v31  ;;  %v4038_v22 = vpop.f32.mrf.mxu0  ;;  %2744 = vmatmul.msk.f32.gmra.mxu3 %vm196_vm1, %v2861_v52 }
 0x1a7   :  { %v4041_v47 = vpop.f32.mrf.mxu1 }
 0x1a8   :  { %5541 = vst [vmem:[#allocation16_spill] sm:$0xff] %v4036_v50 }
 0x1a9   :  { %2709 = vmatmul.msk.f32.gmra.mxu0 %vm196_vm1, %v2865_v43  ;;  %v1023_v5 = vpop.f32.mrf.mxu3 }
 0x1aa   :  { %2721 = vmatmul.msk.f32.gmra.mxu1 %vm196_vm1, %v2865_v43  ;;  %2731 = vmatmul.msk.f32.gmra.mxu2 %vm196_vm1, %v2866_v60 }
 0x1ad   :  { %v970_v17 = vpop.f32.mrf.mxu2 }
 0x1ae   :  { %v4052_v44 = vadd.f32 %v1023_v5, %v970_v17  ;;  %v4054_v52 = vpop.f32.mrf.mxu0  ;;  %2745 = vmatmul.msk.f32.gmra.mxu3 %vm196_vm1, %v2863_v40  ;;  %v2868_v5 = vld [vmem:[%s5436_s0 + $0x28] sm:$0xff] }
 0x1af   :  { %v4057_v31 = vpop.f32.mrf.mxu1 }
 0x1b0   :  { %5542 = vst [vmem:[#allocation17_spill] sm:$0xff] %v4052_v44  ;;  %v2876_v44 = vld [vmem:[%s5436_s0 + $0x50] sm:$0xff] }
 0x1b1   :  { %2710 = vmatmul.msk.f32.gmra.mxu0 %vm196_vm1, %v2867_v26  ;;  %v1026_v59 = vpop.f32.mrf.mxu3 }
 0x1b2   :  { %2722 = vmatmul.msk.f32.gmra.mxu1 %vm196_vm1, %v2867_v26  ;;  %2732 = vmatmul.msk.f32.gmra.mxu2 %vm196_vm1, %v2868_v5 }
 0x1b5   :  { %v973_v60 = vpop.f32.mrf.mxu2 }
 0x1b6   :  { %v4068_v17 = vadd.f32 %v1026_v59, %v973_v60  ;;  %v4070_v40 = vpop.f32.mrf.mxu0  ;;  %2746 = vmatmul.msk.f32.gmra.mxu3 %vm196_vm1, %v2865_v43  ;;  %v2870_v59 = vld [vmem:[%s5436_s0 + $0x30] sm:$0xff] }
 0x1b7   :  { %v4073_v12 = vpop.f32.mrf.mxu1 }
 0x1b8   :  { %5543 = vst [vmem:[#allocation18_spill] sm:$0xff] %v4068_v17 }
 0x1b9   :  { %2711 = vmatmul.msk.f32.gmra.mxu0 %vm196_vm1, %v2869_v45  ;;  %v4079_v30 = vpop.f32.mrf.mxu3 }
 0x1ba   :  { %2723 = vmatmul.msk.f32.gmra.mxu1 %vm196_vm1, %v2869_v45  ;;  %2733 = vmatmul.msk.f32.gmra.mxu2 %vm196_vm1, %v2870_v59  ;;  %v2872_v59 = vld [vmem:[%s5436_s0 + $0x38] sm:$0xff] }
 0x1bd   :  { %v4086_v5 = vpop.f32.mrf.mxu2 }
 0x1be   :  { %v4088_v43 = vpop.f32.mrf.mxu0  ;;  %2747 = vmatmul.msk.f32.gmra.mxu3 %vm196_vm1, %v2867_v26 }
 0x1bf   :  { %v4091_v60 = vpop.f32.mrf.mxu1 }
 0x1c1   :  { %2712 = vmatmul.msk.f32.gmra.mxu0 %vm196_vm1, %v2871_v51  ;;  %v4097_v29 = vpop.f32.mrf.mxu3 }
 0x1c2   :  { %2724 = vmatmul.msk.f32.gmra.mxu1 %vm196_vm1, %v2871_v51  ;;  %2734 = vmatmul.msk.f32.gmra.mxu2 %vm196_vm1, %v2872_v59  ;;  %v2873_v59 = vld [vmem:[%s5436_s0 + $0x40] sm:$0xff] }
 0x1c5   :  { %v4104_v37 = vpop.f32.mrf.mxu2 }
 0x1c6   :  { %v4106_v26 = vpop.f32.mrf.mxu0  ;;  %2748 = vmatmul.msk.f32.gmra.mxu3 %vm196_vm1, %v2869_v45 }
 0x1c7   :  { %v4109_v7 = vpop.f32.mrf.mxu1 }
 0x1c9   :  { %2713 = vmatmul.msk.f32.gmra.mxu0 %vm196_vm1, %v3918_v54  ;;  %v4113_v42 = vpop.f32.mrf.mxu3 }
 0x1ca   :  { %2725 = vmatmul.msk.f32.gmra.mxu1 %vm196_vm1, %v3918_v54  ;;  %2735 = vmatmul.msk.f32.gmra.mxu2 %vm196_vm1, %v2873_v59  ;;  %v2874_v59 = vld [vmem:[%s5436_s0 + $0x48] sm:$0xff] }
 0x1cd   :  { %v4121_v49 = vpop.f32.mrf.mxu2 }
 0x1ce   :  { %2749 = vmatmul.msk.f32.gmra.mxu3 %vm196_vm1, %v2871_v51  ;;  %v4124_v45 = vpop.f32.mrf.mxu0 }
 0x1cf   :  { %5544 = vst [vmem:[#allocation19_spill] sm:$0xff] %v4124_v45  ;;  %v4126_v8 = vpop.f32.mrf.mxu1 }
 0x1d1   :  { %2714 = vmatmul.msk.f32.gmra.mxu0 %vm196_vm1, %v3942_v55  ;;  %v4130_v21 = vpop.f32.mrf.mxu3 }
 0x1d2   :  { %2726 = vmatmul.msk.f32.gmra.mxu1 %vm196_vm1, %v3942_v55  ;;  %2736 = vmatmul.msk.f32.gmra.mxu2 %vm196_vm1, %v2874_v59  ;;  %v4157_v59 = vld [vmem:[%s5438_s3 + $0x118] sm:$0xff] }
 0x1d3   :  { %5548 = vst [vmem:[#allocation23_spill] sm:$0xff] %v4157_v59  ;;  %1709 = vmatpush.msra.mxu3 %v4157_v59 }
 0x1d5   :  { %v4138_v48 = vpop.f32.mrf.mxu2 }
 0x1d6   :  { %2750 = vmatmul.msk.f32.gmra.mxu3 %vm196_vm1, %v3918_v54  ;;  %v4159_v17 = vpop.f32.mrf.mxu0 }
 0x1d7   :  { %v4142_v51 = vpop.f32.mrf.mxu1  ;;  %5549 = vst [vmem:[#allocation24_spill] sm:$0xff] %v4159_v17 }
 0x1d8   :  { %5545 = vst [vmem:[#allocation20_spill] sm:$0xff] %v4142_v51 }
 0x1d9   :  { %v4161_v54 = vpop.f32.mrf.mxu3 }
 0x1da   :  { %2727 = vmatmul.msk.f32.gmra.mxu1 %vm196_vm1, %v2875_v38  ;;  %2737 = vmatmul.msk.f32.gmra.mxu2 %vm196_vm1, %v2876_v44 }
 0x1dd   :  { %v4180_v32 = vpop.f32.mrf.mxu2 }
 0x1de   :  { %2751 = vmatmul.msk.f32.gmra.mxu3 %vm196_vm1, %v3942_v55  ;;  %v4196_v44 = vpop.f32.mrf.mxu0  ;;  %v4204_v55 = vld [vmem:[%s5438_s3 + $0x80] sm:$0xff] }
 0x1df   :  { %v4184_v56 = vpop.f32.mrf.mxu1  ;;  %5553 = vst [vmem:[#allocation28_spill] sm:$0xff] %v4196_v44  ;;  %1601 = vmatpush.msrb.mxu0 %v4204_v55  ;;  %v2877_v44 = vld [vmem:[%s5436_s0 + $0x60] sm:$0xff] }
 0x1e0   :  { %5551 = vst [vmem:[#allocation26_spill] sm:$0xff] %v4184_v56  ;;  %v4209_v56 = vld [vmem:[%s5438_s3 + $0x110] sm:$0xff] }
 0x1e1   :  { %v4191_v50 = vpop.f32.mrf.mxu3  ;;  %5554 = vst [vmem:[#allocation29_spill] sm:$0xff] %v4204_v55  ;;  %1710 = vmatpush.msra.mxu3 %v4209_v56 }
 0x1e2   :  { %2738 = vmatmul.msk.f32.gmra.mxu2 %vm196_vm1, %v3953_v9  ;;  %5555 = vst [vmem:[#allocation30_spill] sm:$0xff] %v4209_v56  ;;  %v4218_v9 = vld [vmem:[%s5438_s3 + $0x38] sm:$0xff]  ;;  %v4236_v56 = vld [vmem:[%s5438_s3 + $0xc0] sm:$0xff] }
 0x1e3   :  { %5557 = vst [vmem:[#allocation32_spill] sm:$0xff] %v4218_v9  ;;  %1642 = vmatpush.msrb.mxu1 %v4218_v9  ;;  %1675 = vmatpush.msra.mxu2 %v4236_v56 }
 0x1e4   :  { %5559 = vst [vmem:[#allocation34_spill] sm:$0xff] %v4236_v56 }
 0x1e5   :  { %v4198_v59 = vpop.f32.mrf.mxu2  ;;  %1676 = vmatpush.msra.mxu2 %v4270_v24 }
 0x1e6   :  { %2752 = vmatmul.msk.f32.gmra.mxu3 %vm196_vm1, %v2875_v38 }
 0x1e7   :  { %v4211_v4 = vpop.f32.mrf.mxu1 }
 0x1e8   :  { %5556 = vst [vmem:[#allocation31_spill] sm:$0xff] %v4211_v4  ;;  %v4227_v4 = vpop.f32.mrf.mxu0 }
 0x1e9   :  { %v4220_v38 = vpop.f32.mrf.mxu3  ;;  %5558 = vst [vmem:[#allocation33_spill] sm:$0xff] %v4227_v4  ;;  %v4249_v4 = vld [vmem:[%s5438_s3 + $0x108] sm:$0xff] }
 0x1ea   :  { %2739 = vmatmul.msk.f32.gmra.mxu2 %vm196_vm1, %v2877_v44  ;;  %v4244_v44 = vld [vmem:[%s5438_s3 + $0x78] sm:$0xff]  ;;  %5562 = vst [vmem:[#allocation37_spill] sm:$0xff] %v4249_v4  ;;  %1711 = vmatpush.msra.mxu3 %v4249_v4 }
 0x1eb   :  { %5561 = vst [vmem:[#allocation36_spill] sm:$0xff] %v4244_v44  ;;  %1602 = vmatpush.msrb.mxu0 %v4244_v44  ;;  %v4275_v44 = vld [vmem:[%s5438_s3 + $0x70] sm:$0xff] }
 0x1ec   :  { %5567 = vst [vmem:[#allocation42_spill] sm:$0xff] %v4275_v44 }
 0x1ed   :  { %v4229_v18 = vpop.f32.mrf.mxu2  ;;  %1603 = vmatpush.msrb.mxu0 %v4275_v44  ;;  %v4308_v44 = vld [vmem:[%s5438_s3 + $0x18] sm:$0xff] }
 0x1ee   :  { %2753 = vmatmul.msk.f32.gmra.mxu3 %vm196_vm1, %v3980_v53  ;;  %v4254_v53 = vld [vmem:[%s5438_s3 + $0x30] sm:$0xff]  ;;  %5575 = vst [vmem:[#allocation50_spill] sm:$0xff] %v4308_v44 }
 0x1ef   :  { %v4238_v0 = vpop.f32.mrf.mxu1  ;;  %5563 = vst [vmem:[#allocation38_spill] sm:$0xff] %v4254_v53  ;;  %1643 = vmatpush.msrb.mxu1 %v4254_v53 }
 0x1f0   :  { %5560 = vst [vmem:[#allocation35_spill] sm:$0xff] %v4238_v0  ;;  %v4265_v0 = vpop.f32.mrf.mxu0 }
 0x1f1   :  { %v4256_v9 = vpop.f32.mrf.mxu3  ;;  %5565 = vst [vmem:[#allocation40_spill] sm:$0xff] %v4265_v0  ;;  %v4291_v0 = vld [vmem:[%s5438_s3 + $0x28] sm:$0xff] }
 0x1f2   :  { %2740 = vmatmul.msk.f32.gmra.mxu2 %vm196_vm1, %v3535_v23  ;;  %v4280_v23 = vld [vmem:[%s5438_s3 + $0x100] sm:$0xff]  ;;  %5571 = vst [vmem:[#allocation46_spill] sm:$0xff] %v4291_v0  ;;  %1644 = vmatpush.msrb.mxu1 %v4291_v0  ;;  %v4314_v0 = vld [vmem:[%s5438_s3 + $0x10] sm:$0xff] }
 0x1f3   :  { %5568 = vst [vmem:[#allocation43_spill] sm:$0xff] %v4280_v23  ;;  %1712 = vmatpush.msra.mxu3 %v4280_v23 }
 0x1f4   :  { %5576 = vst [vmem:[#allocation51_spill] sm:$0xff] %v4314_v0 }
 0x1f5   :  { %v4263_v56 = vpop.f32.mrf.mxu2 }
 0x1f6   :  { %5564 = vst [vmem:[#allocation39_spill] sm:$0xff] %v4263_v56 }
 0x1f7   :  { %v4282_v4 = vpop.f32.mrf.mxu1 }
 0x1f8   :  { %5569 = vst [vmem:[#allocation44_spill] sm:$0xff] %v4282_v4  ;;  %v4300_v4 = vld [vmem:[%s5438_s3 + $0x20] sm:$0xff]  ;;  %v1297_v25 = vpop.f32.mrf.mxu0 }
 0x1f9   :  { %v4284_v53 = vpop.f32.mrf.mxu3  ;;  %5573 = vst [vmem:[#allocation48_spill] sm:$0xff] %v4300_v4  ;;  %1645 = vmatpush.msrb.mxu1 %v4300_v4  ;;  %v4322_v4 = vld [vmem:[%s5438_s3 + $0x8] sm:$0xff] }
 0x1fa   :  { %5570 = vst [vmem:[#allocation45_spill] sm:$0xff] %v4284_v53  ;;  %v4354_v53 = vld [vmem:[%s5438_s3 + $0x60] sm:$0xff] }
 0x1fb   :  { %1646 = vmatpush.msrb.mxu1 %v4308_v44  ;;  %5578 = vst [vmem:[#allocation53_spill] sm:$0xff] %v4322_v4  ;;  %v4328_v44 = vld [vmem:[%s5438_s3 + $0xb0] sm:$0xff] }
 0x1fc   :  { %5579 = vst [vmem:[#allocation54_spill] sm:$0xff] %v4328_v44  ;;  %1677 = vmatpush.msra.mxu2 %v4328_v44  ;;  %v4360_v44 = vld [vmem:[%s5438_s3 + $0x58] sm:$0xff] }
 0x1fd   :  { %v4295_v17 = vpop.f32.mrf.mxu2  ;;  %1647 = vmatpush.msrb.mxu1 %v4314_v0  ;;  %v4338_v0 = vld [vmem:[%s5438_s3 + $0xf8] sm:$0xff]  ;;  %5584 = vst [vmem:[#allocation59_spill] sm:$0xff] %v4354_v53 }
 0x1fe   :  { %5572 = vst [vmem:[#allocation47_spill] sm:$0xff] %v4295_v17  ;;  %1713 = vmatpush.msra.mxu3 %v4338_v0 }
 0x1ff   :  { %v1350_v23 = vpop.f32.mrf.mxu1  ;;  %1648 = vmatpush.msrb.mxu1 %v4322_v4  ;;  %5581 = vst [vmem:[#allocation56_spill] sm:$0xff] %v4338_v0  ;;  %v4347_v4 = vld [vmem:[%s5438_s3] sm:$0xff]  ;;  %v4368_v0 = vld [vmem:[%s5438_s3 + $0x50] sm:$0xff] }
 0x200   :  { %5583 = vst [vmem:[#allocation58_spill] sm:$0xff] %v4347_v4  ;;  %v1300_v55 = vpop.f32.mrf.mxu0 }
 0x201   :  { %v4302_v24 = vpop.f32.mrf.mxu3  ;;  %1649 = vmatpush.msrb.mxu1 %v4347_v4  ;;  %5585 = vst [vmem:[#allocation60_spill] sm:$0xff] %v4360_v44  ;;  %v4374_v4 = vld [vmem:[%s5438_s3 + $0xa8] sm:$0xff] }
 0x202   :  { %5574 = vst [vmem:[#allocation49_spill] sm:$0xff] %v4302_v24  ;;  %v4333_v24 = vld [vmem:[%s5438_s3 + $0x68] sm:$0xff]  ;;  %1678 = vmatpush.msra.mxu2 %v4374_v4 }
 0x203   :  { %5580 = vst [vmem:[#allocation55_spill] sm:$0xff] %v4333_v24  ;;  %1604 = vmatpush.msrb.mxu0 %v4333_v24 }
 0x204   :  { %5587 = vst [vmem:[#allocation62_spill] sm:$0xff] %v4368_v0 }
 0x205   :  { %v4316_v17 = vpop.f32.mrf.mxu2  ;;  %1605 = vmatpush.msrb.mxu0 %v4354_v53  ;;  %5588 = vst [vmem:[#allocation63_spill] sm:$0xff] %v4374_v4  ;;  %v4379_v53 = vld [vmem:[%s5438_s3 + $0x48] sm:$0xff]  ;;  %v4402_v4 = vld [vmem:[%s5438_s3 + $0xf0] sm:$0xff] }
 0x206   :  { %5577 = vst [vmem:[#allocation52_spill] sm:$0xff] %v4316_v17  ;;  %1714 = vmatpush.msra.mxu3 %v4402_v4 }
 0x207   :  { %1606 = vmatpush.msrb.mxu0 %v4360_v44  ;;  %5589 = vst [vmem:[#allocation64_spill] sm:$0xff] %v4379_v53 }
 0x208   :  { %v1303_v44 = vpop.f32.mrf.mxu0  ;;  %1715 = vmatpush.msra.mxu3 %v4417_v36 }
 0x209   :  { %v4340_v17 = vpop.f32.mrf.mxu3  ;;  %1607 = vmatpush.msrb.mxu0 %v4368_v0  ;;  %v4388_v0 = vld [vmem:[%s5438_s3 + $0xa0] sm:$0xff] }
 0x20a   :  { %5582 = vst [vmem:[#allocation57_spill] sm:$0xff] %v4340_v17  ;;  %v1353_v17 = vpop.f32.mrf.mxu1  ;;  %1679 = vmatpush.msra.mxu2 %v4388_v0 }
 0x20b   :  { %1608 = vmatpush.msrb.mxu0 %v4379_v53  ;;  %5591 = vst [vmem:[#allocation66_spill] sm:$0xff] %v4388_v0  ;;  %v4407_v53 = vld [vmem:[%s5438_s3 + $0x90] sm:$0xff]  ;;  %v1298_v0 = vadd.f32 %v1297_v25, %v4079_v30 }
 0x20c   :  { %1680 = vmatpush.msra.mxu2 %v4396_v58  ;;  %5594 = vst [vmem:[#allocation69_spill] sm:$0xff] %v4407_v53  ;;  %v1082_v58 = vadd.f32 %v4000_v10, %v3840_v27  ;;  %v4431_v10 = vld [vmem:[%s5438_s3 + $0xd8] sm:$0xff] }
 0x20d   :  { %v4362_v24 = vpop.f32.mrf.mxu2  ;;  %v1386_v51 = vadd.f32 %v1350_v23, %v1298_v0  ;;  %5597 = vst [vmem:[#allocation72_spill] sm:$0xff] %v4431_v10 }
 0x20e   :  { %5586 = vst [vmem:[#allocation61_spill] sm:$0xff] %v4362_v24  ;;  %1681 = vmatpush.msra.mxu2 %v4407_v53  ;;  %v1147_v45 = vadd.f32 %v4025_v14, %v1082_v58  ;;  %v4424_v53 = vld [vmem:[%s5438_s3 + $0xe0] sm:$0xff] }
 0x20f   :  { %5596 = vst [vmem:[#allocation71_spill] sm:$0xff] %v4424_v53  ;;  %1716 = vmatpush.msra.mxu3 %v4424_v53  ;;  %v4438_v14 = vld [vmem:[%s5437_s2] ss:$0 sm:$0xff] }
 0x210   :  { %v1306_v30 = vpop.f32.mrf.mxu0  ;;  %v1215_v27 = vadd.f32 %v4086_v5, %v1147_v45  ;;  %v5598_v5 = vmax.f32 %v3768_v20, %v3772_v61  ;;  %v1084_v20 = vadd.f32 %v4038_v22, %v3878_v41  ;;  %v4468_v41 = vld [vmem:[%s5438_s3 + $0x1f0] sm:$0xff] }
 0x211   :  { %v4381_v24 = vpop.f32.mrf.mxu3  ;;  %1717 = vmatpush.msra.mxu3 %v4431_v10  ;;  %1778 = vmatpush.msra.mxu1 %v4468_v41 }
 0x212   :  { %5590 = vst [vmem:[#allocation65_spill] sm:$0xff] %v4381_v24  ;;  %v1356_v24 = vpop.f32.mrf.mxu1 }
 0x215   :  { %v4390_v56 = vpop.f32.mrf.mxu2 }
 0x216   :  { %5592 = vst [vmem:[#allocation67_spill] sm:$0xff] %v4390_v56 }
 0x218   :  { %v1309_v36 = vpop.f32.mrf.mxu0 }
 0x219   :  { %v1480_v56 = vpop.f32.mrf.mxu3 }
 0x21a   :  { %v1359_v25 = vpop.f32.mrf.mxu1 }
 0x21d   :  { %v1415_v35 = vpop.f32.mrf.mxu2 }
 0x21e   :  { %v1451_v15 = vadd.f32 %v1415_v35, %v1386_v51  ;;  %v1301_v35 = vadd.f32 %v1300_v55, %v4097_v29 }
 0x220   :  { %v1516_v0 = vadd.f32 %v1480_v56, %v1451_v15  ;;  %v1083_v56 = vadd.f32 %v4022_v1, %v3859_v6  ;;  %v1387_v15 = vadd.f32 %v1353_v17, %v1301_v35  ;;  %v1304_v1 = vadd.f32 %v1303_v44, %v4113_v42  ;;  %v1312_v22 = vpop.f32.mrf.mxu0 }
 0x221   :  { %v1483_v23 = vpop.f32.mrf.mxu3 }
 0x222   :  { %v1528_v58 = vmax.f32 %v1215_v27, %v1516_v0  ;;  %v1148_v53 = vadd.f32 %v4041_v47, %v1083_v56  ;;  %v1362_v61 = vpop.f32.mrf.mxu1  ;;  %v1388_v47 = vadd.f32 %v1356_v24, %v1304_v1 }
 0x224   :  { %v1540_v45 = vmax.f32 %v5598_v5, %v1528_v58  ;;  %v1216_v55 = vadd.f32 %v4104_v37, %v1148_v53  ;;  %v5599_v37 = vmax.f32 %v3787_v57, %v3791_v13  ;;  %v1307_v57 = vadd.f32 %v1306_v30, %v4130_v21  ;;  %v4488_v30 = vld [vmem:[%s5438_s3 + $0x1e0] sm:$0xff] }
 0x225   :  { %v1418_v51 = vpop.f32.mrf.mxu2 }
 0x226   :  { %v4447_v10 = vadd.f32 %v4438_v14, %v1540_v45  ;;  %v1452_v29 = vadd.f32 %v1418_v51, %v1387_v15  ;;  %v1389_v5 = vadd.f32 %v1359_v25, %v1307_v57  ;;  %v5601_v45 = vmax.f32 %v3806_v46, %v3810_v28  ;;  %v4505_v25 = vld [vmem:[%s5438_s3 + $0x160] sm:$0xff]  ;;  %v4568_v57 = vld [vmem:[%s5438_s3 + $0x1a8] sm:$0xff] }
 0x227   :  { %1745 = vmatpush.msra.mxu0 %v4505_v25  ;;  %1807 = vmatpush.msrb.mxu2 %v4568_v57 }
 0x228   :  { %v5494_v27 = vmax.f32 %v4447_v10, 0.0  ;;  %v1517_v0 = vadd.f32 %v1483_v23, %v1452_v29  ;;  %v1149_v23 = vadd.f32 %v4057_v31, %v1084_v20  ;;  %v1085_v31 = vadd.f32 %v4054_v52, %v3897_v11  ;;  %v4496_v11 = vld [vmem:[%s5438_s3 + $0x1d8] sm:$0xff] }
 0x229   :  { %v1486_v6 = vpop.f32.mrf.mxu3  ;;  %v4522_v20 = vld [vmem:[%s5438_s3 + $0x158] sm:$0xff] }
 0x22a   :  { %v1529_v17 = vmax.f32 %v1216_v55, %v1517_v0  ;;  %2758 = vmatmul.msk.f32.vlgmr.msrb.gmra.mxu1 %vm1580_vm2, %v5494_v27  ;;  %v1217_v44 = vadd.f32 %v4121_v49, %v1149_v23  ;;  %v4477_v49 = vld [vmem:[%s5438_s3 + $0x1e8] sm:$0xff]  ;;  %v1365_v51 = vpop.f32.mrf.mxu1  ;;  %v1150_v55 = vadd.f32 %v4073_v12, %v1085_v31  ;;  %v4510_v12 = vld [vmem:[%s5438_s3 + $0x1d0] sm:$0xff]  ;;  %1746 = vmatpush.msra.mxu0 %v4522_v20  ;;  %v4544_v23 = vld [vmem:[%s5438_s3 + $0x1c0] sm:$0xff] }
 0x22b   :  { %1779 = vmatpush.msra.mxu1 %v4477_v49  ;;  %v4578_v31 = vld [vmem:[%s5438_s3 + $0x1a0] sm:$0xff] }
 0x22c   :  { %v1541_v53 = vmax.f32 %v5599_v37, %v1529_v17  ;;  %v1218_v46 = vadd.f32 %v4138_v48, %v1150_v55  ;;  %v1310_v48 = vadd.f32 %v1309_v36, %v4161_v54  ;;  %v1086_v36 = vadd.f32 %v4070_v40, %v3923_v39  ;;  %v4553_v40 = vld [vmem:[%s5438_s3 + $0x148] sm:$0xff]  ;;  %1808 = vmatpush.msrb.mxu2 %v4578_v31 }
 0x22d   :  { %v1421_v35 = vpop.f32.mrf.mxu2  ;;  %1780 = vmatpush.msra.mxu1 %v4488_v30  ;;  %v5602_v37 = vmax.f32 %v3825_v62, %v3829_v16 }
 0x22e   :  { %v1557_v58 = vadd.f32 %v4438_v14, %v1541_v53  ;;  %v1453_v42 = vadd.f32 %v1421_v35, %v1388_v47  ;;  %v4527_v47 = vld [vmem:[%s5438_s3 + $0x1c8] sm:$0xff]  ;;  %v1390_v54 = vadd.f32 %v1362_v61, %v1310_v48  ;;  %v4539_v35 = vld [vmem:[%s5438_s3 + $0x150] sm:$0xff]  ;;  %v1151_v39 = vadd.f32 %v4091_v60, %v1086_v36  ;;  %v4558_v61 = vld [vmem:[%s5438_s3 + $0x1b8] sm:$0xff] }
 0x22f   :  { %1781 = vmatpush.msra.mxu1 %v4496_v11  ;;  %1747 = vmatpush.msra.mxu0 %v4539_v35  ;;  %v4633_v48 = vld [vmem:[%s5438_s3 + $0x190] sm:$0xff] }
 0x230   :  { %v4463_v56 = vmax.f32 %v1557_v58, 0.0  ;;  %v1518_v15 = vadd.f32 %v1486_v6, %v1453_v42  ;;  %v1315_v58 = vpop.f32.mrf.mxu0  ;;  %v1219_v60 = vadd.f32 %v4180_v32, %v1151_v39  ;;  %v4585_v32 = vld [vmem:[%s5438_s3 + $0x230] sm:$0xff]  ;;  %v4659_v39 = vld [vmem:[%s5438_s3 + $0x188] sm:$0xff] }
 0x231   :  { %v1489_v24 = vpop.f32.mrf.mxu3  ;;  %1782 = vmatpush.msra.mxu1 %v4510_v12  ;;  %1748 = vmatpush.msra.mxu0 %v4553_v40 }
 0x232   :  { %5600 = vst [vmem:[#allocation73_spill] sm:$0xff] %v4463_v56  ;;  %v1530_v13 = vmax.f32 %v1217_v44, %v1518_v15  ;;  %2754 = vmatmul.msk.f32.vlgmr.msrb.gmra.mxu0 %vm1580_vm2, %v4463_v56  ;;  %v1368_v44 = vpop.f32.mrf.mxu1 }
 0x233   :  { %1783 = vmatpush.msra.mxu1 %v4527_v47 }
 0x234   :  { %v1542_v21 = vmax.f32 %v5601_v45, %v1530_v13  ;;  %v4573_v13 = vld [vmem:[%s5438_s3 + $0x238] sm:$0xff]  ;;  %v4590_v45 = vld [vmem:[%s5438_s3 + $0x140] sm:$0xff] }
 0x235   :  { %v1424_v29 = vpop.f32.mrf.mxu2  ;;  %1784 = vmatpush.msra.mxu1 %v4544_v23  ;;  %1836 = vmatpush.msrb.mxu3 %v4573_v13 }
 0x236   :  { %v1558_v0 = vadd.f32 %v4438_v14, %v1542_v21  ;;  %v1454_v6 = vadd.f32 %v1424_v29, %v1389_v5  ;;  %v4595_v21 = vld [vmem:[%s5438_s3 + $0x1b0] sm:$0xff]  ;;  %v1313_v29 = vadd.f32 %v1312_v22, %v4191_v50  ;;  %v5603_v22 = vmax.f32 %v3846_v33, %v3848_v34  ;;  %1749 = vmatpush.msra.mxu0 %v4590_v45 }
 0x237   :  { %1785 = vmatpush.msra.mxu1 %v4558_v61  ;;  %1837 = vmatpush.msrb.mxu3 %v4585_v32 }
 0x238   :  { %v4500_v28 = vmax.f32 %v1558_v0, 0.0  ;;  %v1519_v52 = vadd.f32 %v1489_v24, %v1454_v6  ;;  %v4607_v0 = vld [vmem:[%s5438_s3 + $0x138] sm:$0xff]  ;;  %v1087_v6 = vadd.f32 %v4088_v43, %v3948_v3  ;;  %v1391_v50 = vadd.f32 %v1365_v51, %v1313_v29  ;;  %v4625_v3 = vld [vmem:[%s5438_s3 + $0x130] sm:$0xff]  ;;  %v1318_v51 = vpop.f32.mrf.mxu0 }
 0x239   :  { %v1492_v1 = vpop.f32.mrf.mxu3  ;;  %1786 = vmatpush.msra.mxu1 %v4595_v21  ;;  %1750 = vmatpush.msra.mxu0 %v4607_v0 }
 0x23a   :  { %v1531_v17 = vmax.f32 %v1218_v46, %v1519_v52  ;;  %2759 = vmatmul.msk.f32.gmra.mxu1 %vm1580_vm2, %v4500_v28  ;;  %2762 = vmatmul.msk.f32.vlgmr.msra.gmra.mxu2 %vm1580_vm2, %v4500_v28  ;;  %v4617_v52 = vld [vmem:[%s5438_s3 + $0x198] sm:$0xff]  ;;  %v1152_v33 = vadd.f32 %v4109_v7, %v1087_v6  ;;  %v4641_v7 = vld [vmem:[%s5438_s3 + $0x228] sm:$0xff] }
 0x23b   :  { %1809 = vmatpush.msrb.mxu2 %v4617_v52  ;;  %1751 = vmatpush.msra.mxu0 %v4625_v3  ;;  %v4688_v6 = vld [vmem:[%s5438_s3 + $0x178] sm:$0xff] }
 0x23c   :  { %v1543_v53 = vmax.f32 %v5602_v37, %v1531_v17  ;;  %v1220_v17 = vadd.f32 %v4198_v59, %v1152_v33  ;;  %v4648_v37 = vld [vmem:[%s5438_s3 + $0x220] sm:$0xff]  ;;  %v4653_v59 = vld [vmem:[%s5438_s3 + $0x128] sm:$0xff]  ;;  %1838 = vmatpush.msrb.mxu3 %v4641_v7  ;;  %5606 = vst [vmem:[#allocation75_spill] sm:$0xff] %v4688_v6 }
 0x23d   :  { %v1427_v42 = vpop.f32.mrf.mxu2  ;;  %1810 = vmatpush.msrb.mxu2 %v4633_v48  ;;  %1752 = vmatpush.msra.mxu0 %v4653_v59  ;;  %v4716_v33 = vld [vmem:[%s5438_s3 + $0x2c8] sm:$0xff] }
 0x23e   :  { %v1559_v62 = vadd.f32 %v4438_v14, %v1543_v53  ;;  %v1455_v16 = vadd.f32 %v1427_v42, %v1390_v54  ;;  %v1371_v53 = vpop.f32.mrf.mxu1  ;;  %1839 = vmatpush.msrb.mxu3 %v4648_v37  ;;  %5608 = vst [vmem:[#allocation77_spill] sm:$0xff] %v4716_v33  ;;  %1902 = vmatpush.msrb.mxu1 %v4716_v33 }
 0x23f   :  { %1811 = vmatpush.msrb.mxu2 %v4659_v39 }
 0x240   :  { %v4563_v15 = vmax.f32 %v1559_v62, 0.0  ;;  %v1520_v24 = vadd.f32 %v1492_v1, %v1455_v16  ;;  %v1316_v62 = vadd.f32 %v1315_v58, %v4220_v38  ;;  %v4676_v38 = vld [vmem:[%s5438_s3 + $0x180] sm:$0xff]  ;;  %v1088_v58 = vadd.f32 %v4106_v26, %v3973_v19 }
 0x241   :  { %v1495_v5 = vpop.f32.mrf.mxu3  ;;  %5604 = vst [vmem:[#allocation74_spill] sm:$0xff] %v4676_v38  ;;  %1812 = vmatpush.msrb.mxu2 %v4676_v38  ;;  %v5653_v38 = vld [vmem:[#allocation59_spill] sm:$0xff] }
 0x242   :  { %v1532_v55 = vmax.f32 %v1219_v60, %v1520_v24  ;;  %2755 = vmatmul.msk.f32.gmra.mxu0 %vm1580_vm2, %v4563_v15  ;;  %2766 = vmatmul.msk.f32.vlgmr.msra.gmra.mxu3 %vm1580_vm2, %v4563_v15  ;;  %v4669_v60 = vld [vmem:[%s5438_s3 + $0x120] sm:$0xff]  ;;  %v1392_v24 = vadd.f32 %v1368_v44, %v1316_v62  ;;  %v4699_v44 = vld [vmem:[%s5438_s3 + $0x218] sm:$0xff] }
 0x243   :  { %1753 = vmatpush.msra.mxu0 %v4669_v60  ;;  %1813 = vmatpush.msrb.mxu2 %v4688_v6 }
 0x244   :  { %v1544_v46 = vmax.f32 %v5603_v22, %v1532_v55  ;;  %1840 = vmatpush.msrb.mxu3 %v4699_v44 }
 0x245   :  { %v1430_v1 = vpop.f32.mrf.mxu2 }
 0x246   :  { %v1560_v34 = vadd.f32 %v4438_v14, %v1544_v46  ;;  %v1456_v43 = vadd.f32 %v1430_v1, %v1391_v50  ;;  %v1153_v50 = vadd.f32 %v4126_v8, %v1088_v58  ;;  %v4704_v46 = vld [vmem:[%s5438_s3 + $0x210] sm:$0xff]  ;;  %v5613_v58 = vld [vmem:[#allocation7_spill] sm:$0xff] }
 0x247   :  { %v4710_v8 = vld [vmem:[%s5438_s3 + $0x170] sm:$0xff]  ;;  %1841 = vmatpush.msrb.mxu3 %v4704_v46 }
 0x248   :  { %v4636_v36 = vmax.f32 %v1560_v34, 0.0  ;;  %v1521_v54 = vadd.f32 %v1495_v5, %v1456_v43  ;;  %v5605_v5 = vmax.f32 %v3865_v2, %v3867_v63  ;;  %v1221_v2 = vadd.f32 %v4229_v18, %v1153_v50  ;;  %5607 = vst [vmem:[#allocation76_spill] sm:$0xff] %v4710_v8  ;;  %v1321_v18 = vpop.f32.mrf.mxu0  ;;  %1814 = vmatpush.msrb.mxu2 %v4710_v8  ;;  %v4744_v50 = vld [vmem:[%s5438_s3 + $0x208] sm:$0xff] }
 0x249   :  { %v1498_v42 = vpop.f32.mrf.mxu3  ;;  %v1319_v34 = vadd.f32 %v1318_v51, %v4256_v9  ;;  %v4733_v9 = vld [vmem:[%s5438_s3 + $0x2c0] sm:$0xff]  ;;  %1842 = vmatpush.msrb.mxu3 %v4744_v50 }
 0x24a   :  { %v1533_v16 = vmax.f32 %v1220_v17, %v1521_v54  ;;  %2760 = vmatmul.msk.f32.gmra.mxu1 %vm1580_vm2, %v4636_v36  ;;  %2763 = vmatmul.msk.f32.gmra.mxu2 %vm1580_vm2, %v4636_v36  ;;  %v4726_v17 = vld [vmem:[%s5438_s3 + $0x168] sm:$0xff]  ;;  %v1374_v54 = vpop.f32.mrf.mxu1  ;;  %5610 = vst [vmem:[#allocation79_spill] sm:$0xff] %v4733_v9  ;;  %v5611_v51 = vld [vmem:[#allocation14_spill] sm:$0xff] }
 0x24b   :  { %5609 = vst [vmem:[#allocation78_spill] sm:$0xff] %v4726_v17  ;;  %1815 = vmatpush.msrb.mxu2 %v4726_v17  ;;  %1903 = vmatpush.msrb.mxu1 %v4733_v9 }
 0x24c   :  { %v1545_v29 = vmax.f32 %v5605_v5, %v1533_v16  ;;  %v1393_v16 = vadd.f32 %v1371_v53, %v1319_v34  ;;  %v5617_v53 = vld [vmem:[#allocation20_spill] sm:$0xff]  ;;  %v4759_v34 = vld [vmem:[%s5438_s3 + $0x200] sm:$0xff] }
 0x24d   :  { %v1433_v55 = vpop.f32.mrf.mxu2  ;;  %1843 = vmatpush.msrb.mxu3 %v4759_v34 }
 0x24e   :  { %v1561_v22 = vadd.f32 %v4438_v14, %v1545_v29  ;;  %v1457_v19 = vadd.f32 %v1433_v55, %v1392_v24  ;;  %v5614_v24 = vld [vmem:[#allocation8_spill] sm:$0xff] }
 0x24f   :  { %v5615_v5 = vmax.f32 %v5613_v58, %v5614_v24 }
 0x250   :  { %v4694_v63 = vmax.f32 %v1561_v22, 0.0  ;;  %v1522_v26 = vadd.f32 %v1498_v42, %v1457_v19  ;;  %v5612_v42 = vld [vmem:[#allocation19_spill] sm:$0xff]  ;;  %v4750_v22 = vld [vmem:[%s5438_s3 + $0x2b8] sm:$0xff] }
 0x251   :  { %v1501_v1 = vpop.f32.mrf.mxu3  ;;  %v1089_v62 = vadd.f32 %v5612_v42, %v5611_v51  ;;  %5616 = vst [vmem:[#allocation14_spill] sm:$0xff] %v4750_v22  ;;  %v5619_v51 = vld [vmem:[#allocation39_spill] sm:$0xff]  ;;  %1904 = vmatpush.msrb.mxu1 %v4750_v22  ;;  %v5630_v22 = vld [vmem:[#allocation25_spill] sm:$0xff] }
 0x252   :  { %v1534_v43 = vmax.f32 %v1221_v2, %v1522_v26  ;;  %2756 = vmatmul.msk.f32.gmra.mxu0 %vm1580_vm2, %v4694_v63  ;;  %2767 = vmatmul.msk.f32.gmra.mxu3 %vm1580_vm2, %v4694_v63  ;;  %v1377_v8 = vpop.f32.mrf.mxu1 }
 0x253   :  { %v1154_v19 = vadd.f32 %v5617_v53, %v1089_v62  ;;  %v4770_v62 = vld [vmem:[%s5438_s3 + $0x2b0] sm:$0xff] }
 0x254   :  { %v1546_v29 = vmax.f32 %v5615_v5, %v1534_v43  ;;  %v5618_v43 = vld [vmem:[#allocation22_spill] sm:$0xff]  ;;  %5620 = vst [vmem:[#allocation19_spill] sm:$0xff] %v4770_v62  ;;  %v4775_v5 = vld [vmem:[%s5438_s3 + $0x1f8] sm:$0xff]  ;;  %1905 = vmatpush.msrb.mxu1 %v4770_v62 }
 0x255   :  { %v1436_v55 = vpop.f32.mrf.mxu2  ;;  %1939 = vmatpush.msra.mxu2 %v5618_v43  ;;  %v1222_v42 = vadd.f32 %v5619_v51, %v1154_v19  ;;  %5621 = vst [vmem:[#allocation7_spill] sm:$0xff] %v4775_v5  ;;  %1844 = vmatpush.msrb.mxu3 %v4775_v5  ;;  %v5625_v43 = vld [vmem:[#allocation15_spill] sm:$0xff]  ;;  %v5626_v51 = vld [vmem:[#allocation24_spill] sm:$0xff]  ;;  %v4810_v62 = vld [vmem:[%s5438_s3 + $0x2a0] sm:$0xff] }
 0x256   :  { %v1562_v2 = vadd.f32 %v4438_v14, %v1546_v29  ;;  %v1458_v26 = vadd.f32 %v1436_v55, %v1393_v16  ;;  %v4780_v29 = vld [vmem:[%s5438_s3 + $0x280] sm:$0xff]  ;;  %v5623_v55 = vld [vmem:[#allocation45_spill] sm:$0xff]  ;;  %5631 = vst [vmem:[#allocation20_spill] sm:$0xff] %v4810_v62 }
 0x257   :  { %v1322_v53 = vadd.f32 %v1321_v18, %v5623_v55  ;;  %v4798_v18 = vld [vmem:[%s5438_s3 + $0x278] sm:$0xff]  ;;  %v5628_v55 = vld [vmem:[#allocation10_spill] sm:$0xff]  ;;  %1869 = vmatpush.msrb.mxu0 %v4780_v29  ;;  %1968 = vmatpush.msra.mxu3 %v5630_v22 }
 0x258   :  { %v4763_v58 = vmax.f32 %v1562_v2, 0.0  ;;  %v1523_v24 = vadd.f32 %v1501_v1, %v1458_v26  ;;  %v5622_v1 = vld [vmem:[#allocation29_spill] sm:$0xff]  ;;  %v4791_v2 = vld [vmem:[%s5438_s3 + $0x2a8] sm:$0xff]  ;;  %v1324_v26 = vpop.f32.mrf.mxu0 }
 0x259   :  { %v1504_v16 = vpop.f32.mrf.mxu3  ;;  %1940 = vmatpush.msra.mxu2 %v5622_v1  ;;  %5624 = vst [vmem:[#allocation8_spill] sm:$0xff] %v4791_v2  ;;  %v5627_v1 = vld [vmem:[#allocation9_spill] sm:$0xff]  ;;  %1906 = vmatpush.msrb.mxu1 %v4791_v2  ;;  %v5638_v2 = vld [vmem:[#allocation47_spill] sm:$0xff] }
 0x25a   :  { %v1535_v19 = vmax.f32 %v1222_v42, %v1523_v24  ;;  %2761 = vmatmul.msk.f32.gmra.mxu1 %vm1580_vm2, %v4763_v58  ;;  %2764 = vmatmul.msk.f32.gmra.mxu2 %vm1580_vm2, %v4763_v58  ;;  %v1090_v42 = vadd.f32 %v5626_v51, %v5625_v43  ;;  %v1394_v24 = vadd.f32 %v1374_v54, %v1322_v53  ;;  %v4816_v54 = vld [vmem:[%s5438_s3 + $0x270] sm:$0xff]  ;;  %v4825_v51 = vld [vmem:[%s5438_s3 + $0x298] sm:$0xff] }
 0x25b   :  { %v5629_v27 = vmax.f32 %v5627_v1, %v5628_v55  ;;  %5632 = vst [vmem:[#allocation22_spill] sm:$0xff] %v4816_v54  ;;  %v5633_v53 = vld [vmem:[#allocation36_spill] sm:$0xff]  ;;  %1870 = vmatpush.msrb.mxu0 %v4798_v18  ;;  %1907 = vmatpush.msrb.mxu1 %v4810_v62  ;;  %v5637_v55 = vld [vmem:[#allocation42_spill] sm:$0xff]  ;;  %v4874_v62 = vld [vmem:[%s5438_s3 + $0x258] sm:$0xff] }
 0x25c   :  { %1941 = vmatpush.msra.mxu2 %v5633_v53  ;;  %5635 = vst [vmem:[#allocation39_spill] sm:$0xff] %v4825_v51  ;;  %v5636_v1 = vld [vmem:[#allocation32_spill] sm:$0xff] }
 0x25d   :  { %v1547_v17 = vmax.f32 %v5629_v27, %v1535_v19  ;;  %v1439_v9 = vpop.f32.mrf.mxu2  ;;  %v5634_v27 = vld [vmem:[#allocation26_spill] sm:$0xff]  ;;  %1969 = vmatpush.msra.mxu3 %v5636_v1  ;;  %1871 = vmatpush.msrb.mxu0 %v4816_v54  ;;  %v5646_v1 = vld [vmem:[#allocation16_spill] sm:$0xff]  ;;  %5651 = vst [vmem:[#allocation9_spill] sm:$0xff] %v4874_v62 }
 0x25e   :  { %v1155_v19 = vadd.f32 %v5634_v27, %v1090_v42  ;;  %v1459_v43 = vadd.f32 %v1439_v9, %v1394_v24  ;;  %1942 = vmatpush.msra.mxu2 %v5637_v55  ;;  %v5640_v9 = vld [vmem:[#allocation38_spill] sm:$0xff]  ;;  %1908 = vmatpush.msrb.mxu1 %v4825_v51  ;;  %v4844_v27 = vld [vmem:[%s5438_s3 + $0x290] sm:$0xff] }
 0x25f   :  { %v1563_v22 = vadd.f32 %v4438_v14, %v1547_v17  ;;  %v4837_v17 = vld [vmem:[%s5438_s3 + $0x268] sm:$0xff]  ;;  %1970 = vmatpush.msra.mxu3 %v5640_v9  ;;  %5641 = vst [vmem:[#allocation45_spill] sm:$0xff] %v4844_v27  ;;  %v5647_v55 = vld [vmem:[#allocation28_spill] sm:$0xff] }
 0x260   :  { %v1223_v53 = vadd.f32 %v5638_v2, %v1155_v19  ;;  %v1524_v42 = vadd.f32 %v1504_v16, %v1459_v43  ;;  %5639 = vst [vmem:[#allocation29_spill] sm:$0xff] %v4837_v17  ;;  %v5642_v2 = vld [vmem:[#allocation55_spill] sm:$0xff]  ;;  %v5643_v16 = vld [vmem:[#allocation49_spill] sm:$0xff]  ;;  %v4855_v43 = vld [vmem:[%s5438_s3 + $0x260] sm:$0xff]  ;;  %1872 = vmatpush.msrb.mxu0 %v4837_v17  ;;  %1909 = vmatpush.msrb.mxu1 %v4844_v27  ;;  %v1327_v33 = vpop.f32.mrf.mxu0 }
 0x261   :  { %v4831_v6 = vmax.f32 %v1563_v22, 0.0  ;;  %v1507_v24 = vpop.f32.mrf.mxu3  ;;  %1943 = vmatpush.msra.mxu2 %v5642_v2  ;;  %v1325_v19 = vadd.f32 %v1324_v26, %v5643_v16  ;;  %5644 = vst [vmem:[#allocation15_spill] sm:$0xff] %v4855_v43  ;;  %v4863_v26 = vld [vmem:[%s5438_s3 + $0x288] sm:$0xff]  ;;  %v5649_v2 = vld [vmem:[#allocation12_spill] sm:$0xff]  ;;  %v5652_v17 = vld [vmem:[#allocation46_spill] sm:$0xff] }
 0x262   :  { %v1536_v22 = vmax.f32 %v1223_v53, %v1524_v42  ;;  %2774 = vmatmul.msk.f32.vlgmr.msra.gmra.mxu1 %vm1580_vm2, %v4463_v56  ;;  %5645 = vst [vmem:[#allocation24_spill] sm:$0xff] %v4863_v26  ;;  %v1091_v53 = vadd.f32 %v5647_v55, %v5646_v1  ;;  %v5648_v9 = vld [vmem:[#allocation11_spill] sm:$0xff]  ;;  %1971 = vmatpush.msra.mxu3 %v5652_v17  ;;  %v4885_v55 = vld [vmem:[%s5438_s3 + $0x250] sm:$0xff]  ;;  %v1380_v17 = vpop.f32.mrf.mxu1 }
 0x263   :  { %2757 = vmatmul.msk.f32.gmra.mxu0 %vm1580_vm2, %v4831_v6  ;;  %2768 = vmatmul.msk.f32.gmra.mxu3 %vm1580_vm2, %v4831_v6  ;;  %v1395_v42 = vadd.f32 %v1377_v8, %v1325_v19  ;;  %v5650_v16 = vmax.f32 %v5648_v9, %v5649_v2  ;;  %v5654_v8 = vld [vmem:[#allocation31_spill] sm:$0xff]  ;;  %5655 = vst [vmem:[#allocation10_spill] sm:$0xff] %v4885_v55  ;;  %v5656_v9 = vld [vmem:[#allocation48_spill] sm:$0xff] }
 0x264   :  { %1873 = vmatpush.msrb.mxu0 %v4855_v43  ;;  %1944 = vmatpush.msra.mxu2 %v5653_v38  ;;  %v1156_v19 = vadd.f32 %v5654_v8, %v1091_v53  ;;  %v5657_v2 = vld [vmem:[#allocation60_spill] sm:$0xff]  ;;  %v5661_v8 = vld [vmem:[#allocation23_spill] sm:$0xff] }
 0x265   :  { %v1548_v51 = vmax.f32 %v5650_v16, %v1536_v22  ;;  %v1442_v56 = vpop.f32.mrf.mxu2  ;;  %1910 = vmatpush.msrb.mxu1 %v4863_v26  ;;  %1972 = vmatpush.msra.mxu3 %v5656_v9  ;;  %v5658_v38 = vld [vmem:[#allocation52_spill] sm:$0xff]  ;;  %v5662_v9 = vld [vmem:[#allocation62_spill] sm:$0xff]  ;;  %v5663_v26 = vld [vmem:[#allocation57_spill] sm:$0xff] }
 0x266   :  { %v1460_v22 = vadd.f32 %v1442_v56, %v1395_v42  ;;  %1874 = vmatpush.msrb.mxu0 %v4874_v62  ;;  %1945 = vmatpush.msra.mxu2 %v5657_v2  ;;  %v1224_v16 = vadd.f32 %v5658_v38, %v1156_v19  ;;  %v4896_v56 = vld [vmem:[%s5438_s3 + $0x248] sm:$0xff]  ;;  %v5660_v42 = vld [vmem:[#allocation50_spill] sm:$0xff]  ;;  %v1328_v2 = vadd.f32 %v1327_v33, %v5663_v26  ;;  %v5665_v33 = vld [vmem:[#allocation33_spill] sm:$0xff] }
 0x267   :  { %v1564_v1 = vadd.f32 %v4438_v14, %v1548_v51  ;;  %5659 = vst [vmem:[#allocation25_spill] sm:$0xff] %v4896_v56  ;;  %1973 = vmatpush.msra.mxu3 %v5660_v42  ;;  %2030 = vmatpush.msra.mxu1 %v5661_v8  ;;  %v5666_v38 = vld [vmem:[#allocation4_spill] sm:$0xff]  ;;  %v5669_v8 = vld [vmem:[#allocation51_spill] sm:$0xff]  ;;  %v5671_v62 = vld [vmem:[#allocation30_spill] sm:$0xff] }
 0x268   :  { %v1525_v51 = vadd.f32 %v1507_v24, %v1460_v22  ;;  %1875 = vmatpush.msrb.mxu0 %v4885_v55  ;;  %1946 = vmatpush.msra.mxu2 %v5662_v9  ;;  %v4910_v24 = vld [vmem:[%s5438_s3 + $0x240] sm:$0xff]  ;;  %v1396_v22 = vadd.f32 %v1380_v17, %v1328_v2  ;;  %v5670_v9 = vld [vmem:[#allocation64_spill] sm:$0xff]  ;;  %v5672_v43 = vld [vmem:[#allocation35_spill] sm:$0xff]  ;;  %v1330_v2 = vpop.f32.mrf.mxu0 }
 0x269   :  { %v4891_v53 = vmax.f32 %v1564_v1, 0.0  ;;  %v1510_v19 = vpop.f32.mrf.mxu3  ;;  %v5664_v1 = vld [vmem:[#allocation17_spill] sm:$0xff]  ;;  %1974 = vmatpush.msra.mxu3 %v5669_v8  ;;  %2031 = vmatpush.msra.mxu1 %v5671_v62  ;;  %v5677_v8 = vld [vmem:[#allocation58_spill] sm:$0xff]  ;;  %v5678_v62 = vld [vmem:[#allocation27_spill] sm:$0xff] }
 0x26a   :  { %v1537_v27 = vmax.f32 %v1224_v16, %v1525_v51  ;;  %2775 = vmatmul.msk.f32.gmra.mxu1 %vm1580_vm2, %v4563_v15  ;;  %1876 = vmatpush.msrb.mxu0 %v4896_v56  ;;  %v1092_v26 = vadd.f32 %v5665_v33, %v5664_v1  ;;  %v5667_v16 = vld [vmem:[#allocation13_spill] sm:$0xff] }
 0x26b   :  { %2765 = vmatmul.msk.f32.gmra.mxu2 %vm1580_vm2, %v4891_v53  ;;  %2770 = vmatmul.msk.f32.vlgmr.msra.gmra.mxu0 %vm1580_vm2, %v4636_v36  ;;  %v5668_v51 = vmax.f32 %v5666_v38, %v5667_v16  ;;  %v5673_v1 = vld [vmem:[#allocation53_spill] sm:$0xff] }
 0x26c   :  { %1947 = vmatpush.msra.mxu2 %v5670_v9  ;;  %1877 = vmatpush.msrb.mxu0 %v4910_v24  ;;  %v1157_v5 = vadd.f32 %v5672_v43, %v1092_v26  ;;  %v5674_v17 = vld [vmem:[#allocation21_spill] sm:$0xff]  ;;  %v1383_v43 = vpop.f32.mrf.mxu1  ;;  %v5679_v26 = vld [vmem:[#allocation43_spill] sm:$0xff] }
 0x26d   :  { %v1549_v42 = vmax.f32 %v5668_v51, %v1537_v27  ;;  %v1445_v55 = vpop.f32.mrf.mxu2  ;;  %1975 = vmatpush.msra.mxu3 %v5673_v1  ;;  %v5675_v27 = vld [vmem:[#allocation37_spill] sm:$0xff]  ;;  %v5684_v1 = vld [vmem:[#allocation2_spill] sm:$0xff] }
 0x26e   :  { %v1461_v54 = vadd.f32 %v1445_v55, %v1396_v22  ;;  %1997 = vmatpush.msra.mxu0 %v5674_v17  ;;  %2032 = vmatpush.msra.mxu1 %v5675_v27  ;;  %v5676_v33 = vld [vmem:[#allocation61_spill] sm:$0xff] }
 0x26f   :  { %v1565_v56 = vadd.f32 %v4438_v14, %v1549_v42  ;;  %v1225_v38 = vadd.f32 %v5676_v33, %v1157_v5  ;;  %1976 = vmatpush.msra.mxu3 %v5677_v8  ;;  %v5680_v55 = vld [vmem:[#allocation65_spill] sm:$0xff]  ;;  %v5681_v5 = vmax.f32 %v4447_v10, 0.0  ;;  %v5687_v33 = vld [vmem:[#allocation56_spill] sm:$0xff]  ;;  %v5688_v8 = vld [vmem:[#allocation34_spill] sm:$0xff] }
 0x270   :  { %v1526_v51 = vadd.f32 %v1510_v19, %v1461_v54  ;;  %1998 = vmatpush.msra.mxu0 %v5678_v62  ;;  %2033 = vmatpush.msra.mxu1 %v5679_v26  ;;  %v1331_v22 = vadd.f32 %v1330_v2, %v5680_v55  ;;  %v5682_v54 = vld [vmem:[#allocation18_spill] sm:$0xff]  ;;  %v5685_v17 = vld [vmem:[#allocation5_spill] sm:$0xff]  ;;  %v5689_v62 = vld [vmem:[#allocation44_spill] sm:$0xff] }
 0x271   :  { %v4930_v16 = vmax.f32 %v1565_v56, 0.0  ;;  %v5683_v56 = vld [vmem:[#allocation40_spill] sm:$0xff]  ;;  %v5686_v2 = vmax.f32 %v5684_v1, %v5685_v17  ;;  %v5691_v55 = vld [vmem:[#allocation67_spill] sm:$0xff] }
 0x272   :  { %v1538_v42 = vmax.f32 %v1225_v38, %v1526_v51  ;;  %2776 = vmatmul.msk.f32.gmra.mxu1 %vm1580_vm2, %v4694_v63  ;;  %v1093_v19 = vadd.f32 %v5683_v56, %v5682_v54  ;;  %v1397_v9 = vadd.f32 %v1383_v43, %v1331_v22  ;;  %v1513_v51 = vpop.f32.mrf.mxu3  ;;  %1999 = vmatpush.msra.mxu0 %v5688_v8  ;;  %v5690_v43 = vld [vmem:[#allocation41_spill] sm:$0xff]  ;;  %v5695_v56 = vld [vmem:[#allocation6_spill] sm:$0xff]  ;;  %v5698_v1 = vld [vmem:[#allocation63_spill] sm:$0xff] }
 0x273   :  { %2769 = vmatmul.msk.f32.gmra.mxu3 %vm1580_vm2, %v4930_v16  ;;  %2771 = vmatmul.msk.f32.gmra.mxu0 %vm1580_vm2, %v4763_v58  ;;  %v5699_v17 = vld [vmem:[#allocation72_spill] sm:$0xff] }
 0x274   :  { %2778 = vmatmul.msk.f32.vlgmr.msrb.gmra.mxu2 %vm1580_vm2, %v5681_v5  ;;  %v1550_v27 = vmax.f32 %v5686_v2, %v1538_v42  ;;  %2034 = vmatpush.msra.mxu1 %v5687_v33  ;;  %v1158_v10 = vadd.f32 %v5689_v62, %v1093_v19  ;;  %v5692_v5 = vld [vmem:[#allocation70_spill] sm:$0xff]  ;;  %v5701_v33 = vld [vmem:[#allocation68_spill] sm:$0xff] }
 0x275   :  { %2066 = vmatpush.msrb.mxu2 %v4505_v25  ;;  %v1448_v38 = vpop.f32.mrf.mxu2  ;;  %2000 = vmatpush.msra.mxu0 %v5690_v43  ;;  %v5693_v25 = vld [vmem:[#allocation54_spill] sm:$0xff] }
 0x276   :  { %v1462_v26 = vadd.f32 %v1448_v38, %v1397_v9  ;;  %2035 = vmatpush.msra.mxu1 %v4402_v4  ;;  %v1226_v22 = vadd.f32 %v5691_v55, %v1158_v10  ;;  %v1566_v4 = vadd.f32 %v4438_v14, %v1550_v27  ;;  %v5697_v9 = vld [vmem:[#allocation71_spill] sm:$0xff]  ;;  %v5700_v2 = vld [vmem:[#allocation66_spill] sm:$0xff] }
 0x277   :  { %2067 = vmatpush.msrb.mxu2 %v4522_v20  ;;  %2001 = vmatpush.msra.mxu0 %v5693_v25  ;;  %v5694_v20 = vld [vmem:[#allocation3_spill] sm:$0xff] }
 0x278   :  { %v1527_v42 = vadd.f32 %v1513_v51, %v1462_v26  ;;  %2036 = vmatpush.msra.mxu1 %v5692_v5  ;;  %v4983_v27 = vmax.f32 %v1566_v4, 0.0 }
 0x279   :  { %2068 = vmatpush.msrb.mxu2 %v4539_v35  ;;  %v5696_v35 = vmax.f32 %v5694_v20, %v5695_v56  ;;  %2002 = vmatpush.msra.mxu0 %v5698_v1 }
 0x27a   :  { %v1539_v54 = vmax.f32 %v1226_v22, %v1527_v42  ;;  %2777 = vmatmul.msk.f32.gmra.mxu1 %vm1580_vm2, %v4831_v6 }
 0x27b   :  { %2772 = vmatmul.msk.f32.gmra.mxu0 %vm1580_vm2, %v4891_v53  ;;  %2782 = vmatmul.msk.f32.vlgmr.msrb.gmra.mxu3 %vm1580_vm2, %v4500_v28 }
 0x27c   :  { %2779 = vmatmul.msk.f32.gmra.mxu2 %vm1580_vm2, %v4500_v28  ;;  %v4973_v19 = vmax.f32 %v5696_v35, %v1539_v54  ;;  %2099 = vmatpush.msrb.mxu3 %v4468_v41  ;;  %v5702_v41 = vld [vmem:[#allocation69_spill] sm:$0xff] }
 0x27d   :  { %2037 = vmatpush.msra.mxu1 %v5697_v9  ;;  %2069 = vmatpush.msrb.mxu2 %v4553_v40  ;;  %v5709_v40 = vld [vmem:[#allocation75_spill] sm:$0xff] }
 0x27e   :  { %2100 = vmatpush.msrb.mxu3 %v4477_v49  ;;  %2003 = vmatpush.msra.mxu0 %v5700_v2  ;;  %v5703_v49 = vld [vmem:[#allocation22_spill] sm:$0xff] }
 0x27f   :  { %2038 = vmatpush.msra.mxu1 %v5699_v17  ;;  %2070 = vmatpush.msrb.mxu2 %v4590_v45  ;;  %v5715_v45 = vld [vmem:[#allocation78_spill] sm:$0xff] }
 0x280   :  { %2101 = vmatpush.msrb.mxu3 %v4488_v30  ;;  %2004 = vmatpush.msra.mxu0 %v5701_v33  ;;  %v5704_v30 = vld [vmem:[#allocation7_spill] sm:$0xff] }
 0x281   :  { %2071 = vmatpush.msrb.mxu2 %v4607_v0  ;;  %v5717_v0 = vld [vmem:[#allocation10_spill] sm:$0xff] }
 0x282   :  { %2790 = vmatmul.msk.f32.vlgmr.msrb.gmra.mxu1 %vm1580_vm2, %v4636_v36  ;;  %2102 = vmatpush.msrb.mxu3 %v4496_v11  ;;  %v5705_v11 = vld [vmem:[#allocation74_spill] sm:$0xff] }
 0x283   :  { %2773 = vmatmul.msk.f32.gmra.mxu0 %vm1580_vm2, %v4983_v27  ;;  %2783 = vmatmul.msk.f32.gmra.mxu3 %vm1580_vm2, %v4636_v36 }
 0x284   :  { %2780 = vmatmul.msk.f32.gmra.mxu2 %vm1580_vm2, %v4636_v36  ;;  %2005 = vmatpush.msra.mxu0 %v5702_v41 }
 0x285   :  { %2072 = vmatpush.msrb.mxu2 %v4625_v3  ;;  %2157 = vmatpush.msrb.mxu1 %v4573_v13  ;;  %v5712_v13 = vld [vmem:[#allocation76_spill] sm:$0xff]  ;;  %v5719_v3 = vld [vmem:[#allocation25_spill] sm:$0xff] }
 0x286   :  { %2103 = vmatpush.msrb.mxu3 %v4510_v12  ;;  %v5706_v12 = vld [vmem:[#allocation73_spill] sm:$0xff] }
 0x287   :  { %2073 = vmatpush.msrb.mxu2 %v4653_v59  ;;  %2158 = vmatpush.msrb.mxu1 %v4585_v32  ;;  %v5714_v32 = vld [vmem:[#allocation9_spill] sm:$0xff] }
 0x288   :  { %2104 = vmatpush.msrb.mxu3 %v4527_v47  ;;  %v5707_v47 = vld [vmem:[#allocation77_spill] sm:$0xff] }
 0x289   :  { %2074 = vmatpush.msrb.mxu2 %v4669_v60  ;;  %2159 = vmatpush.msrb.mxu1 %v4641_v7  ;;  %v5721_v7 = vld [vmem:[#allocation39_spill] sm:$0xff] }
 0x28a   :  { %2791 = vmatmul.msk.f32.gmra.mxu1 %vm1580_vm2, %v4763_v58  ;;  %2105 = vmatpush.msrb.mxu3 %v4544_v23  ;;  %v5708_v23 = vld [vmem:[#allocation29_spill] sm:$0xff] }
 0x28b   :  { %2784 = vmatmul.msk.f32.gmra.mxu3 %vm1580_vm2, %v4763_v58  ;;  %2786 = vmatmul.msk.f32.vlgmr.msrb.gmra.mxu0 %vm1580_vm2, %v4563_v15 }
 0x28c   :  { %2781 = vmatmul.msk.f32.gmra.mxu2 %vm1580_vm2, %v4763_v58  ;;  %2160 = vmatpush.msrb.mxu1 %v4648_v37  ;;  %v5722_v37 = vld [vmem:[#allocation45_spill] sm:$0xff] }
 0x28d   :  { %2128 = vmatpush.msrb.mxu0 %v4568_v57  ;;  %2106 = vmatpush.msrb.mxu3 %v4558_v61  ;;  %v5710_v61 = vld [vmem:[#allocation79_spill] sm:$0xff] }
 0x28e   :  { %2161 = vmatpush.msrb.mxu1 %v4699_v44  ;;  %v5711_v57 = vld [vmem:[#allocation15_spill] sm:$0xff]  ;;  %v5723_v44 = vld [vmem:[#allocation24_spill] sm:$0xff] }
 0x28f   :  { %2129 = vmatpush.msrb.mxu0 %v4578_v31  ;;  %2107 = vmatpush.msrb.mxu3 %v4595_v21  ;;  %v5713_v31 = vld [vmem:[#allocation14_spill] sm:$0xff]  ;;  %v5716_v21 = vld [vmem:[#allocation19_spill] sm:$0xff] }
 0x290   :  { %2162 = vmatpush.msrb.mxu1 %v4704_v46 }
 0x291   :  { %2130 = vmatpush.msrb.mxu0 %v4617_v52  ;;  %v5718_v52 = vld [vmem:[#allocation8_spill] sm:$0xff] }
 0x292   :  { %2792 = vmatmul.msk.f32.gmra.mxu1 %vm1580_vm2, %v4891_v53 }
 0x293   :  { %2785 = vmatmul.msk.f32.gmra.mxu3 %vm1580_vm2, %v4891_v53  ;;  %2787 = vmatmul.msk.f32.gmra.mxu0 %vm1580_vm2, %v4694_v63 }
 0x294   :  { %2794 = vmatmul.msk.f32.vlgmr.msra.gmra.mxu2 %vm1580_vm2, %v4500_v28  ;;  %2163 = vmatpush.msrb.mxu1 %v4744_v50 }
 0x295   :  { %2190 = vmatpush.msra.mxu2 %v4780_v29  ;;  %2131 = vmatpush.msrb.mxu0 %v4633_v48  ;;  %v5720_v48 = vld [vmem:[#allocation20_spill] sm:$0xff] }
 0x296   :  { %2164 = vmatpush.msrb.mxu1 %v4759_v34 }
 0x297   :  { %2191 = vmatpush.msra.mxu2 %v4798_v18  ;;  %2132 = vmatpush.msrb.mxu0 %v4659_v39 }
 0x298   :  { %2165 = vmatpush.msrb.mxu1 %v5704_v30 }
 0x299   :  { %2192 = vmatpush.msra.mxu2 %v5703_v49  ;;  %2133 = vmatpush.msrb.mxu0 %v5705_v11 }
 0x29a   :  { %2793 = vmatmul.msk.f32.gmra.mxu1 %vm1580_vm2, %v4983_v27 }
 0x29b   :  { %2788 = vmatmul.msk.f32.gmra.mxu0 %vm1580_vm2, %v4831_v6  ;;  %2798 = vmatmul.msk.f32.vlgmr.msra.gmra.mxu3 %vm1580_vm2, %v5706_v12 }
 0x29c   :  { %2795 = vmatmul.msk.f32.gmra.mxu2 %vm1580_vm2, %v4636_v36  ;;  %2223 = vmatpush.msra.mxu3 %v5707_v47 }
 0x29d   :  { %2193 = vmatpush.msra.mxu2 %v5708_v23  ;;  %2134 = vmatpush.msrb.mxu0 %v5709_v40 }
 0x29e   :  { %2224 = vmatpush.msra.mxu3 %v5710_v61 }
 0x29f   :  { %2194 = vmatpush.msra.mxu2 %v5711_v57  ;;  %2135 = vmatpush.msrb.mxu0 %v5712_v13 }
 0x2a0   :  { %2225 = vmatpush.msra.mxu3 %v5713_v31 }
 0x2a1   :  { %2195 = vmatpush.msra.mxu2 %v5714_v32  ;;  %2136 = vmatpush.msrb.mxu0 %v5715_v45 }
 0x2a2   :  { %2806 = vmatmul.msk.f32.vlgmr.msra.gmra.mxu1 %vm1580_vm2, %v4636_v36  ;;  %2226 = vmatpush.msra.mxu3 %v5716_v21 }
 0x2a3   :  { %2789 = vmatmul.msk.f32.gmra.mxu0 %vm1580_vm2, %v4930_v16  ;;  %2799 = vmatmul.msk.f32.gmra.mxu3 %vm1580_vm2, %v4563_v15 }
 0x2a4   :  { %2796 = vmatmul.msk.f32.gmra.mxu2 %vm1580_vm2, %v4763_v58  ;;  %2227 = vmatpush.msra.mxu3 %v5718_v52 }
 0x2a5   :  { %2196 = vmatpush.msra.mxu2 %v5717_v0 }
 0x2a6   :  { %2228 = vmatpush.msra.mxu3 %v5720_v48 }
 0x2a7   :  { %2197 = vmatpush.msra.mxu2 %v5719_v3  ;;  %v1651_v59 = vpop.f32.mrf.mxu1 }
 0x2a8   :  { %2229 = vmatpush.msra.mxu3 %v5721_v7 }
 0x2a9   :  { %2198 = vmatpush.msra.mxu2 %v4910_v24 }
 0x2aa   :  { %2807 = vmatmul.msk.f32.gmra.mxu1 %vm1580_vm2, %v4763_v58  ;;  %2230 = vmatpush.msra.mxu3 %v5722_v37 }
 0x2ab   :  { %2800 = vmatmul.msk.f32.gmra.mxu3 %vm1580_vm2, %v4694_v63  ;;  %2802 = vmatmul.msk.f32.vlgmr.msra.gmra.mxu0 %vm1580_vm2, %v4563_v15 }
 0x2ac   :  { %2797 = vmatmul.msk.f32.gmra.mxu2 %vm1580_vm2, %v4891_v53  ;;  %2231 = vmatpush.msra.mxu3 %v5723_v44 }
 0x2af   :  { %v1610_v39 = vpop.f32.mrf.mxu0 }
 0x2b0   :  { %v1652_v60 = vadd.f32 %v1651_v59, %v1610_v39 }
 0x2b2   :  { %2808 = vmatmul.msk.f32.gmra.mxu1 %vm1580_vm2, %v4891_v53 }
 0x2b3   :  { %2801 = vmatmul.msk.f32.gmra.mxu3 %vm1580_vm2, %v4831_v6  ;;  %2803 = vmatmul.msk.f32.gmra.mxu0 %vm1580_vm2, %v4694_v63 }
 0x2b4   :  { %2810 = vmatmul.msk.f32.vlgmr.msrb.gmra.mxu2 %vm1580_vm2, %v4694_v63 }
 0x2b7   :  { %v1654_v34 = vpop.f32.mrf.mxu1 }
 0x2ba   :  { %2809 = vmatmul.msk.f32.gmra.mxu1 %vm1580_vm2, %v4983_v27 }
 0x2bb   :  { %2804 = vmatmul.msk.f32.gmra.mxu0 %vm1580_vm2, %v4831_v6  ;;  %2814 = vmatmul.msk.f32.vlgmr.msrb.gmra.mxu3 %vm1580_vm2, %v4500_v28  ;;  %v1567_v28 = vadd.f32 %v4438_v14, %v4973_v19 }
 0x2bc   :  { %2811 = vmatmul.msk.f32.gmra.mxu2 %vm1580_vm2, %v4831_v6 }
 0x2bd   :  { %v1683_v46 = vpop.f32.mrf.mxu2  ;;  %v1579_v51 = vmax.f32 %v1567_v28, 0.0 }
 0x2be   :  { %v1695_v50 = vadd.f32 %v1683_v46, %v1652_v60 }
 0x2bf   :  { %v1613_v29 = vpop.f32.mrf.mxu0 }
 0x2c0   :  { %v1655_v18 = vadd.f32 %v1654_v34, %v1613_v29 }
 0x2c2   :  { %2822 = vmatmul.msk.f32.vlgmr.msrb.gmra.mxu1 %vm1580_vm2, %v4563_v15 }
 0x2c3   :  { %2805 = vmatmul.msk.f32.gmra.mxu0 %vm1580_vm2, %v4930_v16  ;;  %2815 = vmatmul.msk.f32.gmra.mxu3 %vm1580_vm2, %v4636_v36 }
 0x2c4   :  { %2812 = vmatmul.msk.f32.gmra.mxu2 %vm1580_vm2, %v4930_v16 }
 0x2c5   :  { %v1719_v24 = vpop.f32.mrf.mxu3 }
 0x2c6   :  { %v1731_v38 = vadd.f32 %v1719_v24, %v1695_v50 }
 0x2c7   :  { %v1657_v10 = vpop.f32.mrf.mxu1 }
 0x2ca   :  { %2823 = vmatmul.msk.f32.gmra.mxu1 %vm1580_vm2, %v4694_v63 }
 0x2cb   :  { %2816 = vmatmul.msk.f32.gmra.mxu3 %vm1580_vm2, %v4763_v58  ;;  %2818 = vmatmul.msk.f32.vlgmr.msrb.gmra.mxu0 %vm1580_vm2, %v5706_v12 }
 0x2cc   :  { %2813 = vmatmul.msk.f32.gmra.mxu2 %vm1580_vm2, %v1579_v51 }
 0x2cd   :  { %v1686_v8 = vpop.f32.mrf.mxu2 }
 0x2ce   :  { %v1696_v62 = vadd.f32 %v1686_v8, %v1655_v18 }
 0x2cf   :  { %v1616_v26 = vpop.f32.mrf.mxu0 }
 0x2d0   :  { %v1658_v43 = vadd.f32 %v1657_v10, %v1616_v26 }
 0x2d2   :  { %2824 = vmatmul.msk.f32.gmra.mxu1 %vm1580_vm2, %v4831_v6 }
 0x2d3   :  { %2817 = vmatmul.msk.f32.gmra.mxu3 %vm1580_vm2, %v4891_v53  ;;  %2819 = vmatmul.msk.f32.gmra.mxu0 %vm1580_vm2, %v4563_v15 }
 0x2d4   :  { %2826 = vmatmul.msk.f32.vlgmr.msra.gmra.mxu2 %vm1580_vm2, %v4636_v36 }
 0x2d5   :  { %v1722_v14 = vpop.f32.mrf.mxu3 }
 0x2d6   :  { %v1732_v55 = vadd.f32 %v1722_v14, %v1696_v62 }
 0x2d7   :  { %v1660_v22 = vpop.f32.mrf.mxu1 }
 0x2da   :  { %2825 = vmatmul.msk.f32.gmra.mxu1 %vm1580_vm2, %v4930_v16 }
 0x2db   :  { %2820 = vmatmul.msk.f32.gmra.mxu0 %vm1580_vm2, %v4694_v63  ;;  %2830 = vmatmul.msk.f32.vlgmr.msra.gmra.mxu3 %vm1580_vm2, %v4694_v63 }
 0x2dc   :  { %2827 = vmatmul.msk.f32.gmra.mxu2 %vm1580_vm2, %v4763_v58 }
 0x2dd   :  { %v1689_v15 = vpop.f32.mrf.mxu2 }
 0x2de   :  { %v1697_v42 = vadd.f32 %v1689_v15, %v1658_v43 }
 0x2df   :  { %v1788_v36 = vpop.f32.mrf.mxu1 }
 0x2e0   :  { %v1619_v5 = vpop.f32.mrf.mxu0 }
 0x2e1   :  { %v1661_v25 = vadd.f32 %v1660_v22, %v1619_v5 }
 0x2e3   :  { %2821 = vmatmul.msk.f32.gmra.mxu0 %vm1580_vm2, %v4831_v6  ;;  %2831 = vmatmul.msk.f32.gmra.mxu3 %vm1580_vm2, %v4831_v6 }
 0x2e4   :  { %2828 = vmatmul.msk.f32.gmra.mxu2 %vm1580_vm2, %v4891_v53 }
 0x2e6   :  { %v1725_v63 = vpop.f32.mrf.mxu3 }
 0x2e7   :  { %v1733_v54 = vadd.f32 %v1725_v63, %v1697_v42  ;;  %v1791_v58 = vpop.f32.mrf.mxu1 }
 0x2e8   :  { %v1755_v4 = vpop.f32.mrf.mxu0 }
 0x2e9   :  { %v5137_v20 = vadd.f32 %v1755_v4, %v1731_v38  ;;  %v2276_v4 = vld [vmem:[%s5440_s5 + $0x38] sm:$0xff] }
 0x2ea   :  { %2336 = vmatpush.msra.mxu1 %v2276_v4  ;;  %v2286_v4 = vld [vmem:[%s5440_s5 + $0x88] sm:$0xff] }
 0x2eb   :  { %2832 = vmatmul.msk.f32.gmra.mxu3 %vm1580_vm2, %v4930_v16 }
 0x2ec   :  { %2829 = vmatmul.msk.f32.gmra.mxu2 %vm1580_vm2, %v4983_v27 }
 0x2ee   :  { %v1692_v56 = vpop.f32.mrf.mxu2 }
 0x2ef   :  { %v1698_v35 = vadd.f32 %v1692_v56, %v1661_v25  ;;  %v1794_v6 = vpop.f32.mrf.mxu1 }
 0x2f0   :  { %v1758_v19 = vpop.f32.mrf.mxu0 }
 0x2f1   :  { %v5143_v9 = vadd.f32 %v1758_v19, %v1732_v55  ;;  %v2274_v19 = vld [vmem:[%s5440_s5 + $0x28] sm:$0xff] }
 0x2f3   :  { %2833 = vmatmul.msk.f32.gmra.mxu3 %vm1580_vm2, %v1579_v51 }
 0x2f6   :  { %v1728_v53 = vpop.f32.mrf.mxu3 }
 0x2f7   :  { %v1734_v1 = vadd.f32 %v1728_v53, %v1698_v35  ;;  %v1817_v17 = vpop.f32.mrf.mxu2  ;;  %v1797_v49 = vpop.f32.mrf.mxu1 }
 0x2f8   :  { %v1818_v2 = vadd.f32 %v1817_v17, %v1788_v36  ;;  %v1761_v33 = vpop.f32.mrf.mxu0  ;;  %v2284_v17 = vld [vmem:[%s5440_s5 + $0x78] sm:$0xff] }
 0x2f9   :  { %v5146_v41 = vadd.f32 %v1761_v33, %v1733_v54  ;;  %2313 = vmatpush.msra.mxu0 %v2284_v17  ;;  %v2296_v17 = vld [vmem:[%s5440_s5 + $0xd8] sm:$0xff] }
 0x2fe   :  { %v1846_v16 = vpop.f32.mrf.mxu3 }
 0x2ff   :  { %v1820_v30 = vpop.f32.mrf.mxu2  ;;  %v1858_v11 = vadd.f32 %v1846_v16, %v1818_v2  ;;  %v1912_v23 = vpop.f32.mrf.mxu1  ;;  %v2272_v2 = vld [vmem:[%s5440_s5 + $0x18] sm:$0xff]  ;;  %v2271_v16 = vld [vmem:[%s5440_s5 + $0x10] sm:$0xff] }
 0x300   :  { %v1821_v27 = vadd.f32 %v1820_v30, %v1791_v58  ;;  %v1764_v12 = vpop.f32.mrf.mxu0  ;;  %v2275_v58 = vld [vmem:[%s5440_s5 + $0x30] sm:$0xff] }
 0x301   :  { %v5148_v47 = vadd.f32 %v1764_v12, %v1734_v1  ;;  %2337 = vmatpush.msra.mxu1 %v2275_v58  ;;  %v2273_v1 = vld [vmem:[%s5440_s5 + $0x20] sm:$0xff] }
 0x303   :  { %2338 = vmatpush.msra.mxu1 %v2274_v19 }
 0x305   :  { %2339 = vmatpush.msra.mxu1 %v2273_v1 }
 0x306   :  { %v1849_v40 = vpop.f32.mrf.mxu3 }
 0x307   :  { %v1823_v61 = vpop.f32.mrf.mxu2  ;;  %v1859_v57 = vadd.f32 %v1849_v40, %v1821_v27  ;;  %v1915_v0 = vpop.f32.mrf.mxu1  ;;  %2340 = vmatpush.msra.mxu1 %v2272_v2  ;;  %v2270_v27 = vld [vmem:[%s5440_s5 + $0x8] sm:$0xff]  ;;  %v2300_v40 = vld [vmem:[%s5440_s5 + $0xf8] sm:$0xff]  ;;  %v2295_v2 = vld [vmem:[%s5440_s5 + $0xd0] sm:$0xff] }
 0x308   :  { %v1824_v13 = vadd.f32 %v1823_v61, %v1794_v6  ;;  %v1879_v31 = vpop.f32.mrf.mxu0  ;;  %v2291_v61 = vld [vmem:[%s5440_s5 + $0xb0] sm:$0xff]  ;;  %2383 = vmatpush.msrb.mxu3 %v2300_v40  ;;  %v2294_v40 = vld [vmem:[%s5440_s5 + $0xc8] sm:$0xff] }
 0x309   :  { %v1891_v32 = vadd.f32 %v1879_v31, %v1858_v11  ;;  %2341 = vmatpush.msra.mxu1 %v2271_v16  ;;  %v2282_v11 = vld [vmem:[%s5440_s5 + $0x68] sm:$0xff]  ;;  %v2269_v31 = vld [vmem:[%s5440_s5] sm:$0xff] }
 0x30a   :  { %v2285_v16 = vld [vmem:[%s5440_s5 + $0x80] sm:$0xff] }
 0x30b   :  { %v5150_v45 = vadd.f32 %v1912_v23, %v1891_v32  ;;  %v2292_v23 = vld [vmem:[%s5440_s5 + $0xb8] sm:$0xff]  ;;  %2342 = vmatpush.msra.mxu1 %v2270_v27 }
 0x30c   :  { %2359 = vmatpush.msrb.mxu2 %v2292_v23 }
 0x30d   :  { %v1928_v21 = vmax.f32 %v5137_v20, %v5150_v45  ;;  %2343 = vmatpush.msra.mxu1 %v2269_v31 }
 0x30e   :  { %v1852_v52 = vpop.f32.mrf.mxu3  ;;  %2360 = vmatpush.msrb.mxu2 %v2291_v61 }
 0x30f   :  { %v1826_v3 = vpop.f32.mrf.mxu2  ;;  %v1860_v48 = vadd.f32 %v1852_v52, %v1824_v13  ;;  %v1918_v34 = vpop.f32.mrf.mxu1  ;;  %v2281_v13 = vld [vmem:[%s5440_s5 + $0x60] sm:$0xff]  ;;  %v2279_v52 = vld [vmem:[%s5440_s5 + $0x50] sm:$0xff] }
 0x310   :  { %v1827_v7 = vadd.f32 %v1826_v3, %v1797_v49  ;;  %v1882_v37 = vpop.f32.mrf.mxu0  ;;  %v2283_v49 = vld [vmem:[%s5440_s5 + $0x70] sm:$0xff] }
 0x311   :  { %v1892_v59 = vadd.f32 %v1882_v37, %v1859_v57  ;;  %2314 = vmatpush.msra.mxu0 %v2283_v49  ;;  %v2299_v57 = vld [vmem:[%s5440_s5 + $0xf0] sm:$0xff]  ;;  %v2278_v37 = vld [vmem:[%s5440_s5 + $0x48] sm:$0xff] }
 0x312   :  { %2384 = vmatpush.msrb.mxu3 %v2299_v57 }
 0x313   :  { %v5154_v39 = vadd.f32 %v1915_v0, %v1892_v59  ;;  %2315 = vmatpush.msra.mxu0 %v2282_v11  ;;  %v2280_v0 = vld [vmem:[%s5440_s5 + $0x58] sm:$0xff] }
 0x315   :  { %v1929_v60 = vmax.f32 %v5143_v9, %v5154_v39  ;;  %2316 = vmatpush.msra.mxu0 %v2281_v13 }
 0x316   :  { %v1855_v44 = vpop.f32.mrf.mxu3 }
 0x317   :  { %v1861_v46 = vadd.f32 %v1855_v44, %v1827_v7  ;;  %v5158_v50 = vpop.f32.mrf.mxu2  ;;  %v1921_v10 = vpop.f32.mrf.mxu1  ;;  %2317 = vmatpush.msra.mxu0 %v2280_v0  ;;  %v2290_v7 = vld [vmem:[%s5440_s5 + $0xa8] sm:$0xff] }
 0x318   :  { %v1885_v29 = vpop.f32.mrf.mxu0  ;;  %2361 = vmatpush.msrb.mxu2 %v2290_v7  ;;  %v2298_v44 = vld [vmem:[%s5440_s5 + $0xe8] sm:$0xff] }
 0x319   :  { %v1893_v18 = vadd.f32 %v1885_v29, %v1860_v48  ;;  %2318 = vmatpush.msra.mxu0 %v2279_v52  ;;  %2385 = vmatpush.msrb.mxu3 %v2298_v44  ;;  %v2277_v29 = vld [vmem:[%s5440_s5 + $0x40] sm:$0xff] }
 0x31b   :  { %v5160_v28 = vadd.f32 %v1918_v34, %v1893_v18  ;;  %v2297_v34 = vld [vmem:[%s5440_s5 + $0xe0] sm:$0xff]  ;;  %2319 = vmatpush.msra.mxu0 %v2278_v37  ;;  %v2288_v18 = vld [vmem:[%s5440_s5 + $0x98] sm:$0xff] }
 0x31c   :  { %2386 = vmatpush.msrb.mxu3 %v2297_v34 }
 0x31d   :  { %v1930_v24 = vmax.f32 %v5146_v41, %v5160_v28  ;;  %2320 = vmatpush.msra.mxu0 %v2277_v29  ;;  %v2416_v41 = vld [vmem:[%s5443_s7 + $0x70] sm:$0xff]  ;;  %v2415_v28 = vld [vmem:[%s5443_s7 + $0x68] sm:$0xff] }
 0x31e   :  { %v5164_v38 = vpop.f32.mrf.mxu3  ;;  %2387 = vmatpush.msrb.mxu3 %v2296_v17 }
 0x31f   :  { %v5166_v51 = vpop.f32.mrf.mxu2  ;;  %v5178_v15 = vpop.f32.mrf.mxu1  ;;  %v1979_v58 = vadd.f32 %v5164_v38, %v5158_v50  ;;  %2426 = vmatpush.msrb.mxu0 %v2416_v41 }
 0x320   :  { %v1888_v8 = vpop.f32.mrf.mxu0  ;;  %2388 = vmatpush.msrb.mxu3 %v2295_v2 }
 0x321   :  { %v1894_v62 = vadd.f32 %v1888_v8, %v1861_v46  ;;  %v2289_v46 = vld [vmem:[%s5440_s5 + $0xa0] sm:$0xff]  ;;  %2427 = vmatpush.msrb.mxu0 %v2415_v28 }
 0x322   :  { %2362 = vmatpush.msrb.mxu2 %v2289_v46  ;;  %2389 = vmatpush.msrb.mxu3 %v2294_v40  ;;  %v2407_v40 = vld [vmem:[%s5443_s7 + $0x28] sm:$0xff] }
 0x323   :  { %v5168_v26 = vadd.f32 %v1921_v10, %v1894_v62  ;;  %v2287_v62 = vld [vmem:[%s5440_s5 + $0x90] sm:$0xff] }
 0x324   :  { %2363 = vmatpush.msrb.mxu2 %v2288_v18 }
 0x325   :  { %v1931_v43 = vmax.f32 %v5148_v47, %v5168_v26  ;;  %v2413_v47 = vld [vmem:[%s5443_s7 + $0x58] sm:$0xff]  ;;  %v2412_v26 = vld [vmem:[%s5443_s7 + $0x50] sm:$0xff] }
 0x326   :  { %v5172_v14 = vpop.f32.mrf.mxu3  ;;  %2364 = vmatpush.msrb.mxu2 %v2287_v62 }
 0x327   :  { %v5174_v55 = vpop.f32.mrf.mxu2  ;;  %v5186_v36 = vpop.f32.mrf.mxu1  ;;  %v1982_v61 = vadd.f32 %v5172_v14, %v5166_v51 }
 0x328   :  { %v5176_v22 = vpop.f32.mrf.mxu0  ;;  %2365 = vmatpush.msrb.mxu2 %v2286_v4 }
 0x329   :  { %v2019_v11 = vadd.f32 %v5176_v22, %v1979_v58 }
 0x32a   :  { %2366 = vmatpush.msrb.mxu2 %v2285_v16 }
 0x32b   :  { %v2052_v38 = vadd.f32 %v5178_v15, %v2019_v11  ;;  %v2293_v15 = vld [vmem:[%s5440_s5 + $0xc0] sm:$0xff] }
 0x32c   :  { %2390 = vmatpush.msrb.mxu3 %v2293_v15  ;;  %v2456_v15 = vld [vmem:[%s5444_s9 + $0x50] sm:$0xf] }
 0x32d   :  { %2839 = vmatpush.msk.msrb.mxu1 %vm233_vm0, %v2456_v15 }
 0x32e   :  { %v5180_v42 = vpop.f32.mrf.mxu3 }
 0x32f   :  { %v5182_v5 = vpop.f32.mrf.mxu2  ;;  %v5205_v53 = vpop.f32.mrf.mxu1  ;;  %v1985_v44 = vadd.f32 %v5180_v42, %v5174_v55 }
 0x330   :  { %v5184_v25 = vpop.f32.mrf.mxu0 }
 0x331   :  { %v2020_v0 = vadd.f32 %v5184_v25, %v1982_v61  ;;  %v2406_v61 = vld [vmem:[%s5443_s7 + $0x20] sm:$0xff] }
 0x336   :  { %v5188_v63 = vpop.f32.mrf.mxu3 }
 0x337   :  { %v5190_v54 = vpop.f32.mrf.mxu2  ;;  %v5252_v32 = vpop.f32.mrf.mxu1 }
 0x338   :  { %v5198_v56 = vpop.f32.mrf.mxu0  ;;  %v2088_v57 = vadd.f32 %v5190_v54, %v2052_v38 }
 0x339   :  { %v2021_v4 = vadd.f32 %v5198_v56, %v1985_v44 }
 0x33b   :  { %v2054_v42 = vadd.f32 %v5205_v53, %v2021_v4  ;;  %v2448_v4 = vld [vmem:[%s5444_s9 + $0x10] sm:$0xff] }
 0x33e   :  { %v2109_v35 = vpop.f32.mrf.mxu3 }
 0x33f   :  { %v5203_v6 = vpop.f32.mrf.mxu2  ;;  %v2167_v8 = vpop.f32.mrf.mxu1 }
 0x340   :  { %v5216_v33 = vpop.f32.mrf.mxu0 }
 0x346   :  { %v5224_v30 = vpop.f32.mrf.mxu3 }
 0x347   :  { %v5232_v12 = vpop.f32.mrf.mxu2  ;;  %v2170_v27 = vpop.f32.mrf.mxu1 }
 0x348   :  { %v2138_v3 = vpop.f32.mrf.mxu0 }
 0x349   :  { %v2139_v19 = vadd.f32 %v2138_v3, %v2109_v35  ;;  %v2850_v3 = vld [vmem:[%s5439_s4] ss:$0 sm:$0xff] }
 0x34b   :  { %v2179_v50 = vadd.f32 %v2167_v8, %v2139_v19  ;;  %v2090_v19 = vadd.f32 %v5232_v12, %v2054_v42 }
 0x34e   :  { %v2115_v48 = vpop.f32.mrf.mxu3 }
 0x34f   :  { %v5266_v59 = vpop.f32.mrf.mxu2  ;;  %v2173_v8 = vpop.f32.mrf.mxu1 }
 0x350   :  { %v2141_v49 = vpop.f32.mrf.mxu0 }
 0x351   :  { %v2142_v13 = vadd.f32 %v2141_v49, %v5224_v30  ;;  %v2053_v30 = vadd.f32 %v5186_v36, %v2020_v0  ;;  %v2455_v0 = vld [vmem:[%s5444_s9 + $0x48] sm:$0xff] }
 0x352   :  { %2474 = vmatpush.msrb.mxu1 %v2455_v0 }
 0x353   :  { %v2180_v14 = vadd.f32 %v2170_v27, %v2142_v13  ;;  %v2089_v46 = vadd.f32 %v5203_v6, %v2053_v30  ;;  %v2404_v13 = vld [vmem:[%s5443_s7 + $0x10] sm:$0xff]  ;;  %v2449_v30 = vld [vmem:[%s5444_s9 + $0x18] sm:$0xff] }
 0x356   :  { %v2118_v10 = vpop.f32.mrf.mxu3 }
 0x357   :  { %v2200_v1 = vpop.f32.mrf.mxu2  ;;  %v2176_v9 = vpop.f32.mrf.mxu1 }
 0x358   :  { %v2212_v35 = vadd.f32 %v2200_v1, %v2179_v50  ;;  %v2144_v51 = vpop.f32.mrf.mxu0 }
 0x359   :  { %v2145_v34 = vadd.f32 %v2144_v51, %v2115_v48  ;;  %v1988_v48 = vadd.f32 %v5188_v63, %v5182_v5  ;;  %v2452_v51 = vld [vmem:[%s5444_s9 + $0x30] sm:$0xff] }
 0x35b   :  { %v2181_v45 = vadd.f32 %v2173_v8, %v2145_v34  ;;  %v2022_v2 = vadd.f32 %v5216_v33, %v1988_v48  ;;  %v2851_v34 = vld [vmem:[%s5441_s6] ss:$0 sm:$0xff] }
 0x35d   :  { %v2055_v5 = vadd.f32 %v5252_v32, %v2022_v2  ;;  %v2410_v32 = vld [vmem:[%s5443_s7 + $0x40] sm:$0xff] }
 0x35e   :  { %v2233_v23 = vpop.f32.mrf.mxu3 }
 0x35f   :  { %v2203_v22 = vpop.f32.mrf.mxu2  ;;  %v2245_v31 = vadd.f32 %v2233_v23, %v2212_v35  ;;  %v2408_v23 = vld [vmem:[%s5443_s7 + $0x30] sm:$0xff] }
 0x360   :  { %v2213_v7 = vadd.f32 %v2203_v22, %v2180_v14  ;;  %v2147_v55 = vpop.f32.mrf.mxu0  ;;  %v2403_v22 = vld [vmem:[%s5443_s7 + $0x8] sm:$0xff] }
 0x361   :  { %v2249_v52 = vmax.f32 %v2088_v57, %v2245_v31  ;;  %v2148_v56 = vadd.f32 %v2147_v55, %v2118_v10  ;;  %v2091_v10 = vadd.f32 %v5266_v59, %v2055_v5  ;;  %v2409_v59 = vld [vmem:[%s5443_s7 + $0x38] sm:$0xff]  ;;  %v2402_v31 = vld [vmem:[%s5443_s7] sm:$0xff]  ;;  %v2451_v14 = vld [vmem:[%s5444_s9 + $0x28] sm:$0xff] }
 0x362   :  { %v2405_v57 = vld [vmem:[%s5443_s7 + $0x18] sm:$0xff] }
 0x363   :  { %v2253_v54 = vmax.f32 %v1928_v21, %v2249_v52  ;;  %v2454_v52 = vld [vmem:[%s5444_s9 + $0x40] sm:$0xff] }
 0x364   :  { %2475 = vmatpush.msrb.mxu1 %v2454_v52 }
 0x365   :  { %v2261_v37 = vadd.f32 %v2850_v3, %v2253_v54  ;;  %v2450_v54 = vld [vmem:[%s5444_s9 + $0x20] sm:$0xff] }
 0x366   :  { %v2236_v25 = vpop.f32.mrf.mxu3 }
 0x367   :  { %v2265_v29 = vmax.f32 %v2261_v37, 0.0  ;;  %v2246_v18 = vadd.f32 %v2236_v25, %v2213_v7  ;;  %v2206_v62 = vpop.f32.mrf.mxu2 }
 0x368   :  { %v2214_v36 = vadd.f32 %v2206_v62, %v2181_v45  ;;  %v2446_v45 = vld [vmem:[%s5444_s9] sm:$0xff] }
 0x369   :  { %v2250_v20 = vmax.f32 %v2089_v46, %v2246_v18  ;;  %2835 = vmatmul.msk.f32.vlgmr.msra.gmra.mxu1 %vm2301_vm3, %v2265_v29 }
 0x36b   :  { %v2254_v21 = vmax.f32 %v1929_v60, %v2250_v20  ;;  %v2182_v60 = vadd.f32 %v2176_v9, %v2148_v56  ;;  %v2447_v20 = vld [vmem:[%s5444_s9 + $0x8] sm:$0xff] }
 0x36d   :  { %v2262_v6 = vadd.f32 %v2850_v3, %v2254_v21  ;;  %v2852_v21 = vld [vmem:[%s5442_s8] ss:$0 sm:$0xff] }
 0x36e   :  { %v2239_v58 = vpop.f32.mrf.mxu3 }
 0x36f   :  { %v2266_v1 = vmax.f32 %v2262_v6, 0.0  ;;  %v2247_v17 = vadd.f32 %v2239_v58, %v2214_v36  ;;  %v2209_v39 = vpop.f32.mrf.mxu2  ;;  %v2853_v6 = vld [vmem:[%s5445_s10] ss:$0 sm:$0xff] }
 0x370   :  { %v2215_v63 = vadd.f32 %v2209_v39, %v2182_v60 }
 0x371   :  { %v2251_v49 = vmax.f32 %v2090_v19, %v2247_v17  ;;  %2834 = vmatmul.msk.f32.vlgmr.msra.gmra.mxu0 %vm2301_vm3, %v2266_v1 }
 0x373   :  { %v2255_v53 = vmax.f32 %v1930_v24, %v2251_v49  ;;  %v2414_v24 = vld [vmem:[%s5443_s7 + $0x60] sm:$0xff] }
 0x374   :  { %2428 = vmatpush.msrb.mxu0 %v2414_v24 }
 0x375   :  { %v2263_v16 = vadd.f32 %v2850_v3, %v2255_v53 }
 0x376   :  { %v2242_v12 = vpop.f32.mrf.mxu3  ;;  %2429 = vmatpush.msrb.mxu0 %v2413_v47 }
 0x377   :  { %v2267_v11 = vmax.f32 %v2263_v16, 0.0  ;;  %v2248_v50 = vadd.f32 %v2242_v12, %v2215_v63 }
 0x378   :  { %2430 = vmatpush.msrb.mxu0 %v2412_v26 }
 0x379   :  { %v2252_v33 = vmax.f32 %v2091_v10, %v2248_v50  ;;  %2836 = vmatmul.msk.f32.vlgmr.msrb.gmra.mxu2 %vm2301_vm3, %v2267_v11 }
 0x37b   :  { %v2256_v38 = vmax.f32 %v1931_v43, %v2252_v33  ;;  %v2411_v43 = vld [vmem:[%s5443_s7 + $0x48] sm:$0xff] }
 0x37c   :  { %2431 = vmatpush.msrb.mxu0 %v2411_v43 }
 0x37d   :  { %v2264_v35 = vadd.f32 %v2850_v3, %v2256_v38  ;;  %v2453_v3 = vld [vmem:[%s5444_s9 + $0x38] sm:$0xff] }
 0x37e   :  { %2432 = vmatpush.msrb.mxu0 %v2410_v32  ;;  %2476 = vmatpush.msrb.mxu1 %v2453_v3 }
 0x37f   :  { %v2268_v27 = vmax.f32 %v2264_v35, 0.0 }
 0x380   :  { %2433 = vmatpush.msrb.mxu0 %v2409_v59  ;;  %2477 = vmatpush.msrb.mxu1 %v2452_v51 }
 0x381   :  { %2837 = vmatmul.msk.f32.vlgmr.msrb.gmra.mxu3 %vm2301_vm3, %v2268_v27 }
 0x382   :  { %2434 = vmatpush.msrb.mxu0 %v2408_v23  ;;  %2478 = vmatpush.msrb.mxu1 %v2451_v14 }
 0x384   :  { %2435 = vmatpush.msrb.mxu0 %v2407_v40  ;;  %2479 = vmatpush.msrb.mxu1 %v2450_v54 }
 0x386   :  { %2436 = vmatpush.msrb.mxu0 %v2406_v61  ;;  %2480 = vmatpush.msrb.mxu1 %v2449_v30 }
 0x388   :  { %2437 = vmatpush.msrb.mxu0 %v2405_v57  ;;  %2481 = vmatpush.msrb.mxu1 %v2448_v4 }
 0x38a   :  { %2438 = vmatpush.msrb.mxu0 %v2404_v13  ;;  %2482 = vmatpush.msrb.mxu1 %v2447_v20 }
 0x38c   :  { %2439 = vmatpush.msrb.mxu0 %v2403_v22  ;;  %2483 = vmatpush.msrb.mxu1 %v2446_v45 }
 0x38e   :  { %2440 = vmatpush.msrb.mxu0 %v2402_v31 }
 0x3e6   :  { %v2345_v37 = vpop.f32.mrf.mxu1 }
 0x3ee   :  { %v2322_v7 = vpop.f32.mrf.mxu0 }
 0x3ef   :  { %v2346_v25 = vadd.f32 %v2345_v37, %v2322_v7 }
 0x3fc   :  { %v2368_v44 = vpop.f32.mrf.mxu2 }
 0x3fd   :  { %v2371_v46 = vadd.f32 %v2368_v44, %v2346_v25 }
 0x404   :  { %v2392_v29 = vpop.f32.mrf.mxu3 }
 0x405   :  { %v2395_v18 = vadd.f32 %v2392_v29, %v2371_v46 }
 0x407   :  { %v2400_v8 = vadd.f32 %v2851_v34, %v2395_v18 }
 0x409   :  { %v2401_v62 = vmax.f32 %v2400_v8, 0.0 }
 0x40b   :  { %2838 = vmatmul.msk.f32.vlgmr.msrb.gmra.mxu0 %vm2421_vm4, %v2401_v62 }
 0x488   :  { %v2442_v55 = vpop.f32.mrf.mxu0 }
 0x489   :  { %v2443_v42 = vadd.f32 %v2852_v21, %v2442_v55 }
 0x48b   :  { %v2445_v36 = vmax.f32 %v2443_v42, 0.0 }
 0x48d   :  { %2840 = vmatmul.msk.f32.vlgmr.msrb.gmra.mxu1 %vm2461_vm5, %v2445_v36 }
 0x50a   :  { %v2485_v48 = vpop.f32.mrf.mxu1 }
 0x50b   :  { %v2486_v58 = vadd.f32 %v2853_v6, %v2485_v48 }
 0x50d   :  { %2489 = vst.msk [vmem:[%s5446_s11] sm:$0xff] %vm2488_vm6, %v2486_v58 }

</bundles_post_ra>
